<compile_context>
chip_gen: v5e
topology: v5e:2x2
jax: 0.10.0
libtpu: 0.0.40
codegen_flags: <defaults>
</compile_context>

<pallas_src>
import jax
import jax.numpy as jnp
from jax import lax
from jax.experimental import pallas as pl
from jax.experimental.pallas import tpu as pltpu

# ---- model sizes (small, consistent with the module) ----
B = 8           # batch size
T = 8           # decoded sequence length (= text_input.shape[1])
H = 32          # hidden_dim
V = 128         # value_size (context width; key.shape[2] in the module)
K = 128         # key_size   (lstm2 hidden size)
VOCAB = 48      # vocab_size
VOCAB_PAD = 64  # sublane-padded vocab for the one-hot gather table
LANE = 128      # lane-dense output width (VOCAB padded up to a full vreg)


def decoder_kernel(ids_ref,                 # (T*B, 1)   int32 token ids, time-major
                   table_ref,               # (VOCAB_PAD, 4H) bf16 = emb @ W1x[:H] + b1
                   w1h_ref,                 # (H, 4H)    bf16
                   w2_ref,                  # (K+H, 4K)  bf16  (rows: W2h then W2x)
                   b2_ref,                  # (1, 4K)    f32
                   wout_ref,                # (K, LANE)  bf16  (zero-padded cols)
                   bout_ref,                # (1, LANE)  f32
                   pred_ref,                # (T*B, LANE) f32
                   x1_scr,                  # scratch (T*B, 4H) f32
                   h2_scr):                 # scratch (T*B, K)  f32
    TB = T * B

    # ---- folded embedding + LSTM1 input matmul: one-hot gather on the MXU ----
    cols = lax.broadcasted_iota(jnp.int32, (TB, VOCAB_PAD), 1)
    one_hot = jnp.where(cols == ids_ref[...], 1.0, 0.0).astype(jnp.bfloat16)
    x1_scr[...] = jnp.dot(one_hot, table_ref[...],
                          preferred_element_type=jnp.float32)        # (T*B, 4H)

    # Hoisted once (JAX does not CSE broadcast_in_dim inside the unrolled loop).
    b2b = jnp.broadcast_to(b2_ref[...], (B, 4 * K))                  # (B, 4K)

    def step(t, carry):
        h1, c1, h2, c2 = carry

        # ---- LSTMCell 1 (PyTorch gate order i,f,g,o), hidden H ----
        x1 = x1_scr[pl.ds(t * B, B), :]                              # (B, 4H)
        g1 = x1 + jnp.dot(h1.astype(jnp.bfloat16), w1h_ref[...],
                          preferred_element_type=jnp.float32)        # (B, 4H) = (8,128)
        s1 = jax.nn.sigmoid(g1)          # full-width EUP pass
        th1 = jnp.tanh(g1)               # full-width EUP pass
        i1 = s1[:, 0 * H:1 * H]
        f1 = s1[:, 1 * H:2 * H]
        gg1 = th1[:, 2 * H:3 * H]
        o1 = s1[:, 3 * H:4 * H]
        c1 = f1 * c1 + i1 * gg1
        h1 = o1 * jnp.tanh(c1)

        # ---- LSTMCell 2: single fused (8,160)@(160,512) matmul ----
        # [h2, h1] @ [[W2h],[W2x]] == h1 @ W2x + h2 @ W2h ; h2 (128 lanes) first so
        # the lane-concat needs no rotate.
        hcat = jnp.concatenate([h2, h1], axis=1).astype(jnp.bfloat16)  # (B, K+H)
        g2 = jnp.dot(hcat, w2_ref[...],
                     preferred_element_type=jnp.float32) + b2b          # (B, 4K)
        i2 = jax.nn.sigmoid(g2[:, 0 * K:1 * K])
        f2 = jax.nn.sigmoid(g2[:, 1 * K:2 * K])
        gg2 = jnp.tanh(g2[:, 2 * K:3 * K])
        o2 = jax.nn.sigmoid(g2[:, 3 * K:4 * K])
        c2 = f2 * c2 + i2 * gg2
        h2 = o2 * jnp.tanh(c2)

        h2_scr[pl.ds(t * B, B), :] = h2                              # stash for deferred proj
        return (h1, c1, h2, c2)

    init = (jnp.zeros((B, H), jnp.float32), jnp.zeros((B, H), jnp.float32),
            jnp.zeros((B, K), jnp.float32), jnp.zeros((B, K), jnp.float32))
    _ = lax.fori_loop(0, T, step, init, unroll=True)

    # ---- deferred character_prob: one (T*B, K) @ (K, LANE) matmul, lane-dense store ----
    pred_ref[...] = (jnp.dot(h2_scr[...].astype(jnp.bfloat16), wout_ref[...],
                             preferred_element_type=jnp.float32)
                     + bout_ref[...])


def image2seq_forward(text_input, params):
    """Equivalent of Image2Seq.forward(..., text_input=..., isTrain=True), isAttended=False."""
    # ---- host-side weight prep (would be cached/jitted once in a real deployment) ----
    # Context is identically zero -> drop the value-size rows of W1x and Wout.
    w1x_h = params["w1x"][:H, :]                                       # (H, 4H)
    # Fold embedding + input-to-hidden matmul + fused bias into one lookup table.
    table = params["emb"] @ w1x_h + params["b1"]                       # (VOCAB, 4H)
    table = (jnp.zeros((VOCAB_PAD, 4 * H), jnp.float32)
             .at[:VOCAB].set(table).astype(jnp.bfloat16))
    w1h = params["w1h"].astype(jnp.bfloat16)
    # Fused LSTM2 weight: rows = [W2h ; W2x] to match the [h2, h1] lane-concat.
    w2 = jnp.concatenate([params["w2h"], params["w2x"]],
                         axis=0).astype(jnp.bfloat16)                  # (K+H, 4K)
    wout = (jnp.zeros((K, LANE), jnp.float32)
            .at[:, :VOCAB].set(params["wout"][:K, :]).astype(jnp.bfloat16))
    bout = jnp.zeros((1, LANE), jnp.float32).at[:, :VOCAB].set(params["bout"])
    # Token ids, time-major flat, as an (T*B, 1) int32 VMEM vector for the in-kernel gather.
    ids = text_input.T.reshape(T * B, 1).astype(jnp.int32)

    vmem = pl.BlockSpec(memory_space=pltpu.MemorySpace.VMEM)
    preds_pad = pl.pallas_call(
        decoder_kernel,
        out_shape=jax.ShapeDtypeStruct((T * B, LANE), jnp.float32),
        in_specs=[vmem] * 7,
        out_specs=vmem,
        scratch_shapes=[pltpu.VMEM((T * B, 4 * H), jnp.float32),   # x1 for all steps
                        pltpu.VMEM((T * B, K), jnp.float32)],      # h2 for all steps
    )(ids, table, w1h, w2, params["b2"], wout, bout)

    # (T*B, LANE) -> (B, T, VOCAB), like torch.cat(preds, dim=1)
    preds = preds_pad[:, :VOCAB].reshape(T, B, VOCAB)
    return jnp.transpose(preds, (1, 0, 2))


def make_params(key):
    ks = jax.random.split(key, 10)
    scale = 0.05
    emb = scale * jax.random.normal(ks[0], (VOCAB, H), jnp.float32)
    emb = emb.at[0].set(0.0)                         # padding_idx=0
    params = {
        "emb":  emb,
        # LSTMCell weights stored pre-transposed: (in_features, 4*hidden), gate order i,f,g,o
        "w1x":  scale * jax.random.normal(ks[1], (H + V, 4 * H), jnp.float32),
        "w1h":  scale * jax.random.normal(ks[2], (H, 4 * H), jnp.float32),
        "b1":   scale * jax.random.normal(ks[3], (1, 4 * H), jnp.float32),  # b_ih + b_hh fused
        "w2x":  scale * jax.random.normal(ks[4], (H, 4 * K), jnp.float32),
        "w2h":  scale * jax.random.normal(ks[5], (K, 4 * K), jnp.float32),
        "b2":   scale * jax.random.normal(ks[6], (1, 4 * K), jnp.float32),
        # character_prob: Linear(K+V, VOCAB), stored as (K+V, VOCAB)
        "wout": scale * jax.random.normal(ks[7], (K + V, VOCAB), jnp.float32),
        "bout": scale * jax.random.normal(ks[8], (1, VOCAB), jnp.float32),
    }
    return params


def reference_forward(text_input, params):
    """Pure-JAX f32 reference mirroring the PyTorch decoder loop (teacher forcing)."""
    embeddings = params["emb"][text_input]            # (B, T, H)
    h1 = jnp.zeros((B, H)); c1 = jnp.zeros((B, H))
    h2 = jnp.zeros((B, K)); c2 = jnp.zeros((B, K))
    context = jnp.zeros((B, V))
    preds = []
    for t in range(T):
        emb = embeddings[:, t, :]
        inp1 = jnp.concatenate([emb, context], axis=1)
        g1 = inp1 @ params["w1x"] + h1 @ params["w1h"] + params["b1"]
        i1 = jax.nn.sigmoid(g1[:, :H]); f1 = jax.nn.sigmoid(g1[:, H:2 * H])
        gg1 = jnp.tanh(g1[:, 2 * H:3 * H]); o1 = jax.nn.sigmoid(g1[:, 3 * H:])
        c1 = f1 * c1 + i1 * gg1
        h1 = o1 * jnp.tanh(c1)
        g2 = h1 @ params["w2x"] + h2 @ params["w2h"] + params["b2"]
        i2 = jax.nn.sigmoid(g2[:, :K]); f2 = jax.nn.sigmoid(g2[:, K:2 * K])
        gg2 = jnp.tanh(g2[:, 2 * K:3 * K]); o2 = jax.nn.sigmoid(g2[:, 3 * K:])
        c2 = f2 * c2 + i2 * gg2
        h2 = o2 * jnp.tanh(c2)
        inp3 = jnp.concatenate([h2, context], axis=1)
        preds.append(inp3 @ params["wout"] + params["bout"])
    return jnp.stack(preds, axis=1)                   # (B, T, VOCAB)


if __name__ == "__main__":
    root = jax.random.PRNGKey(0)
    k_param, k_text = jax.random.split(root)
    params = make_params(k_param)
    # text_input: integer token ids (B, T); speech_input is unused when isAttended=False.
    text_input = jax.random.randint(k_text, (B, T), 0, VOCAB, dtype=jnp.int32)

    out = image2seq_forward(text_input, params)
    out = jax.block_until_ready(out)

    ref = reference_forward(text_input, params)
    # Tolerance covers bf16 quantization of the MXU weight operands (f32 accumulation
    # everywhere); observed error is ~1e-3, bound is well under 2e-2.
    if not jnp.allclose(out, ref, atol=2e-2, rtol=2e-2):
        raise AssertionError("Pallas kernel output mismatch vs JAX reference")
    assert out.shape == (B, T, VOCAB)
    print("KERNEL_OK")
</pallas_src>

<mosaic_0001>
module attributes {stable_mosaic.version = 11 : i64} {
  func.func @decoder_kernel(%arg0: memref<64x1xi32, #tpu.memory_space<vmem>>, %arg1: memref<64x128xbf16, #tpu.memory_space<vmem>>, %arg2: memref<32x128xbf16, #tpu.memory_space<vmem>>, %arg3: memref<160x512xbf16, #tpu.memory_space<vmem>>, %arg4: memref<1x512xf32, #tpu.memory_space<vmem>>, %arg5: memref<128x128xbf16, #tpu.memory_space<vmem>>, %arg6: memref<1x128xf32, #tpu.memory_space<vmem>>, %arg7: memref<64x128xf32, #tpu.memory_space<vmem>>, %arg8: memref<64x128xf32, #tpu.memory_space<vmem>>, %arg9: memref<64x128xf32, #tpu.memory_space<vmem>>) attributes {dimension_semantics = [], scalar_prefetch = 0 : i64, scratch_operands = 2 : i64, tpu.core_type = #tpu.core_type<tc>} {
    %0 = tpu.iota {dimensions = array<i32: 1>} : vector<64x64xi32>
    %c0 = arith.constant 0 : index
    %c0_0 = arith.constant 0 : index
    %1 = vector.load %arg0[%c0, %c0_0] : memref<64x1xi32, #tpu.memory_space<vmem>>, vector<64x1xi32>
    %2 = vector.broadcast %1 : vector<64x1xi32> to vector<64x64xi32>
    %3 = arith.cmpi eq, %0, %2 : vector<64x64xi32>
    %cst = arith.constant 1.000000e+00 : f32
    %cst_1 = arith.constant 0.000000e+00 : f32
    %4 = vector.broadcast %cst : f32 to vector<64x64xf32>
    %5 = vector.broadcast %cst_1 : f32 to vector<64x64xf32>
    %6 = arith.select %3, %4, %5 : vector<64x64xi1>, vector<64x64xf32>
    %7 = arith.truncf %6 : vector<64x64xf32> to vector<64x64xbf16>
    %c0_2 = arith.constant 0 : index
    %c0_3 = arith.constant 0 : index
    %8 = vector.load %arg1[%c0_2, %c0_3] : memref<64x128xbf16, #tpu.memory_space<vmem>>, vector<64x128xbf16>
    %cst_4 = arith.constant dense<0.000000e+00> : vector<64x128xf32>
    %9 = tpu.matmul %7, %8, %cst_4 {dimension_numbers = #tpu.dot_dimension_numbers<[1], [0], [0], [1], [0, 0, 1, 1], [], []>} : vector<64x64xbf16>, vector<64x128xbf16>, vector<64x128xf32> -> vector<64x128xf32>
    %c0_5 = arith.constant 0 : index
    %c0_6 = arith.constant 0 : index
    %10 = vector.load %arg8[%c0_5, %c0_6] : memref<64x128xf32, #tpu.memory_space<vmem>>, vector<64x128xf32>
    tpu.vector_store %arg8[%c0_5, %c0_6], %9 {strides = array<i32>} : memref<64x128xf32, #tpu.memory_space<vmem>>, vector<64x128xf32>,
    %c0_7 = arith.constant 0 : index
    %c0_8 = arith.constant 0 : index
    %11 = vector.load %arg4[%c0_7, %c0_8] : memref<1x512xf32, #tpu.memory_space<vmem>>, vector<1x512xf32>
    %12 = vector.shape_cast %11 : vector<1x512xf32> to vector<1x512xf32>
    %13 = vector.broadcast %12 : vector<1x512xf32> to vector<8x512xf32>
    %cst_9 = arith.constant 0.000000e+00 : f32
    %14 = vector.broadcast %cst_9 : f32 to vector<8x32xf32>
    %cst_10 = arith.constant 0.000000e+00 : f32
    %15 = vector.broadcast %cst_10 : f32 to vector<8x32xf32>
    %cst_11 = arith.constant 0.000000e+00 : f32
    %16 = vector.broadcast %cst_11 : f32 to vector<8x128xf32>
    %cst_12 = arith.constant 0.000000e+00 : f32
    %17 = vector.broadcast %cst_12 : f32 to vector<8x128xf32>
    %c0_i32 = arith.constant 0 : i32
    %c8_i32 = arith.constant 8 : i32
    %18 = arith.muli %c0_i32, %c8_i32 : i32
    %19 = arith.index_cast %18 : i32 to index
    %c0_13 = arith.constant 0 : index
    %20 = vector.load %arg8[%19, %c0_13] : memref<64x128xf32, #tpu.memory_space<vmem>>, vector<8x128xf32>
    %21 = arith.truncf %14 : vector<8x32xf32> to vector<8x32xbf16>
    %c0_14 = arith.constant 0 : index
    %c0_15 = arith.constant 0 : index
    %22 = vector.load %arg2[%c0_14, %c0_15] : memref<32x128xbf16, #tpu.memory_space<vmem>>, vector<32x128xbf16>
    %cst_16 = arith.constant dense<0.000000e+00> : vector<8x128xf32>
    %23 = tpu.matmul %21, %22, %cst_16 {dimension_numbers = #tpu.dot_dimension_numbers<[1], [0], [0], [1], [0, 0, 1, 1], [], []>} : vector<8x32xbf16>, vector<32x128xbf16>, vector<8x128xf32> -> vector<8x128xf32>
    %24 = arith.addf %20, %23 : vector<8x128xf32>
    %25 = arith.negf %24 : vector<8x128xf32>
    %26 = math.exp %25 : vector<8x128xf32>
    %cst_17 = arith.constant 1.000000e+00 : f32
    %27 = vector.broadcast %cst_17 : f32 to vector<8x128xf32>
    %28 = arith.addf %27, %26 : vector<8x128xf32>
    %29 = arith.divf %27, %28 : vector<8x128xf32>
    %30 = math.tanh %24 : vector<8x128xf32>
    %31 = vector.extract_strided_slice %29 {offsets = [0, 0], sizes = [8, 32], strides = [1, 1]} : vector<8x128xf32> to vector<8x32xf32>
    %32 = vector.extract_strided_slice %29 {offsets = [0, 32], sizes = [8, 32], strides = [1, 1]} : vector<8x128xf32> to vector<8x32xf32>
    %33 = vector.extract_strided_slice %30 {offsets = [0, 64], sizes = [8, 32], strides = [1, 1]} : vector<8x128xf32> to vector<8x32xf32>
    %34 = vector.extract_strided_slice %29 {offsets = [0, 96], sizes = [8, 32], strides = [1, 1]} : vector<8x128xf32> to vector<8x32xf32>
    %35 = arith.mulf %32, %15 : vector<8x32xf32>
    %36 = arith.mulf %31, %33 : vector<8x32xf32>
    %37 = arith.addf %35, %36 : vector<8x32xf32>
    %38 = math.tanh %37 : vector<8x32xf32>
    %39 = arith.mulf %34, %38 : vector<8x32xf32>
    %40 = tpu.concatenate %16, %39 in 1 : vector<8x128xf32>, vector<8x32xf32> -> vector<8x160xf32>
    %41 = arith.truncf %40 : vector<8x160xf32> to vector<8x160xbf16>
    %c0_18 = arith.constant 0 : index
    %c0_19 = arith.constant 0 : index
    %42 = vector.load %arg3[%c0_18, %c0_19] : memref<160x512xbf16, #tpu.memory_space<vmem>>, vector<160x512xbf16>
    %cst_20 = arith.constant dense<0.000000e+00> : vector<8x512xf32>
    %43 = tpu.matmul %41, %42, %cst_20 {dimension_numbers = #tpu.dot_dimension_numbers<[1], [0], [0], [1], [0, 0, 1, 1], [], []>} : vector<8x160xbf16>, vector<160x512xbf16>, vector<8x512xf32> -> vector<8x512xf32>
    %44 = arith.addf %43, %13 : vector<8x512xf32>
    %45 = vector.extract_strided_slice %44 {offsets = [0, 0], sizes = [8, 128], strides = [1, 1]} : vector<8x512xf32> to vector<8x128xf32>
    %46 = arith.negf %45 : vector<8x128xf32>
    %47 = math.exp %46 : vector<8x128xf32>
    %cst_21 = arith.constant 1.000000e+00 : f32
    %48 = vector.broadcast %cst_21 : f32 to vector<8x128xf32>
    %49 = arith.addf %48, %47 : vector<8x128xf32>
    %50 = arith.divf %48, %49 : vector<8x128xf32>
    %51 = vector.extract_strided_slice %44 {offsets = [0, 128], sizes = [8, 128], strides = [1, 1]} : vector<8x512xf32> to vector<8x128xf32>
    %52 = arith.negf %51 : vector<8x128xf32>
    %53 = math.exp %52 : vector<8x128xf32>
    %cst_22 = arith.constant 1.000000e+00 : f32
    %54 = vector.broadcast %cst_22 : f32 to vector<8x128xf32>
    %55 = arith.addf %54, %53 : vector<8x128xf32>
    %56 = arith.divf %54, %55 : vector<8x128xf32>
    %57 = vector.extract_strided_slice %44 {offsets = [0, 256], sizes = [8, 128], strides = [1, 1]} : vector<8x512xf32> to vector<8x128xf32>
    %58 = math.tanh %57 : vector<8x128xf32>
    %59 = vector.extract_strided_slice %44 {offsets = [0, 384], sizes = [8, 128], strides = [1, 1]} : vector<8x512xf32> to vector<8x128xf32>
    %60 = arith.negf %59 : vector<8x128xf32>
    %61 = math.exp %60 : vector<8x128xf32>
    %cst_23 = arith.constant 1.000000e+00 : f32
    %62 = vector.broadcast %cst_23 : f32 to vector<8x128xf32>
    %63 = arith.addf %62, %61 : vector<8x128xf32>
    %64 = arith.divf %62, %63 : vector<8x128xf32>
    %65 = arith.mulf %56, %17 : vector<8x128xf32>
    %66 = arith.mulf %50, %58 : vector<8x128xf32>
    %67 = arith.addf %65, %66 : vector<8x128xf32>
    %68 = math.tanh %67 : vector<8x128xf32>
    %69 = arith.mulf %64, %68 : vector<8x128xf32>
    %c8_i32_24 = arith.constant 8 : i32
    %70 = arith.muli %c0_i32, %c8_i32_24 : i32
    %71 = arith.index_cast %70 : i32 to index
    %c0_25 = arith.constant 0 : index
    %72 = vector.load %arg9[%71, %c0_25] : memref<64x128xf32, #tpu.memory_space<vmem>>, vector<8x128xf32>
    tpu.vector_store %arg9[%71, %c0_25], %69 {strides = array<i32>} : memref<64x128xf32, #tpu.memory_space<vmem>>, vector<8x128xf32>,
    %c1_i32 = arith.constant 1 : i32
    %c8_i32_26 = arith.constant 8 : i32
    %73 = arith.muli %c1_i32, %c8_i32_26 : i32
    %74 = arith.index_cast %73 : i32 to index
    %c0_27 = arith.constant 0 : index
    %75 = vector.load %arg8[%74, %c0_27] : memref<64x128xf32, #tpu.memory_space<vmem>>, vector<8x128xf32>
    %76 = arith.truncf %39 : vector<8x32xf32> to vector<8x32xbf16>
    %c0_28 = arith.constant 0 : index
    %c0_29 = arith.constant 0 : index
    %77 = vector.load %arg2[%c0_28, %c0_29] : memref<32x128xbf16, #tpu.memory_space<vmem>>, vector<32x128xbf16>
    %cst_30 = arith.constant dense<0.000000e+00> : vector<8x128xf32>
    %78 = tpu.matmul %76, %77, %cst_30 {dimension_numbers = #tpu.dot_dimension_numbers<[1], [0], [0], [1], [0, 0, 1, 1], [], []>} : vector<8x32xbf16>, vector<32x128xbf16>, vector<8x128xf32> -> vector<8x128xf32>
    %79 = arith.addf %75, %78 : vector<8x128xf32>
    %80 = arith.negf %79 : vector<8x128xf32>
    %81 = math.exp %80 : vector<8x128xf32>
    %cst_31 = arith.constant 1.000000e+00 : f32
    %82 = vector.broadcast %cst_31 : f32 to vector<8x128xf32>
    %83 = arith.addf %82, %81 : vector<8x128xf32>
    %84 = arith.divf %82, %83 : vector<8x128xf32>
    %85 = math.tanh %79 : vector<8x128xf32>
    %86 = vector.extract_strided_slice %84 {offsets = [0, 0], sizes = [8, 32], strides = [1, 1]} : vector<8x128xf32> to vector<8x32xf32>
    %87 = vector.extract_strided_slice %84 {offsets = [0, 32], sizes = [8, 32], strides = [1, 1]} : vector<8x128xf32> to vector<8x32xf32>
    %88 = vector.extract_strided_slice %85 {offsets = [0, 64], sizes = [8, 32], strides = [1, 1]} : vector<8x128xf32> to vector<8x32xf32>
    %89 = vector.extract_strided_slice %84 {offsets = [0, 96], sizes = [8, 32], strides = [1, 1]} : vector<8x128xf32> to vector<8x32xf32>
    %90 = arith.mulf %87, %37 : vector<8x32xf32>
    %91 = arith.mulf %86, %88 : vector<8x32xf32>
    %92 = arith.addf %90, %91 : vector<8x32xf32>
    %93 = math.tanh %92 : vector<8x32xf32>
    %94 = arith.mulf %89, %93 : vector<8x32xf32>
    %95 = tpu.concatenate %69, %94 in 1 : vector<8x128xf32>, vector<8x32xf32> -> vector<8x160xf32>
    %96 = arith.truncf %95 : vector<8x160xf32> to vector<8x160xbf16>
    %c0_32 = arith.constant 0 : index
    %c0_33 = arith.constant 0 : index
    %97 = vector.load %arg3[%c0_32, %c0_33] : memref<160x512xbf16, #tpu.memory_space<vmem>>, vector<160x512xbf16>
    %cst_34 = arith.constant dense<0.000000e+00> : vector<8x512xf32>
    %98 = tpu.matmul %96, %97, %cst_34 {dimension_numbers = #tpu.dot_dimension_numbers<[1], [0], [0], [1], [0, 0, 1, 1], [], []>} : vector<8x160xbf16>, vector<160x512xbf16>, vector<8x512xf32> -> vector<8x512xf32>
    %99 = arith.addf %98, %13 : vector<8x512xf32>
    %100 = vector.extract_strided_slice %99 {offsets = [0, 0], sizes = [8, 128], strides = [1, 1]} : vector<8x512xf32> to vector<8x128xf32>
    %101 = arith.negf %100 : vector<8x128xf32>
    %102 = math.exp %101 : vector<8x128xf32>
    %cst_35 = arith.constant 1.000000e+00 : f32
    %103 = vector.broadcast %cst_35 : f32 to vector<8x128xf32>
    %104 = arith.addf %103, %102 : vector<8x128xf32>
    %105 = arith.divf %103, %104 : vector<8x128xf32>
    %106 = vector.extract_strided_slice %99 {offsets = [0, 128], sizes = [8, 128], strides = [1, 1]} : vector<8x512xf32> to vector<8x128xf32>
    %107 = arith.negf %106 : vector<8x128xf32>
    %108 = math.exp %107 : vector<8x128xf32>
    %cst_36 = arith.constant 1.000000e+00 : f32
    %109 = vector.broadcast %cst_36 : f32 to vector<8x128xf32>
    %110 = arith.addf %109, %108 : vector<8x128xf32>
    %111 = arith.divf %109, %110 : vector<8x128xf32>
    %112 = vector.extract_strided_slice %99 {offsets = [0, 256], sizes = [8, 128], strides = [1, 1]} : vector<8x512xf32> to vector<8x128xf32>
    %113 = math.tanh %112 : vector<8x128xf32>
    %114 = vector.extract_strided_slice %99 {offsets = [0, 384], sizes = [8, 128], strides = [1, 1]} : vector<8x512xf32> to vector<8x128xf32>
    %115 = arith.negf %114 : vector<8x128xf32>
    %116 = math.exp %115 : vector<8x128xf32>
    %cst_37 = arith.constant 1.000000e+00 : f32
    %117 = vector.broadcast %cst_37 : f32 to vector<8x128xf32>
    %118 = arith.addf %117, %116 : vector<8x128xf32>
    %119 = arith.divf %117, %118 : vector<8x128xf32>
    %120 = arith.mulf %111, %67 : vector<8x128xf32>
    %121 = arith.mulf %105, %113 : vector<8x128xf32>
    %122 = arith.addf %120, %121 : vector<8x128xf32>
    %123 = math.tanh %122 : vector<8x128xf32>
    %124 = arith.mulf %119, %123 : vector<8x128xf32>
    %c8_i32_38 = arith.constant 8 : i32
    %125 = arith.muli %c1_i32, %c8_i32_38 : i32
    %126 = arith.index_cast %125 : i32 to index
    %c0_39 = arith.constant 0 : index
    %127 = vector.load %arg9[%126, %c0_39] : memref<64x128xf32, #tpu.memory_space<vmem>>, vector<8x128xf32>
    tpu.vector_store %arg9[%126, %c0_39], %124 {strides = array<i32>} : memref<64x128xf32, #tpu.memory_space<vmem>>, vector<8x128xf32>,
    %c2_i32 = arith.constant 2 : i32
    %c8_i32_40 = arith.constant 8 : i32
    %128 = arith.muli %c2_i32, %c8_i32_40 : i32
    %129 = arith.index_cast %128 : i32 to index
    %c0_41 = arith.constant 0 : index
    %130 = vector.load %arg8[%129, %c0_41] : memref<64x128xf32, #tpu.memory_space<vmem>>, vector<8x128xf32>
    %131 = arith.truncf %94 : vector<8x32xf32> to vector<8x32xbf16>
    %c0_42 = arith.constant 0 : index
    %c0_43 = arith.constant 0 : index
    %132 = vector.load %arg2[%c0_42, %c0_43] : memref<32x128xbf16, #tpu.memory_space<vmem>>, vector<32x128xbf16>
    %cst_44 = arith.constant dense<0.000000e+00> : vector<8x128xf32>
    %133 = tpu.matmul %131, %132, %cst_44 {dimension_numbers = #tpu.dot_dimension_numbers<[1], [0], [0], [1], [0, 0, 1, 1], [], []>} : vector<8x32xbf16>, vector<32x128xbf16>, vector<8x128xf32> -> vector<8x128xf32>
    %134 = arith.addf %130, %133 : vector<8x128xf32>
    %135 = arith.negf %134 : vector<8x128xf32>
    %136 = math.exp %135 : vector<8x128xf32>
    %cst_45 = arith.constant 1.000000e+00 : f32
    %137 = vector.broadcast %cst_45 : f32 to vector<8x128xf32>
    %138 = arith.addf %137, %136 : vector<8x128xf32>
    %139 = arith.divf %137, %138 : vector<8x128xf32>
    %140 = math.tanh %134 : vector<8x128xf32>
    %141 = vector.extract_strided_slice %139 {offsets = [0, 0], sizes = [8, 32], strides = [1, 1]} : vector<8x128xf32> to vector<8x32xf32>
    %142 = vector.extract_strided_slice %139 {offsets = [0, 32], sizes = [8, 32], strides = [1, 1]} : vector<8x128xf32> to vector<8x32xf32>
    %143 = vector.extract_strided_slice %140 {offsets = [0, 64], sizes = [8, 32], strides = [1, 1]} : vector<8x128xf32> to vector<8x32xf32>
    %144 = vector.extract_strided_slice %139 {offsets = [0, 96], sizes = [8, 32], strides = [1, 1]} : vector<8x128xf32> to vector<8x32xf32>
    %145 = arith.mulf %142, %92 : vector<8x32xf32>
    %146 = arith.mulf %141, %143 : vector<8x32xf32>
    %147 = arith.addf %145, %146 : vector<8x32xf32>
    %148 = math.tanh %147 : vector<8x32xf32>
    %149 = arith.mulf %144, %148 : vector<8x32xf32>
    %150 = tpu.concatenate %124, %149 in 1 : vector<8x128xf32>, vector<8x32xf32> -> vector<8x160xf32>
    %151 = arith.truncf %150 : vector<8x160xf32> to vector<8x160xbf16>
    %c0_46 = arith.constant 0 : index
    %c0_47 = arith.constant 0 : index
    %152 = vector.load %arg3[%c0_46, %c0_47] : memref<160x512xbf16, #tpu.memory_space<vmem>>, vector<160x512xbf16>
    %cst_48 = arith.constant dense<0.000000e+00> : vector<8x512xf32>
    %153 = tpu.matmul %151, %152, %cst_48 {dimension_numbers = #tpu.dot_dimension_numbers<[1], [0], [0], [1], [0, 0, 1, 1], [], []>} : vector<8x160xbf16>, vector<160x512xbf16>, vector<8x512xf32> -> vector<8x512xf32>
    %154 = arith.addf %153, %13 : vector<8x512xf32>
    %155 = vector.extract_strided_slice %154 {offsets = [0, 0], sizes = [8, 128], strides = [1, 1]} : vector<8x512xf32> to vector<8x128xf32>
    %156 = arith.negf %155 : vector<8x128xf32>
    %157 = math.exp %156 : vector<8x128xf32>
    %cst_49 = arith.constant 1.000000e+00 : f32
    %158 = vector.broadcast %cst_49 : f32 to vector<8x128xf32>
    %159 = arith.addf %158, %157 : vector<8x128xf32>
    %160 = arith.divf %158, %159 : vector<8x128xf32>
    %161 = vector.extract_strided_slice %154 {offsets = [0, 128], sizes = [8, 128], strides = [1, 1]} : vector<8x512xf32> to vector<8x128xf32>
    %162 = arith.negf %161 : vector<8x128xf32>
    %163 = math.exp %162 : vector<8x128xf32>
    %cst_50 = arith.constant 1.000000e+00 : f32
    %164 = vector.broadcast %cst_50 : f32 to vector<8x128xf32>
    %165 = arith.addf %164, %163 : vector<8x128xf32>
    %166 = arith.divf %164, %165 : vector<8x128xf32>
    %167 = vector.extract_strided_slice %154 {offsets = [0, 256], sizes = [8, 128], strides = [1, 1]} : vector<8x512xf32> to vector<8x128xf32>
    %168 = math.tanh %167 : vector<8x128xf32>
    %169 = vector.extract_strided_slice %154 {offsets = [0, 384], sizes = [8, 128], strides = [1, 1]} : vector<8x512xf32> to vector<8x128xf32>
    %170 = arith.negf %169 : vector<8x128xf32>
    %171 = math.exp %170 : vector<8x128xf32>
    %cst_51 = arith.constant 1.000000e+00 : f32
    %172 = vector.broadcast %cst_51 : f32 to vector<8x128xf32>
    %173 = arith.addf %172, %171 : vector<8x128xf32>
    %174 = arith.divf %172, %173 : vector<8x128xf32>
    %175 = arith.mulf %166, %122 : vector<8x128xf32>
    %176 = arith.mulf %160, %168 : vector<8x128xf32>
    %177 = arith.addf %175, %176 : vector<8x128xf32>
    %178 = math.tanh %177 : vector<8x128xf32>
    %179 = arith.mulf %174, %178 : vector<8x128xf32>
    %c8_i32_52 = arith.constant 8 : i32
    %180 = arith.muli %c2_i32, %c8_i32_52 : i32
    %181 = arith.index_cast %180 : i32 to index
    %c0_53 = arith.constant 0 : index
    %182 = vector.load %arg9[%181, %c0_53] : memref<64x128xf32, #tpu.memory_space<vmem>>, vector<8x128xf32>
    tpu.vector_store %arg9[%181, %c0_53], %179 {strides = array<i32>} : memref<64x128xf32, #tpu.memory_space<vmem>>, vector<8x128xf32>,
    %c3_i32 = arith.constant 3 : i32
    %c8_i32_54 = arith.constant 8 : i32
    %183 = arith.muli %c3_i32, %c8_i32_54 : i32
    %184 = arith.index_cast %183 : i32 to index
    %c0_55 = arith.constant 0 : index
    %185 = vector.load %arg8[%184, %c0_55] : memref<64x128xf32, #tpu.memory_space<vmem>>, vector<8x128xf32>
    %186 = arith.truncf %149 : vector<8x32xf32> to vector<8x32xbf16>
    %c0_56 = arith.constant 0 : index
    %c0_57 = arith.constant 0 : index
    %187 = vector.load %arg2[%c0_56, %c0_57] : memref<32x128xbf16, #tpu.memory_space<vmem>>, vector<32x128xbf16>
    %cst_58 = arith.constant dense<0.000000e+00> : vector<8x128xf32>
    %188 = tpu.matmul %186, %187, %cst_58 {dimension_numbers = #tpu.dot_dimension_numbers<[1], [0], [0], [1], [0, 0, 1, 1], [], []>} : vector<8x32xbf16>, vector<32x128xbf16>, vector<8x128xf32> -> vector<8x128xf32>
    %189 = arith.addf %185, %188 : vector<8x128xf32>
    %190 = arith.negf %189 : vector<8x128xf32>
    %191 = math.exp %190 : vector<8x128xf32>
    %cst_59 = arith.constant 1.000000e+00 : f32
    %192 = vector.broadcast %cst_59 : f32 to vector<8x128xf32>
    %193 = arith.addf %192, %191 : vector<8x128xf32>
    %194 = arith.divf %192, %193 : vector<8x128xf32>
    %195 = math.tanh %189 : vector<8x128xf32>
    %196 = vector.extract_strided_slice %194 {offsets = [0, 0], sizes = [8, 32], strides = [1, 1]} : vector<8x128xf32> to vector<8x32xf32>
    %197 = vector.extract_strided_slice %194 {offsets = [0, 32], sizes = [8, 32], strides = [1, 1]} : vector<8x128xf32> to vector<8x32xf32>
    %198 = vector.extract_strided_slice %195 {offsets = [0, 64], sizes = [8, 32], strides = [1, 1]} : vector<8x128xf32> to vector<8x32xf32>
    %199 = vector.extract_strided_slice %194 {offsets = [0, 96], sizes = [8, 32], strides = [1, 1]} : vector<8x128xf32> to vector<8x32xf32>
    %200 = arith.mulf %197, %147 : vector<8x32xf32>
    %201 = arith.mulf %196, %198 : vector<8x32xf32>
    %202 = arith.addf %200, %201 : vector<8x32xf32>
    %203 = math.tanh %202 : vector<8x32xf32>
    %204 = arith.mulf %199, %203 : vector<8x32xf32>
    %205 = tpu.concatenate %179, %204 in 1 : vector<8x128xf32>, vector<8x32xf32> -> vector<8x160xf32>
    %206 = arith.truncf %205 : vector<8x160xf32> to vector<8x160xbf16>
    %c0_60 = arith.constant 0 : index
    %c0_61 = arith.constant 0 : index
    %207 = vector.load %arg3[%c0_60, %c0_61] : memref<160x512xbf16, #tpu.memory_space<vmem>>, vector<160x512xbf16>
    %cst_62 = arith.constant dense<0.000000e+00> : vector<8x512xf32>
    %208 = tpu.matmul %206, %207, %cst_62 {dimension_numbers = #tpu.dot_dimension_numbers<[1], [0], [0], [1], [0, 0, 1, 1], [], []>} : vector<8x160xbf16>, vector<160x512xbf16>, vector<8x512xf32> -> vector<8x512xf32>
    %209 = arith.addf %208, %13 : vector<8x512xf32>
    %210 = vector.extract_strided_slice %209 {offsets = [0, 0], sizes = [8, 128], strides = [1, 1]} : vector<8x512xf32> to vector<8x128xf32>
    %211 = arith.negf %210 : vector<8x128xf32>
    %212 = math.exp %211 : vector<8x128xf32>
    %cst_63 = arith.constant 1.000000e+00 : f32
    %213 = vector.broadcast %cst_63 : f32 to vector<8x128xf32>
    %214 = arith.addf %213, %212 : vector<8x128xf32>
    %215 = arith.divf %213, %214 : vector<8x128xf32>
    %216 = vector.extract_strided_slice %209 {offsets = [0, 128], sizes = [8, 128], strides = [1, 1]} : vector<8x512xf32> to vector<8x128xf32>
    %217 = arith.negf %216 : vector<8x128xf32>
    %218 = math.exp %217 : vector<8x128xf32>
    %cst_64 = arith.constant 1.000000e+00 : f32
    %219 = vector.broadcast %cst_64 : f32 to vector<8x128xf32>
    %220 = arith.addf %219, %218 : vector<8x128xf32>
    %221 = arith.divf %219, %220 : vector<8x128xf32>
    %222 = vector.extract_strided_slice %209 {offsets = [0, 256], sizes = [8, 128], strides = [1, 1]} : vector<8x512xf32> to vector<8x128xf32>
    %223 = math.tanh %222 : vector<8x128xf32>
    %224 = vector.extract_strided_slice %209 {offsets = [0, 384], sizes = [8, 128], strides = [1, 1]} : vector<8x512xf32> to vector<8x128xf32>
    %225 = arith.negf %224 : vector<8x128xf32>
    %226 = math.exp %225 : vector<8x128xf32>
    %cst_65 = arith.constant 1.000000e+00 : f32
    %227 = vector.broadcast %cst_65 : f32 to vector<8x128xf32>
    %228 = arith.addf %227, %226 : vector<8x128xf32>
    %229 = arith.divf %227, %228 : vector<8x128xf32>
    %230 = arith.mulf %221, %177 : vector<8x128xf32>
    %231 = arith.mulf %215, %223 : vector<8x128xf32>
    %232 = arith.addf %230, %231 : vector<8x128xf32>
    %233 = math.tanh %232 : vector<8x128xf32>
    %234 = arith.mulf %229, %233 : vector<8x128xf32>
    %c8_i32_66 = arith.constant 8 : i32
    %235 = arith.muli %c3_i32, %c8_i32_66 : i32
    %236 = arith.index_cast %235 : i32 to index
    %c0_67 = arith.constant 0 : index
    %237 = vector.load %arg9[%236, %c0_67] : memref<64x128xf32, #tpu.memory_space<vmem>>, vector<8x128xf32>
    tpu.vector_store %arg9[%236, %c0_67], %234 {strides = array<i32>} : memref<64x128xf32, #tpu.memory_space<vmem>>, vector<8x128xf32>,
    %c4_i32 = arith.constant 4 : i32
    %c8_i32_68 = arith.constant 8 : i32
    %238 = arith.muli %c4_i32, %c8_i32_68 : i32
    %239 = arith.index_cast %238 : i32 to index
    %c0_69 = arith.constant 0 : index
    %240 = vector.load %arg8[%239, %c0_69] : memref<64x128xf32, #tpu.memory_space<vmem>>, vector<8x128xf32>
    %241 = arith.truncf %204 : vector<8x32xf32> to vector<8x32xbf16>
    %c0_70 = arith.constant 0 : index
    %c0_71 = arith.constant 0 : index
    %242 = vector.load %arg2[%c0_70, %c0_71] : memref<32x128xbf16, #tpu.memory_space<vmem>>, vector<32x128xbf16>
    %cst_72 = arith.constant dense<0.000000e+00> : vector<8x128xf32>
    %243 = tpu.matmul %241, %242, %cst_72 {dimension_numbers = #tpu.dot_dimension_numbers<[1], [0], [0], [1], [0, 0, 1, 1], [], []>} : vector<8x32xbf16>, vector<32x128xbf16>, vector<8x128xf32> -> vector<8x128xf32>
    %244 = arith.addf %240, %243 : vector<8x128xf32>
    %245 = arith.negf %244 : vector<8x128xf32>
    %246 = math.exp %245 : vector<8x128xf32>
    %cst_73 = arith.constant 1.000000e+00 : f32
    %247 = vector.broadcast %cst_73 : f32 to vector<8x128xf32>
    %248 = arith.addf %247, %246 : vector<8x128xf32>
    %249 = arith.divf %247, %248 : vector<8x128xf32>
    %250 = math.tanh %244 : vector<8x128xf32>
    %251 = vector.extract_strided_slice %249 {offsets = [0, 0], sizes = [8, 32], strides = [1, 1]} : vector<8x128xf32> to vector<8x32xf32>
    %252 = vector.extract_strided_slice %249 {offsets = [0, 32], sizes = [8, 32], strides = [1, 1]} : vector<8x128xf32> to vector<8x32xf32>
    %253 = vector.extract_strided_slice %250 {offsets = [0, 64], sizes = [8, 32], strides = [1, 1]} : vector<8x128xf32> to vector<8x32xf32>
    %254 = vector.extract_strided_slice %249 {offsets = [0, 96], sizes = [8, 32], strides = [1, 1]} : vector<8x128xf32> to vector<8x32xf32>
    %255 = arith.mulf %252, %202 : vector<8x32xf32>
    %256 = arith.mulf %251, %253 : vector<8x32xf32>
    %257 = arith.addf %255, %256 : vector<8x32xf32>
    %258 = math.tanh %257 : vector<8x32xf32>
    %259 = arith.mulf %254, %258 : vector<8x32xf32>
    %260 = tpu.concatenate %234, %259 in 1 : vector<8x128xf32>, vector<8x32xf32> -> vector<8x160xf32>
    %261 = arith.truncf %260 : vector<8x160xf32> to vector<8x160xbf16>
    %c0_74 = arith.constant 0 : index
    %c0_75 = arith.constant 0 : index
    %262 = vector.load %arg3[%c0_74, %c0_75] : memref<160x512xbf16, #tpu.memory_space<vmem>>, vector<160x512xbf16>
    %cst_76 = arith.constant dense<0.000000e+00> : vector<8x512xf32>
    %263 = tpu.matmul %261, %262, %cst_76 {dimension_numbers = #tpu.dot_dimension_numbers<[1], [0], [0], [1], [0, 0, 1, 1], [], []>} : vector<8x160xbf16>, vector<160x512xbf16>, vector<8x512xf32> -> vector<8x512xf32>
    %264 = arith.addf %263, %13 : vector<8x512xf32>
    %265 = vector.extract_strided_slice %264 {offsets = [0, 0], sizes = [8, 128], strides = [1, 1]} : vector<8x512xf32> to vector<8x128xf32>
    %266 = arith.negf %265 : vector<8x128xf32>
    %267 = math.exp %266 : vector<8x128xf32>
    %cst_77 = arith.constant 1.000000e+00 : f32
    %268 = vector.broadcast %cst_77 : f32 to vector<8x128xf32>
    %269 = arith.addf %268, %267 : vector<8x128xf32>
    %270 = arith.divf %268, %269 : vector<8x128xf32>
    %271 = vector.extract_strided_slice %264 {offsets = [0, 128], sizes = [8, 128], strides = [1, 1]} : vector<8x512xf32> to vector<8x128xf32>
    %272 = arith.negf %271 : vector<8x128xf32>
    %273 = math.exp %272 : vector<8x128xf32>
    %cst_78 = arith.constant 1.000000e+00 : f32
    %274 = vector.broadcast %cst_78 : f32 to vector<8x128xf32>
    %275 = arith.addf %274, %273 : vector<8x128xf32>
    %276 = arith.divf %274, %275 : vector<8x128xf32>
    %277 = vector.extract_strided_slice %264 {offsets = [0, 256], sizes = [8, 128], strides = [1, 1]} : vector<8x512xf32> to vector<8x128xf32>
    %278 = math.tanh %277 : vector<8x128xf32>
    %279 = vector.extract_strided_slice %264 {offsets = [0, 384], sizes = [8, 128], strides = [1, 1]} : vector<8x512xf32> to vector<8x128xf32>
    %280 = arith.negf %279 : vector<8x128xf32>
    %281 = math.exp %280 : vector<8x128xf32>
    %cst_79 = arith.constant 1.000000e+00 : f32
    %282 = vector.broadcast %cst_79 : f32 to vector<8x128xf32>
    %283 = arith.addf %282, %281 : vector<8x128xf32>
    %284 = arith.divf %282, %283 : vector<8x128xf32>
    %285 = arith.mulf %276, %232 : vector<8x128xf32>
    %286 = arith.mulf %270, %278 : vector<8x128xf32>
    %287 = arith.addf %285, %286 : vector<8x128xf32>
    %288 = math.tanh %287 : vector<8x128xf32>
    %289 = arith.mulf %284, %288 : vector<8x128xf32>
    %c8_i32_80 = arith.constant 8 : i32
    %290 = arith.muli %c4_i32, %c8_i32_80 : i32
    %291 = arith.index_cast %290 : i32 to index
    %c0_81 = arith.constant 0 : index
    %292 = vector.load %arg9[%291, %c0_81] : memref<64x128xf32, #tpu.memory_space<vmem>>, vector<8x128xf32>
    tpu.vector_store %arg9[%291, %c0_81], %289 {strides = array<i32>} : memref<64x128xf32, #tpu.memory_space<vmem>>, vector<8x128xf32>,
    %c5_i32 = arith.constant 5 : i32
    %c8_i32_82 = arith.constant 8 : i32
    %293 = arith.muli %c5_i32, %c8_i32_82 : i32
    %294 = arith.index_cast %293 : i32 to index
    %c0_83 = arith.constant 0 : index
    %295 = vector.load %arg8[%294, %c0_83] : memref<64x128xf32, #tpu.memory_space<vmem>>, vector<8x128xf32>
    %296 = arith.truncf %259 : vector<8x32xf32> to vector<8x32xbf16>
    %c0_84 = arith.constant 0 : index
    %c0_85 = arith.constant 0 : index
    %297 = vector.load %arg2[%c0_84, %c0_85] : memref<32x128xbf16, #tpu.memory_space<vmem>>, vector<32x128xbf16>
    %cst_86 = arith.constant dense<0.000000e+00> : vector<8x128xf32>
    %298 = tpu.matmul %296, %297, %cst_86 {dimension_numbers = #tpu.dot_dimension_numbers<[1], [0], [0], [1], [0, 0, 1, 1], [], []>} : vector<8x32xbf16>, vector<32x128xbf16>, vector<8x128xf32> -> vector<8x128xf32>
    %299 = arith.addf %295, %298 : vector<8x128xf32>
    %300 = arith.negf %299 : vector<8x128xf32>
    %301 = math.exp %300 : vector<8x128xf32>
    %cst_87 = arith.constant 1.000000e+00 : f32
    %302 = vector.broadcast %cst_87 : f32 to vector<8x128xf32>
    %303 = arith.addf %302, %301 : vector<8x128xf32>
    %304 = arith.divf %302, %303 : vector<8x128xf32>
    %305 = math.tanh %299 : vector<8x128xf32>
    %306 = vector.extract_strided_slice %304 {offsets = [0, 0], sizes = [8, 32], strides = [1, 1]} : vector<8x128xf32> to vector<8x32xf32>
    %307 = vector.extract_strided_slice %304 {offsets = [0, 32], sizes = [8, 32], strides = [1, 1]} : vector<8x128xf32> to vector<8x32xf32>
    %308 = vector.extract_strided_slice %305 {offsets = [0, 64], sizes = [8, 32], strides = [1, 1]} : vector<8x128xf32> to vector<8x32xf32>
    %309 = vector.extract_strided_slice %304 {offsets = [0, 96], sizes = [8, 32], strides = [1, 1]} : vector<8x128xf32> to vector<8x32xf32>
    %310 = arith.mulf %307, %257 : vector<8x32xf32>
    %311 = arith.mulf %306, %308 : vector<8x32xf32>
    %312 = arith.addf %310, %311 : vector<8x32xf32>
    %313 = math.tanh %312 : vector<8x32xf32>
    %314 = arith.mulf %309, %313 : vector<8x32xf32>
    %315 = tpu.concatenate %289, %314 in 1 : vector<8x128xf32>, vector<8x32xf32> -> vector<8x160xf32>
    %316 = arith.truncf %315 : vector<8x160xf32> to vector<8x160xbf16>
    %c0_88 = arith.constant 0 : index
    %c0_89 = arith.constant 0 : index
    %317 = vector.load %arg3[%c0_88, %c0_89] : memref<160x512xbf16, #tpu.memory_space<vmem>>, vector<160x512xbf16>
    %cst_90 = arith.constant dense<0.000000e+00> : vector<8x512xf32>
    %318 = tpu.matmul %316, %317, %cst_90 {dimension_numbers = #tpu.dot_dimension_numbers<[1], [0], [0], [1], [0, 0, 1, 1], [], []>} : vector<8x160xbf16>, vector<160x512xbf16>, vector<8x512xf32> -> vector<8x512xf32>
    %319 = arith.addf %318, %13 : vector<8x512xf32>
    %320 = vector.extract_strided_slice %319 {offsets = [0, 0], sizes = [8, 128], strides = [1, 1]} : vector<8x512xf32> to vector<8x128xf32>
    %321 = arith.negf %320 : vector<8x128xf32>
    %322 = math.exp %321 : vector<8x128xf32>
    %cst_91 = arith.constant 1.000000e+00 : f32
    %323 = vector.broadcast %cst_91 : f32 to vector<8x128xf32>
    %324 = arith.addf %323, %322 : vector<8x128xf32>
    %325 = arith.divf %323, %324 : vector<8x128xf32>
    %326 = vector.extract_strided_slice %319 {offsets = [0, 128], sizes = [8, 128], strides = [1, 1]} : vector<8x512xf32> to vector<8x128xf32>
    %327 = arith.negf %326 : vector<8x128xf32>
    %328 = math.exp %327 : vector<8x128xf32>
    %cst_92 = arith.constant 1.000000e+00 : f32
    %329 = vector.broadcast %cst_92 : f32 to vector<8x128xf32>
    %330 = arith.addf %329, %328 : vector<8x128xf32>
    %331 = arith.divf %329, %330 : vector<8x128xf32>
    %332 = vector.extract_strided_slice %319 {offsets = [0, 256], sizes = [8, 128], strides = [1, 1]} : vector<8x512xf32> to vector<8x128xf32>
    %333 = math.tanh %332 : vector<8x128xf32>
    %334 = vector.extract_strided_slice %319 {offsets = [0, 384], sizes = [8, 128], strides = [1, 1]} : vector<8x512xf32> to vector<8x128xf32>
    %335 = arith.negf %334 : vector<8x128xf32>
    %336 = math.exp %335 : vector<8x128xf32>
    %cst_93 = arith.constant 1.000000e+00 : f32
    %337 = vector.broadcast %cst_93 : f32 to vector<8x128xf32>
    %338 = arith.addf %337, %336 : vector<8x128xf32>
    %339 = arith.divf %337, %338 : vector<8x128xf32>
    %340 = arith.mulf %331, %287 : vector<8x128xf32>
    %341 = arith.mulf %325, %333 : vector<8x128xf32>
    %342 = arith.addf %340, %341 : vector<8x128xf32>
    %343 = math.tanh %342 : vector<8x128xf32>
    %344 = arith.mulf %339, %343 : vector<8x128xf32>
    %c8_i32_94 = arith.constant 8 : i32
    %345 = arith.muli %c5_i32, %c8_i32_94 : i32
    %346 = arith.index_cast %345 : i32 to index
    %c0_95 = arith.constant 0 : index
    %347 = vector.load %arg9[%346, %c0_95] : memref<64x128xf32, #tpu.memory_space<vmem>>, vector<8x128xf32>
    tpu.vector_store %arg9[%346, %c0_95], %344 {strides = array<i32>} : memref<64x128xf32, #tpu.memory_space<vmem>>, vector<8x128xf32>,
    %c6_i32 = arith.constant 6 : i32
    %c8_i32_96 = arith.constant 8 : i32
    %348 = arith.muli %c6_i32, %c8_i32_96 : i32
    %349 = arith.index_cast %348 : i32 to index
    %c0_97 = arith.constant 0 : index
    %350 = vector.load %arg8[%349, %c0_97] : memref<64x128xf32, #tpu.memory_space<vmem>>, vector<8x128xf32>
    %351 = arith.truncf %314 : vector<8x32xf32> to vector<8x32xbf16>
    %c0_98 = arith.constant 0 : index
    %c0_99 = arith.constant 0 : index
    %352 = vector.load %arg2[%c0_98, %c0_99] : memref<32x128xbf16, #tpu.memory_space<vmem>>, vector<32x128xbf16>
    %cst_100 = arith.constant dense<0.000000e+00> : vector<8x128xf32>
    %353 = tpu.matmul %351, %352, %cst_100 {dimension_numbers = #tpu.dot_dimension_numbers<[1], [0], [0], [1], [0, 0, 1, 1], [], []>} : vector<8x32xbf16>, vector<32x128xbf16>, vector<8x128xf32> -> vector<8x128xf32>
    %354 = arith.addf %350, %353 : vector<8x128xf32>
    %355 = arith.negf %354 : vector<8x128xf32>
    %356 = math.exp %355 : vector<8x128xf32>
    %cst_101 = arith.constant 1.000000e+00 : f32
    %357 = vector.broadcast %cst_101 : f32 to vector<8x128xf32>
    %358 = arith.addf %357, %356 : vector<8x128xf32>
    %359 = arith.divf %357, %358 : vector<8x128xf32>
    %360 = math.tanh %354 : vector<8x128xf32>
    %361 = vector.extract_strided_slice %359 {offsets = [0, 0], sizes = [8, 32], strides = [1, 1]} : vector<8x128xf32> to vector<8x32xf32>
    %362 = vector.extract_strided_slice %359 {offsets = [0, 32], sizes = [8, 32], strides = [1, 1]} : vector<8x128xf32> to vector<8x32xf32>
    %363 = vector.extract_strided_slice %360 {offsets = [0, 64], sizes = [8, 32], strides = [1, 1]} : vector<8x128xf32> to vector<8x32xf32>
    %364 = vector.extract_strided_slice %359 {offsets = [0, 96], sizes = [8, 32], strides = [1, 1]} : vector<8x128xf32> to vector<8x32xf32>
    %365 = arith.mulf %362, %312 : vector<8x32xf32>
    %366 = arith.mulf %361, %363 : vector<8x32xf32>
    %367 = arith.addf %365, %366 : vector<8x32xf32>
    %368 = math.tanh %367 : vector<8x32xf32>
    %369 = arith.mulf %364, %368 : vector<8x32xf32>
    %370 = tpu.concatenate %344, %369 in 1 : vector<8x128xf32>, vector<8x32xf32> -> vector<8x160xf32>
    %371 = arith.truncf %370 : vector<8x160xf32> to vector<8x160xbf16>
    %c0_102 = arith.constant 0 : index
    %c0_103 = arith.constant 0 : index
    %372 = vector.load %arg3[%c0_102, %c0_103] : memref<160x512xbf16, #tpu.memory_space<vmem>>, vector<160x512xbf16>
    %cst_104 = arith.constant dense<0.000000e+00> : vector<8x512xf32>
    %373 = tpu.matmul %371, %372, %cst_104 {dimension_numbers = #tpu.dot_dimension_numbers<[1], [0], [0], [1], [0, 0, 1, 1], [], []>} : vector<8x160xbf16>, vector<160x512xbf16>, vector<8x512xf32> -> vector<8x512xf32>
    %374 = arith.addf %373, %13 : vector<8x512xf32>
    %375 = vector.extract_strided_slice %374 {offsets = [0, 0], sizes = [8, 128], strides = [1, 1]} : vector<8x512xf32> to vector<8x128xf32>
    %376 = arith.negf %375 : vector<8x128xf32>
    %377 = math.exp %376 : vector<8x128xf32>
    %cst_105 = arith.constant 1.000000e+00 : f32
    %378 = vector.broadcast %cst_105 : f32 to vector<8x128xf32>
    %379 = arith.addf %378, %377 : vector<8x128xf32>
    %380 = arith.divf %378, %379 : vector<8x128xf32>
    %381 = vector.extract_strided_slice %374 {offsets = [0, 128], sizes = [8, 128], strides = [1, 1]} : vector<8x512xf32> to vector<8x128xf32>
    %382 = arith.negf %381 : vector<8x128xf32>
    %383 = math.exp %382 : vector<8x128xf32>
    %cst_106 = arith.constant 1.000000e+00 : f32
    %384 = vector.broadcast %cst_106 : f32 to vector<8x128xf32>
    %385 = arith.addf %384, %383 : vector<8x128xf32>
    %386 = arith.divf %384, %385 : vector<8x128xf32>
    %387 = vector.extract_strided_slice %374 {offsets = [0, 256], sizes = [8, 128], strides = [1, 1]} : vector<8x512xf32> to vector<8x128xf32>
    %388 = math.tanh %387 : vector<8x128xf32>
    %389 = vector.extract_strided_slice %374 {offsets = [0, 384], sizes = [8, 128], strides = [1, 1]} : vector<8x512xf32> to vector<8x128xf32>
    %390 = arith.negf %389 : vector<8x128xf32>
    %391 = math.exp %390 : vector<8x128xf32>
    %cst_107 = arith.constant 1.000000e+00 : f32
    %392 = vector.broadcast %cst_107 : f32 to vector<8x128xf32>
    %393 = arith.addf %392, %391 : vector<8x128xf32>
    %394 = arith.divf %392, %393 : vector<8x128xf32>
    %395 = arith.mulf %386, %342 : vector<8x128xf32>
    %396 = arith.mulf %380, %388 : vector<8x128xf32>
    %397 = arith.addf %395, %396 : vector<8x128xf32>
    %398 = math.tanh %397 : vector<8x128xf32>
    %399 = arith.mulf %394, %398 : vector<8x128xf32>
    %c8_i32_108 = arith.constant 8 : i32
    %400 = arith.muli %c6_i32, %c8_i32_108 : i32
    %401 = arith.index_cast %400 : i32 to index
    %c0_109 = arith.constant 0 : index
    %402 = vector.load %arg9[%401, %c0_109] : memref<64x128xf32, #tpu.memory_space<vmem>>, vector<8x128xf32>
    tpu.vector_store %arg9[%401, %c0_109], %399 {strides = array<i32>} : memref<64x128xf32, #tpu.memory_space<vmem>>, vector<8x128xf32>,
    %c7_i32 = arith.constant 7 : i32
    %c8_i32_110 = arith.constant 8 : i32
    %403 = arith.muli %c7_i32, %c8_i32_110 : i32
    %404 = arith.index_cast %403 : i32 to index
    %c0_111 = arith.constant 0 : index
    %405 = vector.load %arg8[%404, %c0_111] : memref<64x128xf32, #tpu.memory_space<vmem>>, vector<8x128xf32>
    %406 = arith.truncf %369 : vector<8x32xf32> to vector<8x32xbf16>
    %c0_112 = arith.constant 0 : index
    %c0_113 = arith.constant 0 : index
    %407 = vector.load %arg2[%c0_112, %c0_113] : memref<32x128xbf16, #tpu.memory_space<vmem>>, vector<32x128xbf16>
    %cst_114 = arith.constant dense<0.000000e+00> : vector<8x128xf32>
    %408 = tpu.matmul %406, %407, %cst_114 {dimension_numbers = #tpu.dot_dimension_numbers<[1], [0], [0], [1], [0, 0, 1, 1], [], []>} : vector<8x32xbf16>, vector<32x128xbf16>, vector<8x128xf32> -> vector<8x128xf32>
    %409 = arith.addf %405, %408 : vector<8x128xf32>
    %410 = arith.negf %409 : vector<8x128xf32>
    %411 = math.exp %410 : vector<8x128xf32>
    %cst_115 = arith.constant 1.000000e+00 : f32
    %412 = vector.broadcast %cst_115 : f32 to vector<8x128xf32>
    %413 = arith.addf %412, %411 : vector<8x128xf32>
    %414 = arith.divf %412, %413 : vector<8x128xf32>
    %415 = math.tanh %409 : vector<8x128xf32>
    %416 = vector.extract_strided_slice %414 {offsets = [0, 0], sizes = [8, 32], strides = [1, 1]} : vector<8x128xf32> to vector<8x32xf32>
    %417 = vector.extract_strided_slice %414 {offsets = [0, 32], sizes = [8, 32], strides = [1, 1]} : vector<8x128xf32> to vector<8x32xf32>
    %418 = vector.extract_strided_slice %415 {offsets = [0, 64], sizes = [8, 32], strides = [1, 1]} : vector<8x128xf32> to vector<8x32xf32>
    %419 = vector.extract_strided_slice %414 {offsets = [0, 96], sizes = [8, 32], strides = [1, 1]} : vector<8x128xf32> to vector<8x32xf32>
    %420 = arith.mulf %417, %367 : vector<8x32xf32>
    %421 = arith.mulf %416, %418 : vector<8x32xf32>
    %422 = arith.addf %420, %421 : vector<8x32xf32>
    %423 = math.tanh %422 : vector<8x32xf32>
    %424 = arith.mulf %419, %423 : vector<8x32xf32>
    %425 = tpu.concatenate %399, %424 in 1 : vector<8x128xf32>, vector<8x32xf32> -> vector<8x160xf32>
    %426 = arith.truncf %425 : vector<8x160xf32> to vector<8x160xbf16>
    %c0_116 = arith.constant 0 : index
    %c0_117 = arith.constant 0 : index
    %427 = vector.load %arg3[%c0_116, %c0_117] : memref<160x512xbf16, #tpu.memory_space<vmem>>, vector<160x512xbf16>
    %cst_118 = arith.constant dense<0.000000e+00> : vector<8x512xf32>
    %428 = tpu.matmul %426, %427, %cst_118 {dimension_numbers = #tpu.dot_dimension_numbers<[1], [0], [0], [1], [0, 0, 1, 1], [], []>} : vector<8x160xbf16>, vector<160x512xbf16>, vector<8x512xf32> -> vector<8x512xf32>
    %429 = arith.addf %428, %13 : vector<8x512xf32>
    %430 = vector.extract_strided_slice %429 {offsets = [0, 0], sizes = [8, 128], strides = [1, 1]} : vector<8x512xf32> to vector<8x128xf32>
    %431 = arith.negf %430 : vector<8x128xf32>
    %432 = math.exp %431 : vector<8x128xf32>
    %cst_119 = arith.constant 1.000000e+00 : f32
    %433 = vector.broadcast %cst_119 : f32 to vector<8x128xf32>
    %434 = arith.addf %433, %432 : vector<8x128xf32>
    %435 = arith.divf %433, %434 : vector<8x128xf32>
    %436 = vector.extract_strided_slice %429 {offsets = [0, 128], sizes = [8, 128], strides = [1, 1]} : vector<8x512xf32> to vector<8x128xf32>
    %437 = arith.negf %436 : vector<8x128xf32>
    %438 = math.exp %437 : vector<8x128xf32>
    %cst_120 = arith.constant 1.000000e+00 : f32
    %439 = vector.broadcast %cst_120 : f32 to vector<8x128xf32>
    %440 = arith.addf %439, %438 : vector<8x128xf32>
    %441 = arith.divf %439, %440 : vector<8x128xf32>
    %442 = vector.extract_strided_slice %429 {offsets = [0, 256], sizes = [8, 128], strides = [1, 1]} : vector<8x512xf32> to vector<8x128xf32>
    %443 = math.tanh %442 : vector<8x128xf32>
    %444 = vector.extract_strided_slice %429 {offsets = [0, 384], sizes = [8, 128], strides = [1, 1]} : vector<8x512xf32> to vector<8x128xf32>
    %445 = arith.negf %444 : vector<8x128xf32>
    %446 = math.exp %445 : vector<8x128xf32>
    %cst_121 = arith.constant 1.000000e+00 : f32
    %447 = vector.broadcast %cst_121 : f32 to vector<8x128xf32>
    %448 = arith.addf %447, %446 : vector<8x128xf32>
    %449 = arith.divf %447, %448 : vector<8x128xf32>
    %450 = arith.mulf %441, %397 : vector<8x128xf32>
    %451 = arith.mulf %435, %443 : vector<8x128xf32>
    %452 = arith.addf %450, %451 : vector<8x128xf32>
    %453 = math.tanh %452 : vector<8x128xf32>
    %454 = arith.mulf %449, %453 : vector<8x128xf32>
    %c8_i32_122 = arith.constant 8 : i32
    %455 = arith.muli %c7_i32, %c8_i32_122 : i32
    %456 = arith.index_cast %455 : i32 to index
    %c0_123 = arith.constant 0 : index
    %457 = vector.load %arg9[%456, %c0_123] : memref<64x128xf32, #tpu.memory_space<vmem>>, vector<8x128xf32>
    tpu.vector_store %arg9[%456, %c0_123], %454 {strides = array<i32>} : memref<64x128xf32, #tpu.memory_space<vmem>>, vector<8x128xf32>,
    %c8_i32_124 = arith.constant 8 : i32
    %c0_125 = arith.constant 0 : index
    %c0_126 = arith.constant 0 : index
    %458 = vector.load %arg9[%c0_125, %c0_126] : memref<64x128xf32, #tpu.memory_space<vmem>>, vector<64x128xf32>
    %459 = arith.truncf %458 : vector<64x128xf32> to vector<64x128xbf16>
    %c0_127 = arith.constant 0 : index
    %c0_128 = arith.constant 0 : index
    %460 = vector.load %arg5[%c0_127, %c0_128] : memref<128x128xbf16, #tpu.memory_space<vmem>>, vector<128x128xbf16>
    %cst_129 = arith.constant dense<0.000000e+00> : vector<64x128xf32>
    %461 = tpu.matmul %459, %460, %cst_129 {dimension_numbers = #tpu.dot_dimension_numbers<[1], [0], [0], [1], [0, 0, 1, 1], [], []>} : vector<64x128xbf16>, vector<128x128xbf16>, vector<64x128xf32> -> vector<64x128xf32>
    %c0_130 = arith.constant 0 : index
    %c0_131 = arith.constant 0 : index
    %462 = vector.load %arg6[%c0_130, %c0_131] : memref<1x128xf32, #tpu.memory_space<vmem>>, vector<1x128xf32>
    %463 = vector.broadcast %462 : vector<1x128xf32> to vector<64x128xf32>
    %464 = arith.addf %461, %463 : vector<64x128xf32>
    %c0_132 = arith.constant 0 : index
    %c0_133 = arith.constant 0 : index
    %465 = vector.load %arg7[%c0_132, %c0_133] : memref<64x128xf32, #tpu.memory_space<vmem>>, vector<64x128xf32>
    tpu.vector_store %arg7[%c0_132, %c0_133], %464 {strides = array<i32>} : memref<64x128xf32, #tpu.memory_space<vmem>>, vector<64x128xf32>,
    return
  }
}

</mosaic_0001>

<bundles_post_ra>
// kernel: tpu_custom_call.1
= control target key start
LH: loop header
LB: loop body
LE: loop exit
PB: predicated region body
PF: predicated region fallthrough
CT: control target
= control target key end

     0   :  { %12 = vsyncpa [#allocation5], 0  ;;  %s7018_s0 = inlined_call_operand.vmem [shape: s32[64,1], index: 0, kind: input, shape index: {}]   ;;  %s7019_s1 = inlined_call_operand.hbm [shape: bf16[64,128], index: 1, kind: input, shape index: {}]   ;;  %s7020_s2 = inlined_call_operand.hbm [shape: bf16[32,128], index: 2, kind: input, shape index: {}]   ;;  %s7021_s3 = inlined_call_operand.hbm [shape: bf16[160,512], index: 3, kind: input, shape index: {}]   ;;  %s7022_s4 = inlined_call_operand.vmem [shape: f32[1,512], index: 4, kind: input, shape index: {}]   ;;  %s7023_s5 = inlined_call_operand.vmem [shape: bf16[128,128], index: 5, kind: input, shape index: {}]   ;;  %s7024_s6 = inlined_call_operand.vmem [shape: f32[1,128], index: 6, kind: input, shape index: {}]   ;;  %s7025_s7 = inlined_call_operand.hbm [shape: f32[64,128], index: 7, kind: output, shape index: {}]  }
   0x1   :  { %13 = vsyncpa [#allocation8], 0 }
   0x2   :  { %14 = vsyncpa [#allocation6], 0  ;;  %s34_s26 = sshll.u32 %s7020_s2, 4  ;;  %s6422_s27 = smov [#allocation7]   ;;  %s35_s26 = int_to_ptr.hbm [resolvable:$true] %s34_s26 }
   0x3   :  { %s36_s28 = sshll.u32 %s6422_s27, 4  ;;  %s21_s8 = sshll.u32 %s7019_s1, 4  ;;  %s37_s28 = int_to_ptr.vmem [resolvable:$true] %s36_s28  ;;  %s22_s8 = int_to_ptr.hbm [resolvable:$true] %s21_s8 }
   0x4   :  { %s6423_s9 = smov 64   ;;  %s6424_s10 = smov 4  }
   0x5   :  { %42 = dma.hbm_to_vmem [thread:$0]  %s35_s26, 256, %s37_s28, [#allocation8], %s6423_s9, %s6423_s9, %s6424_s10  }
   0x6   :  { %s6425_s11 = smov [#allocation4]   ;;  %s47_s2 = sshll.u32 %s7021_s3, 4  ;;  %s48_s2 = int_to_ptr.hbm [resolvable:$true] %s47_s2 }
   0x7   :  { %s23_s12 = sshll.u32 %s6425_s11, 4  ;;  %s6426_s15 = smov [#allocation9]   ;;  %s24_s12 = int_to_ptr.vmem [resolvable:$true] %s23_s12 }
   0x8   :  { %29 = dma.hbm_to_vmem [thread:$0]  %s22_s8, 512, %s24_s12, [#allocation5], %s6423_s9, %s6423_s9, %s6424_s10  }
   0x9   :  { %s49_s16 = sshll.u32 %s6426_s15, 4  ;;  %s6427_s1 = smov 256   ;;  %s50_s16 = int_to_ptr.vmem [resolvable:$true] %s49_s16 }
   0xa   :  { %s6428_s17 = smov 16  }
   0xb   :  { %55 = dma.hbm_to_vmem [thread:$0]  %s48_s2, 5120, %s50_s16, [#allocation8], %s6427_s1, %s6427_s1, %s6428_s17  }
   0xc   :  { %6416 = dma.done.wait [#allocation5], 512  }
   0xd   :  { %6417 = vsyncadd [#allocation5], 4294966784 }
   0xe   :  { %6418 = dma.done.wait [#allocation8], 5376  }
   0xf   :  { %6419 = vsyncadd [#allocation8], 4294961920  ;;  %v6429_v0 = vmov 0   ;;  %v77_v1 = vld [vmem:[%s7018_s0] sm:$0xff]  ;;  %v5763_v2 = vld [vmem:[#allocation7 + $0x8] sm:$0xff]  ;;  %v75_v9 = vlaneseq  ;;  %v6430_v13 = vmov 0.0  }
  0x10   :  { %6124 = vset.pattern.permute.xlu0 %v6429_v0  ;;  %6125 = vset.pattern.permute.xlu1 %v6429_v0  ;;  %v5761_v3 = vld [vmem:[#allocation4 + $0x18] sm:$0xff]  ;;  %v5762_v4 = vld [vmem:[#allocation7] sm:$0xff]  ;;  %v78_v5 = vld [vmem:[%s7018_s0 + $0x8] sm:$0xff]  ;;  %vm161_vm2 = vcmask 523264   ;;  %s6431_s21 = smov 32   ;;  %vm238_vm7 = vcmask 261120  }
  0x11   :  { %6126 = vset.pattern.permute.xlu2 %v6429_v0  ;;  %86 = vperm.xlu0 %6124, %v77_v1   ;;  %v5760_v6 = vld [vmem:[#allocation4 + $0x10] sm:$0xff]  ;;  %v5759_v7 = vld [vmem:[#allocation4 + $0x8] sm:$0xff]  ;;  %v5758_v8 = vld [vmem:[#allocation4] sm:$0xff]  ;;  %v6495_v11 = vand.u32 127, %v75_v9  ;;  %s4277_s28 = sshll.u32 %s7025_s7, 4  ;;  %s6434_s29 = smov 128   ;;  %s4278_s28 = int_to_ptr.hbm [resolvable:$true] %s4277_s28 }
  0x12   :  { %248 = vmatpush.bf16.msra.mxu2 %v5763_v2  ;;  %178 = vmatpush.bf16.msra.mxu0 %v5761_v3  ;;  %v81_v37 = vld [vmem:[%s7018_s0 + $0x20] sm:$0xff]  ;;  %v84_v42 = vld [vmem:[%s7018_s0 + $0x38] sm:$0xff]  ;;  %v4434_v43 = vld [vmem:[#allocation9 + $0xe0] sm:$0xf]  ;;  %s6435_s30 = smov 8  }
  0x13   :  { %6106 = vmatpush.bf16.msra.mxu1 %v5761_v3  ;;  %v5794_v44 = vld [vmem:[#allocation9 + $0xec] sm:$0xf0]  ;;  %v4418_v46 = vld [vmem:[#allocation9 + $0xc0] sm:$0xf]  ;;  %v5800_v57 = vld [vmem:[#allocation9 + $0x124] sm:$0xf] }
  0x14   :  { %v4435_v45 = vor.u32 %v5794_v44, %v4434_v43  ;;  %v5790_v47 = vld [vmem:[#allocation9 + $0xcc] sm:$0xf0]  ;;  %v4402_v49 = vld [vmem:[#allocation9 + $0xa0] sm:$0xf]  ;;  %v4468_v60 = vld [vmem:[#allocation9 + $0x130] sm:$0xf0] }
  0x15   :  { %v4419_v48 = vor.u32 %v5790_v47, %v4418_v46  ;;  %v5786_v50 = vld [vmem:[#allocation9 + $0xac] sm:$0xf0]  ;;  %v4466_v51 = vld [vmem:[#allocation9 + $0x120] sm:$0xf]  ;;  %v4471_v62 = vor.u32 %v5800_v57, %v4468_v60  ;;  %v4404_v43 = vld [vmem:[#allocation9 + $0xb0] sm:$0xf0] }
  0x16   :  { %249 = vmatpush.bf16.msra.mxu2 %v5762_v4  ;;  %179 = vmatpush.bf16.msra.mxu0 %v5760_v6  ;;  %v5802_v52 = vld [vmem:[#allocation9 + $0x12c] sm:$0xf0]  ;;  %v4403_v53 = vor.u32 %v5786_v50, %v4402_v49  ;;  %v4450_v55 = vld [vmem:[#allocation9 + $0x100] sm:$0xf]  ;;  %v4388_v46 = vld [vmem:[#allocation9 + $0x90] sm:$0xf0] }
  0x17   :  { %6107 = vmatpush.bf16.msra.mxu1 %v5760_v6  ;;  %v4467_v54 = vor.u32 %v5802_v52, %v4466_v51  ;;  %v5798_v56 = vld [vmem:[#allocation9 + $0x10c] sm:$0xf0]  ;;  %v4386_v58 = vld [vmem:[#allocation9 + $0x80] sm:$0xf]  ;;  %v4372_v49 = vld [vmem:[#allocation9 + $0x70] sm:$0xf0] }
  0x18   :  { %v5782_v59 = vld [vmem:[#allocation9 + $0x8c] sm:$0xf0]  ;;  %v4451_v61 = vor.u32 %v5798_v56, %v4450_v55  ;;  %v4354_v3 = vld [vmem:[#allocation9 + $0x40] sm:$0xf]  ;;  %v5772_v51 = vld [vmem:[#allocation9 + $0x44] sm:$0xf] }
  0x19   :  { %89 = vperm.xlu0 %6124, %v78_v5   ;;  %250 = vmatmul.bf16.vlgmr.msra.gmra.mxu2 %v6429_v0  ;;  %v4387_v63 = vor.u32 %v5782_v59, %v4386_v58  ;;  %v4370_v0 = vld [vmem:[#allocation9 + $0x60] sm:$0xf]  ;;  %v5778_v1 = vld [vmem:[#allocation9 + $0x6c] sm:$0xf0]  ;;  %v4356_v52 = vld [vmem:[#allocation9 + $0x50] sm:$0xf0] }
  0x1a   :  { %180 = vmatpush.bf16.msra.mxu0 %v5759_v7  ;;  %542 = vmatpush.bf16.msrb.mxu2 %v4435_v45  ;;  %v4371_v2 = vor.u32 %v5778_v1, %v4370_v0  ;;  %v5774_v4 = vld [vmem:[#allocation9 + $0x4c] sm:$0xf0]  ;;  %v5780_v45 = vld [vmem:[#allocation9 + $0x84] sm:$0xf]  ;;  %v4359_v55 = vor.u32 %v5772_v51, %v4356_v52  ;;  %v4340_v59 = vld [vmem:[#allocation9 + $0x30] sm:$0xf0] }
  0x1b   :  { %6108 = vmatpush.bf16.msra.mxu1 %v5759_v7  ;;  %561 = vmatpush.bf16.msra.mxu3 %v4467_v54  ;;  %v4355_v6 = vor.u32 %v5774_v4, %v4354_v3  ;;  %v5770_v9 = vld [vmem:[#allocation9 + $0x2c] sm:$0xf0]  ;;  %v4391_v47 = vor.u32 %v5780_v45, %v4388_v46  ;;  %v5795_v54 = vld [vmem:[#allocation9 + $0xf4] sm:$0xf0]  ;;  %v5768_v58 = vld [vmem:[#allocation9 + $0x24] sm:$0xf] }
  0x1c   :  { %v4324_v3 = vld [vmem:[#allocation9 + $0x10] sm:$0xf0]  ;;  %v4410_v4 = vld [vmem:[#allocation9 + $0xa8] sm:$0xf]  ;;  %v5773_v46 = vld [vmem:[#allocation9 + $0x4c] sm:$0xf] }
  0x1d   :  { %v5769_v52 = vld [vmem:[#allocation9 + $0x2c] sm:$0xf] }
  0x1e   :  { %181 = vmatpush.bf16.msra.mxu0 %v5758_v8  ;;  %543 = vmatpush.bf16.msrb.mxu2 %v4419_v48  ;;  %v5776_v48 = vld [vmem:[#allocation9 + $0x64] sm:$0xf] }
  0x1f   :  { %6109 = vmatpush.bf16.msra.mxu1 %v5758_v8  ;;  %562 = vmatpush.bf16.msra.mxu3 %v4451_v61  ;;  %v4338_v8 = vld [vmem:[#allocation9 + $0x20] sm:$0xf]  ;;  %v4375_v50 = vor.u32 %v5776_v48, %v4372_v49  ;;  %v4426_v61 = vld [vmem:[#allocation9 + $0xc8] sm:$0xf] }
  0x22   :  { %544 = vmatpush.bf16.msrb.mxu2 %v4403_v53  ;;  %v4442_v53 = vld [vmem:[#allocation9 + $0xe8] sm:$0xf] }
  0x23   :  { %587 = vmatpush.bf16.msrb.mxu3 %v4471_v62  ;;  %v4443_v57 = vor.u32 %v5795_v54, %v4442_v53  ;;  %v5791_v62 = vld [vmem:[#allocation9 + $0xd4] sm:$0xf0]  ;;  %v4348_v53 = vld [vmem:[#allocation9 + $0x38] sm:$0xf0]  ;;  %v5804_v54 = vld [vmem:[#allocation7] sm:$0xff] }
  0x24   :  { %v4427_v1 = vor.u32 %v5791_v62, %v4426_v61 }
  0x26   :  { %545 = vmatpush.bf16.msrb.mxu2 %v4387_v63  ;;  %v4343_v63 = vor.u32 %v5768_v58, %v4340_v59  ;;  %v5765_v58 = vld [vmem:[#allocation9 + $0xc] sm:$0xf]  ;;  %v4332_v59 = vld [vmem:[#allocation9 + $0x18] sm:$0xf0] }
  0x27   :  { %v4335_v62 = vor.u32 %v5765_v58, %v4332_v59  ;;  %v5818_v59 = vld [vmem:[#allocation9 + $0x64] sm:$0xf] }
  0x2a   :  { %546 = vmatpush.bf16.msrb.mxu2 %v4371_v2  ;;  %v5764_v2 = vld [vmem:[#allocation9 + $0x4] sm:$0xf] }
  0x2e   :  { %547 = vmatpush.bf16.msrb.mxu2 %v4355_v6  ;;  %v4327_v6 = vor.u32 %v5764_v2, %v4324_v3 }
  0x83   :  { %v87_v10 = vpop.permute.xlu0 %86 }
  0x84   :  { %vm109_vm0 = vcmp.eq.s32.totalorder %v6495_v11, %v87_v10 }
  0x85   :  { %v117_v14 = vsel %vm109_vm0, 1.0, %v6430_v13 }
  0x8b   :  { %v90_v12 = vpop.permute.xlu0 %89 }
  0x8c   :  { %vm110_vm1 = vcmp.eq.s32.totalorder %v6495_v11, %v90_v12  ;;  %v4339_v12 = vor.u32 %v5770_v9, %v4338_v8  ;;  %v4444_v8 = vld [vmem:[#allocation9 + $0xf8] sm:$0xf0] }
  0x8d   :  { %v118_v15 = vsel %vm110_vm1, 1.0, %v6430_v13 }
  0x8e   :  { %v125_v16 = vpack.c.bf16 %v118_v15, %v117_v14  ;;  %v4322_v14 = vld [vmem:[#allocation9] sm:$0xf]  ;;  %v5766_v15 = vld [vmem:[#allocation9 + $0xc] sm:$0xf0]  ;;  %548 = vmatpush.bf16.msrb.mxu2 %v4339_v12 }
  0x90   :  { %4307 = vmatmul.msk.bf16.vlgmr.msra.gmra.mxu0 %vm161_vm2, %v125_v16  ;;  %v4474_v16 = vld [vmem:[#allocation9 + $0x128] sm:$0xf] }
  0x9c   :  { %v251_v17 = vpop.f32.mrf.mxu2 }
  0xa4   :  { %v253_v18 = vpop.f32.mrf.mxu2 }
  0xa5   :  { %v82_v18 = vld [vmem:[%s7018_s0 + $0x28] sm:$0xff] }
 0x10d   :  { %v183_v19 = vpop.f32.mrf.mxu0 }
 0x10e   :  { %v255_v20 = vadd.f32 %v251_v17, %v183_v19  ;;  %v5803_v17 = vld [vmem:[#allocation9 + $0x134] sm:$0xf0]  ;;  %v4323_v19 = vor.u32 %v5766_v15, %v4322_v14  ;;  %v4394_v14 = vld [vmem:[#allocation9 + $0x88] sm:$0xf] }
 0x10f   :  { %v5783_v15 = vld [vmem:[#allocation9 + $0x94] sm:$0xf0] }
 0x110   :  { %6128 = vtanh.f32 %v255_v20  ;;  %v4319_v22 = vmul.f32 -1.442695, %v255_v20  ;;  %v4475_v20 = vor.u32 %v5803_v17, %v4474_v16  ;;  %549 = vmatpush.bf16.msrb.mxu2 %v4323_v19  ;;  %v5789_v19 = vld [vmem:[#allocation9 + $0xcc] sm:$0xf] }
 0x112   :  { %6130 = vpow2.f32 %v4319_v22  ;;  %v4458_v22 = vld [vmem:[#allocation9 + $0x108] sm:$0xf] }
 0x114   :  { %613 = vmatpush.bf16.msra.mxu2 %v4475_v20  ;;  %v4428_v20 = vld [vmem:[#allocation9 + $0xd8] sm:$0xf0] }
 0x116   :  { %v6129_v21 = vpop.eup %6128 }
 0x117   :  { %278 = vrot.lane.b32.xlu1 %v6129_v21, %s6423_s9  ;;  %v83_v21 = vld [vmem:[%s7018_s0 + $0x30] sm:$0xff] }
 0x118   :  { %v6131_v23 = vpop.eup %6130 }
 0x119   :  { %v259_v24 = vadd.f32 1.0, %v6131_v23  ;;  %v5799_v23 = vld [vmem:[#allocation9 + $0x114] sm:$0xf0] }
 0x11b   :  { %6132 = vrcp.f32 %v259_v24  ;;  %v271_v30 = vand.u32 2147483648, %v259_v24  ;;  %vm265_vm4 = vweird.f32 %v259_v24  ;;  %v269_v31 = vand.u32 2147483647, %v259_v24 }
 0x11d   :  { %v272_v33 = vor.u32 1.1754944e-38, %v271_v30  ;;  %vm270_vm6 = vcmp.eq.f32.partialorder %v269_v31, 8.507059e+37  ;;  %v4436_v30 = vld [vmem:[#allocation9 + $0xf0] sm:$0xf0] }
 0x121   :  { %v6133_v25 = vpop.eup %6132 }
 0x122   :  { %v261_v26 = vmul.f32 %v6133_v25, %v259_v24  ;;  %vm266_vm3 = vweird.f32 %v6133_v25  ;;  %v4459_v24 = vor.u32 %v5799_v23, %v4458_v22  ;;  %v4378_v22 = vld [vmem:[#allocation9 + $0x68] sm:$0xf]  ;;  %v5779_v23 = vld [vmem:[#allocation9 + $0x74] sm:$0xf0] }
 0x123   :  { %vm267_vm5 = vmor %vm265_vm4, %vm266_vm3 }
 0x124   :  { %v262_v27 = vsub.f32 1.0, %v261_v26  ;;  %614 = vmatpush.bf16.msra.mxu2 %v4459_v24  ;;  %v5796_v26 = vld [vmem:[#allocation9 + $0x104] sm:$0xf]  ;;  %v4431_v24 = vor.u32 %v5789_v19, %v4428_v20 }
 0x126   :  { %v263_v28 = vmul.f32 %v6133_v25, %v262_v27  ;;  %v4452_v27 = vld [vmem:[#allocation9 + $0x110] sm:$0xf0] }
 0x128   :  { %v264_v29 = vadd.f32 %v6133_v25, %v263_v28  ;;  %v4455_v28 = vor.u32 %v5796_v26, %v4452_v27  ;;  %v5785_v26 = vld [vmem:[#allocation9 + $0xac] sm:$0xf]  ;;  %v4412_v27 = vld [vmem:[#allocation9 + $0xb8] sm:$0xf0] }
 0x12a   :  { %v268_v32 = vsel %vm267_vm5, %v6133_v25, %v264_v29  ;;  %v6432_v25 = vmov 0.0|0.0   ;;  %588 = vmatpush.bf16.msrb.mxu3 %v4455_v28  ;;  %v5792_v29 = vld [vmem:[#allocation9 + $0xe4] sm:$0xf]  ;;  %v4379_v28 = vor.u32 %v5779_v23, %v4378_v22 }
 0x12b   :  { %v273_v35 = vsel %vm270_vm6, %v272_v33, %v268_v32  ;;  %550 = vmatmul.bf16.vlgmr.msrb.gmra.mxu2 %v6432_v25  ;;  %v4439_v31 = vor.u32 %v5792_v29, %v4436_v30  ;;  %v5801_v32 = vld [vmem:[#allocation9 + $0x12c] sm:$0xf]  ;;  %v4476_v33 = vld [vmem:[#allocation9 + $0x138] sm:$0xf0]  ;;  %v4362_v29 = vld [vmem:[#allocation9 + $0x48] sm:$0xf] }
 0x12c   :  { %v276_v38 = vmul.f32 0.0, %v273_v35  ;;  %v5775_v30 = vld [vmem:[#allocation9 + $0x54] sm:$0xf0] }
 0x12d   :  { %568 = vmatpush.bf16.msrb.mxu1 %v4439_v31  ;;  %v4415_v31 = vor.u32 %v5785_v26, %v4412_v27 }
 0x189   :  { %v279_v34 = vpop.permute.xlu1 %278 }
 0x18a   :  { %v281_v36 = vmul.f32 %v279_v34, %v273_v35  ;;  %v4479_v34 = vor.u32 %v5801_v32, %v4476_v33  ;;  %v5781_v32 = vld [vmem:[#allocation9 + $0x8c] sm:$0xf]  ;;  %v4396_v33 = vld [vmem:[#allocation9 + $0x98] sm:$0xf0] }
 0x18c   :  { %283 = vrot.lane.b32.xlu1 %v281_v36, %s6431_s21  ;;  %639 = vmatpush.bf16.msrb.mxu2 %v4479_v34  ;;  %v4420_v36 = vld [vmem:[#allocation9 + $0xd0] sm:$0xf0]  ;;  %v4363_v34 = vor.u32 %v5775_v30, %v4362_v29 }
 0x18d   :  { %v4613_v29 = vld [vmem:[#allocation9 + $0xf0] sm:$0xf0] }
 0x194   :  { %98 = vperm.xlu1 %6125, %v81_v37  }
 0x19c   :  { %107 = vperm.xlu1 %6125, %v84_v42   ;;  %v5784_v42 = vld [vmem:[#allocation9 + $0xa4] sm:$0xf] }
 0x19d   :  { %v4407_v44 = vor.u32 %v5784_v42, %v4404_v43  ;;  %v4330_v42 = vld [vmem:[#allocation9 + $0x8] sm:$0xf]  ;;  %v5767_v43 = vld [vmem:[#allocation9 + $0x14] sm:$0xf0] }
 0x19e   :  { %v4331_v48 = vor.u32 %v5767_v43, %v4330_v42  ;;  %v5826_v43 = vld [vmem:[#allocation9 + $0xa4] sm:$0xf] }
 0x1fe   :  { %v284_v39 = vpop.permute.xlu1 %283 }
 0x1ff   :  { %v6507_v40 = vadd.f32 %v284_v39, %v276_v38  ;;  %v5797_v38 = vld [vmem:[#allocation9 + $0x10c] sm:$0xf]  ;;  %v4460_v39 = vld [vmem:[#allocation9 + $0x118] sm:$0xf0] }
 0x201   :  { %6134 = vtanh.f32 %v6507_v40 }
 0x206   :  { %v99_v0 = vpop.permute.xlu1 %98 }
 0x207   :  { %v6135_v41 = vpop.eup %6134  ;;  %vm113_vm8 = vcmp.eq.s32.totalorder %v6495_v11, %v99_v0 }
 0x208   :  { %289 = vrot.lane.b32.xlu2 %v6135_v41, %s6423_s9  ;;  %v4463_v41 = vor.u32 %v5797_v38, %v4460_v39  ;;  %v5777_v38 = vld [vmem:[#allocation9 + $0x6c] sm:$0xf]  ;;  %v4380_v39 = vld [vmem:[#allocation9 + $0x78] sm:$0xf0] }
 0x209   :  { %v4383_v45 = vor.u32 %v5777_v38, %v4380_v39 }
 0x20a   :  { %640 = vmatpush.bf16.msrb.mxu2 %v4463_v41 }
 0x20e   :  { %v108_v49 = vpop.permute.xlu1 %107 }
 0x20f   :  { %vm116_vm10 = vcmp.eq.s32.totalorder %v6495_v11, %v108_v49 }
 0x262   :  { %v290_v5 = vpop.permute.xlu2 %289 }
 0x263   :  { %v292_v7 = vmul.f32 %v290_v5, %v273_v35  ;;  %v5788_v35 = vld [vmem:[#allocation9 + $0xc4] sm:$0xf]  ;;  %v5787_v5 = vld [vmem:[#allocation9 + $0xb4] sm:$0xf0] }
 0x264   :  { %v4423_v37 = vor.u32 %v5788_v35, %v4420_v36  ;;  %v4411_v9 = vor.u32 %v5787_v5, %v4410_v4  ;;  %v4346_v35 = vld [vmem:[#allocation9 + $0x28] sm:$0xf]  ;;  %v5771_v36 = vld [vmem:[#allocation9 + $0x34] sm:$0xf0] }
 0x265   :  { %v711_v10 = vpack.c.bf16 %v292_v7, %v292_v7  ;;  %294 = vrot.lane.b32.xlu2 %v292_v7, %s6431_s21  ;;  %v5793_v7 = vld [vmem:[#allocation9 + $0xec] sm:$0xf]  ;;  %v4347_v41 = vor.u32 %v5771_v36, %v4346_v35  ;;  %v5830_v36 = vld [vmem:[#allocation9 + $0xc4] sm:$0xf] }
 0x266   :  { %569 = vmatpush.bf16.msrb.mxu1 %v4423_v37  ;;  %v4447_v17 = vor.u32 %v5793_v7, %v4444_v8  ;;  %v4399_v37 = vor.u32 %v5781_v32, %v4396_v33 }
 0x267   :  { %717 = vrot.lane.b32.xlu0 %v711_v10, %s6431_s21  ;;  %v121_v10 = vsel %vm113_vm8, 1.0, %v6430_v13 }
 0x26a   :  { %570 = vmatpush.bf16.msrb.mxu1 %v4407_v44 }
 0x26d   :  { %101 = vperm.xlu2 %6126, %v82_v18  }
 0x26e   :  { %571 = vmatpush.bf16.msrb.mxu1 %v4391_v47  ;;  %v4364_v47 = vld [vmem:[#allocation9 + $0x58] sm:$0xf0] }
 0x26f   :  { %104 = vperm.xlu0 %6124, %v83_v21   ;;  %v4395_v21 = vor.u32 %v5783_v15, %v4394_v14  ;;  %v4367_v51 = vor.u32 %v5773_v46, %v4364_v47 }
 0x272   :  { %572 = vmatpush.bf16.msrb.mxu1 %v4375_v50  ;;  %v5805_v50 = vld [vmem:[#allocation7 + $0x8] sm:$0xff] }
 0x276   :  { %573 = vmatpush.bf16.msrb.mxu1 %v4359_v55  ;;  %v124_v55 = vsel %vm116_vm10, 1.0, %v6430_v13 }
 0x27a   :  { %574 = vmatpush.bf16.msrb.mxu1 %v4343_v63  ;;  %v551_v63 = vpop.f32.mrf.mxu2 }
 0x27e   :  { %575 = vmatpush.bf16.msrb.mxu1 %v4327_v6 }
 0x282   :  { %v553_v0 = vpop.f32.mrf.mxu2 }
 0x283   :  { %v5814_v0 = vld [vmem:[#allocation9 + $0x44] sm:$0xf] }
 0x2bf   :  { %v295_v56 = vpop.permute.xlu2 %294 }
 0x2c0   :  { %v298_v60 = vpack.c.bf16 %v295_v56, %v295_v56 }
 0x2c2   :  { %4480 = vmatmul.msk.bf16.vlgmr.msra.gmra.mxu3 %vm238_vm7, %v298_v60  ;;  %4482 = vmatmul.msk.bf16.vlgmr.msra.gmra.mxu2 %vm238_vm7, %v298_v60 }
 0x2c3   :  { %594 = vmatpush.bf16.msra.mxu3 %v4443_v57  ;;  %v4351_v57 = vor.u32 %v5769_v52, %v4348_v53  ;;  %v4565_v52 = vld [vmem:[#allocation9 + $0x90] sm:$0xf0] }
 0x2c7   :  { %595 = vmatpush.bf16.msra.mxu3 %v4427_v1  ;;  %v102_v12 = vpop.permute.xlu2 %101  ;;  %v6544_v1 = vld [vmem:[%s7022_s4] sm:$0xf] }
 0x2c8   :  { %vm114_vm9 = vcmp.eq.s32.totalorder %v6495_v11, %v102_v12  ;;  %v6547_v2 = vperm.slane %v6544_v1, 0  ;;  %v6557_v22 = vperm.slane %v6544_v1, 2  ;;  %v6565_v47 = vperm.slane %v6544_v1, 1 }
 0x2c9   :  { %v122_v16 = vsel %vm114_vm9, 1.0, %v6430_v13 }
 0x2ca   :  { %v127_v18 = vpack.c.bf16 %v122_v16, %v121_v10  ;;  %v552_v3 = vadd.f32 %v551_v63, %v6547_v2 }
 0x2cb   :  { %596 = vmatpush.bf16.msra.mxu3 %v4411_v9 }
 0x2cc   :  { %4309 = vmatmul.msk.bf16.vlgmr.msra.gmra.mxu1 %vm161_vm2, %v127_v18 }
 0x2cd   :  { %620 = vmatpush.bf16.msra.mxu1 %v4447_v17 }
 0x2cf   :  { %597 = vmatpush.bf16.msra.mxu3 %v4395_v21 }
 0x2d1   :  { %621 = vmatpush.bf16.msra.mxu1 %v4431_v24 }
 0x2d2   :  { %4481 = vmatmul.msk.bf16.vlgmr.msrb.gmra.mxu3 %vm238_vm7, %v298_v60  ;;  %4483 = vmatmul.msk.bf16.vlgmr.msrb.gmra.mxu2 %vm238_vm7, %v298_v60 }
 0x2d3   :  { %598 = vmatpush.bf16.msra.mxu3 %v4379_v28  ;;  %v5834_v28 = vld [vmem:[#allocation9 + $0xe4] sm:$0xf] }
 0x2d5   :  { %622 = vmatpush.bf16.msra.mxu1 %v4415_v31  ;;  %v4616_v31 = vor.u32 %v5834_v28, %v4613_v29 }
 0x2d7   :  { %599 = vmatpush.bf16.msra.mxu3 %v4363_v34 }
 0x2d9   :  { %v718_v44 = vpop.permute.xlu0 %717  ;;  %623 = vmatpush.bf16.msra.mxu1 %v4399_v37  ;;  %v4597_v37 = vld [vmem:[#allocation9 + $0xd0] sm:$0xf0] }
 0x2da   :  { %v4600_v38 = vor.u32 %v5830_v36, %v4597_v37 }
 0x2db   :  { %600 = vmatpush.bf16.msra.mxu3 %v4347_v41 }
 0x2dd   :  { %624 = vmatpush.bf16.msra.mxu1 %v4383_v45 }
 0x2df   :  { %601 = vmatpush.bf16.msra.mxu3 %v4331_v48 }
 0x2e1   :  { %v105_v56 = vpop.permute.xlu0 %104  ;;  %625 = vmatpush.bf16.msra.mxu1 %v4367_v51  ;;  %v5822_v51 = vld [vmem:[#allocation9 + $0x84] sm:$0xf] }
 0x2e2   :  { %vm115_vm11 = vcmp.eq.s32.totalorder %v6495_v11, %v105_v56  ;;  %602 = vmatmul.bf16.vlgmr.msra.gmra.mxu3 %v6432_v25 }
 0x2e3   :  { %740 = vmatpush.bf16.msrb.mxu3 %v5805_v50  ;;  %v123_v60 = vsel %vm115_vm11, 1.0, %v6430_v13 }
 0x2e4   :  { %v128_v61 = vpack.c.bf16 %v124_v55, %v123_v60  ;;  %v185_v55 = vpop.f32.mrf.mxu0  ;;  %v4549_v60 = vld [vmem:[#allocation9 + $0x70] sm:$0xf0] }
 0x2e5   :  { %626 = vmatpush.bf16.msra.mxu1 %v4351_v57 }
 0x2e6   :  { %4310 = vmatmul.msk.bf16.gmra.mxu1 %vm161_vm2, %v128_v61 }
 0x2e7   :  { %741 = vmatpush.bf16.msrb.mxu3 %v5804_v54  ;;  %v4568_v54 = vor.u32 %v5822_v51, %v4565_v52 }
 0x2e9   :  { %627 = vmatpush.bf16.msra.mxu1 %v4335_v62  ;;  %v4552_v62 = vor.u32 %v5818_v59, %v4549_v60 }
 0x2f2   :  { %4495 = vmatmul.msk.bf16.vlgmr.msrb.gmra.mxu3 %vm238_vm7, %v718_v44  ;;  %v4581_v44 = vld [vmem:[#allocation9 + $0xb0] sm:$0xf0] }
 0x2f3   :  { %v4584_v48 = vor.u32 %v5826_v43, %v4581_v44 }
 0x2f6   :  { %576 = vmatmul.bf16.vlgmr.msrb.gmra.mxu1 %v6432_v25 }
 0x2f7   :  { %1060 = vmatpush.bf16.msrb.mxu1 %v4616_v31 }
 0x2fb   :  { %1061 = vmatpush.bf16.msrb.mxu1 %v4600_v38 }
 0x2ff   :  { %1062 = vmatpush.bf16.msrb.mxu1 %v4584_v48 }
 0x303   :  { %1063 = vmatpush.bf16.msrb.mxu1 %v4568_v54 }
 0x306   :  { %628 = vmatmul.bf16.vlgmr.msra.gmra.mxu1 %v6432_v25 }
 0x307   :  { %1064 = vmatpush.bf16.msrb.mxu1 %v4552_v62 }
 0x345   :  { %v564_v4 = vpop.f32.mrf.mxu3  ;;  %v616_v5 = vpop.f32.mrf.mxu2 }
 0x346   :  { %v565_v6 = vadd.f32 %v564_v4, %v552_v3  ;;  %v4533_v3 = vld [vmem:[#allocation9 + $0x50] sm:$0xf0] }
 0x347   :  { %v4536_v4 = vor.u32 %v5814_v0, %v4533_v3 }
 0x348   :  { %v4484_v7 = vmul.f32 -1.442695, %v565_v6  ;;  %v4517_v6 = vld [vmem:[#allocation9 + $0x30] sm:$0xf0] }
 0x349   :  { %v6550_v10 = vpop.f32.mrf.mxu1  ;;  %1065 = vmatpush.bf16.msrb.mxu1 %v4536_v4 }
 0x34a   :  { %6136 = vpow2.f32 %v4484_v7 }
 0x34d   :  { %v566_v8 = vpop.f32.mrf.mxu3  ;;  %v618_v9 = vpop.f32.mrf.mxu2 }
 0x350   :  { %v6137_v25 = vpop.eup %6136 }
 0x351   :  { %v649_v12 = vadd.f32 1.0, %v6137_v25  ;;  %v6554_v16 = vpop.f32.mrf.mxu1  ;;  %v5806_v25 = vld [vmem:[#allocation9 + $0x4] sm:$0xf] }
 0x353   :  { %6138 = vrcp.f32 %v649_v12  ;;  %v661_v33 = vand.u32 2147483648, %v649_v12  ;;  %vm655_vm13 = vweird.f32 %v649_v12  ;;  %v659_v34 = vand.u32 2147483647, %v649_v12 }
 0x355   :  { %v590_v14 = vpop.f32.mrf.mxu3  ;;  %v6552_v15 = vpop.f32.mrf.mxu2  ;;  %v662_v42 = vor.u32 1.1754944e-38, %v661_v33  ;;  %vm660_vm15 = vcmp.eq.f32.partialorder %v659_v34, 8.507059e+37 }
 0x359   :  { %v6139_v17 = vpop.eup %6138 }
 0x35a   :  { %v651_v18 = vmul.f32 %v6139_v17, %v649_v12  ;;  %vm656_vm12 = vweird.f32 %v6139_v17  ;;  %v4501_v12 = vld [vmem:[#allocation9 + $0x10] sm:$0xf0] }
 0x35b   :  { %vm657_vm14 = vmor %vm655_vm13, %vm656_vm12 }
 0x35c   :  { %v652_v21 = vsub.f32 1.0, %v651_v18 }
 0x35d   :  { %v592_v19 = vpop.f32.mrf.mxu3  ;;  %v644_v20 = vpop.f32.mrf.mxu2 }
 0x35e   :  { %v653_v24 = vmul.f32 %v6139_v17, %v652_v21  ;;  %v4504_v19 = vor.u32 %v5806_v25, %v4501_v12  ;;  %v80_v25 = vld [vmem:[%s7018_s0 + $0x18] sm:$0xff]  ;;  %v4611_v12 = vld [vmem:[#allocation9 + $0xe0] sm:$0xf] }
 0x360   :  { %v654_v32 = vadd.f32 %v6139_v17, %v653_v24  ;;  %v79_v24 = vld [vmem:[%s7018_s0 + $0x10] sm:$0xff] }
 0x362   :  { %v658_v39 = vsel %vm657_vm14, %v6139_v17, %v654_v32  ;;  %v6575_v17 = vperm.slane %v6544_v1, 3 }
 0x363   :  { %v6559_v23 = vpop.f32.mrf.mxu1  ;;  %v663_v46 = vsel %vm660_vm15, %v662_v42, %v658_v39 }
 0x365   :  { %v603_v26 = vpop.f32.mrf.mxu3 }
 0x366   :  { %v604_v27 = vadd.f32 %v603_v26, %v6557_v22 }
 0x368   :  { %v617_v30 = vadd.f32 %v616_v5, %v604_v27  ;;  %v5810_v5 = vld [vmem:[#allocation9 + $0x24] sm:$0xf] }
 0x369   :  { %v4520_v9 = vor.u32 %v5810_v5, %v4517_v6 }
 0x36a   :  { %6140 = vtanh.f32 %v617_v30 }
 0x36b   :  { %v6562_v35 = vpop.f32.mrf.mxu1  ;;  %1066 = vmatpush.bf16.msrb.mxu1 %v4520_v9 }
 0x36d   :  { %v605_v41 = vpop.f32.mrf.mxu3 }
 0x36f   :  { %1067 = vmatpush.bf16.msrb.mxu1 %v4504_v19 }
 0x370   :  { %v6141_v45 = vpop.eup %6140 }
 0x371   :  { %v6567_v49 = vmul.f32 %v6141_v45, %v663_v46 }
 0x373   :  { %v577_v50 = vpop.f32.mrf.mxu1 }
 0x374   :  { %v578_v53 = vadd.f32 %v577_v50, %v6565_v47 }
 0x375   :  { %v743_v56 = vpop.f32.mrf.mxu3 }
 0x376   :  { %v591_v57 = vadd.f32 %v590_v14, %v578_v53  ;;  %v6570_v58 = vadd.f32 %v743_v56, %v185_v55 }
 0x378   :  { %v4485_v61 = vmul.f32 -1.442695, %v591_v57  ;;  %6142 = vtanh.f32 %v6570_v58  ;;  %v4496_v57 = vmul.f32 -1.442695, %v6570_v58 }
 0x37a   :  { %6144 = vpow2.f32 %v4485_v61 }
 0x37b   :  { %v579_v63 = vpop.f32.mrf.mxu1 }
 0x37d   :  { %v745_v7 = vpop.f32.mrf.mxu3 }
 0x37e   :  { %v6143_v8 = vpop.eup %6142 }
 0x37f   :  { %770 = vrot.lane.b32.xlu2 %v6143_v8, %s6423_s9 }
 0x380   :  { %v6145_v14 = vpop.eup %6144 }
 0x381   :  { %v668_v18 = vadd.f32 1.0, %v6145_v14  ;;  %v5836_v14 = vld [vmem:[#allocation9 + $0xec] sm:$0xf0] }
 0x382   :  { %v4612_v19 = vor.u32 %v5836_v14, %v4611_v12 }
 0x383   :  { %6146 = vrcp.f32 %v668_v18  ;;  %v629_v20 = vpop.f32.mrf.mxu1  ;;  %v680_v31 = vand.u32 2147483648, %v668_v18  ;;  %v678_v33 = vand.u32 2147483647, %v668_v18  ;;  %vm674_vm1 = vweird.f32 %v668_v18 }
 0x384   :  { %v630_v21 = vadd.f32 %v629_v20, %v6575_v17  ;;  %v5832_v20 = vld [vmem:[#allocation9 + $0xcc] sm:$0xf0]  ;;  %1034 = vmatpush.bf16.msrb.mxu0 %v4612_v19  ;;  %v5809_v19 = vld [vmem:[#allocation9 + $0x14] sm:$0xf0] }
 0x385   :  { %v681_v37 = vor.u32 1.1754944e-38, %v680_v31  ;;  %vm679_vm4 = vcmp.eq.f32.partialorder %v678_v33, 8.507059e+37  ;;  %v5820_v33 = vld [vmem:[#allocation9 + $0x6c] sm:$0xf0] }
 0x386   :  { %v643_v26 = vadd.f32 %v6552_v15, %v630_v21 }
 0x387   :  { %92 = vperm.xlu2 %6126, %v79_v24   ;;  %v4579_v24 = vld [vmem:[#allocation9 + $0xa0] sm:$0xf] }
 0x388   :  { %v4486_v27 = vmul.f32 -1.442695, %v643_v26  ;;  %v5828_v26 = vld [vmem:[#allocation9 + $0xac] sm:$0xf0] }
 0x389   :  { %v6147_v28 = vpop.eup %6146 }
 0x38a   :  { %v670_v29 = vmul.f32 %v6147_v28, %v668_v18  ;;  %6148 = vpow2.f32 %v4486_v27  ;;  %vm675_vm0 = vweird.f32 %v6147_v28  ;;  %v4595_v18 = vld [vmem:[#allocation9 + $0xc0] sm:$0xf]  ;;  %v4580_v27 = vor.u32 %v5828_v26, %v4579_v24 }
 0x38b   :  { %v631_v1 = vpop.f32.mrf.mxu1  ;;  %vm676_vm3 = vmor %vm674_vm1, %vm675_vm0  ;;  %v4596_v21 = vor.u32 %v5832_v20, %v4595_v18  ;;  %v4507_v18 = vld [vmem:[#allocation9 + $0x8] sm:$0xf] }
 0x38c   :  { %v671_v30 = vsub.f32 1.0, %v670_v29  ;;  %v5824_v29 = vld [vmem:[#allocation9 + $0x8c] sm:$0xf0] }
 0x38d   :  { %1035 = vmatpush.bf16.msrb.mxu0 %v4596_v21  ;;  %v4508_v21 = vor.u32 %v5809_v19, %v4507_v18  ;;  %v5819_v19 = vld [vmem:[#allocation9 + $0x6c] sm:$0xf] }
 0x38e   :  { %v672_v32 = vmul.f32 %v6147_v28, %v671_v30 }
 0x390   :  { %v6149_v34 = vpop.eup %6148  ;;  %v673_v36 = vadd.f32 %v6147_v28, %v672_v32  ;;  %v4547_v32 = vld [vmem:[#allocation9 + $0x60] sm:$0xf] }
 0x391   :  { %v688_v38 = vadd.f32 1.0, %v6149_v34  ;;  %1036 = vmatpush.bf16.msrb.mxu0 %v4580_v27  ;;  %v4548_v34 = vor.u32 %v5820_v33, %v4547_v32  ;;  %v5846_v32 = vld [vmem:[#allocation7] sm:$0xff] }
 0x392   :  { %v677_v39 = vsel %vm676_vm3, %v6147_v28, %v673_v36  ;;  %v4563_v28 = vld [vmem:[#allocation9 + $0x80] sm:$0xf] }
 0x393   :  { %v682_v15 = vsel %vm679_vm4, %v681_v37, %v677_v39  ;;  %6150 = vrcp.f32 %v688_v38  ;;  %v700_v46 = vand.u32 2147483648, %v688_v38  ;;  %v698_v50 = vand.u32 2147483647, %v688_v38  ;;  %v4531_v36 = vld [vmem:[#allocation9 + $0x40] sm:$0xf] }
 0x394   :  { %v704_v41 = vmul.f32 0.0, %v682_v15  ;;  %vm694_vm6 = vweird.f32 %v688_v38  ;;  %v4564_v1 = vor.u32 %v5824_v29, %v4563_v28  ;;  %v5816_v37 = vld [vmem:[#allocation9 + $0x4c] sm:$0xf0]  ;;  %v4515_v39 = vld [vmem:[#allocation9 + $0x20] sm:$0xf] }
 0x395   :  { %v701_v52 = vor.u32 1.1754944e-38, %v700_v46  ;;  %vm699_vm9 = vcmp.eq.f32.partialorder %v698_v50, 8.507059e+37  ;;  %v5812_v15 = vld [vmem:[#allocation9 + $0x2c] sm:$0xf0]  ;;  %v4619_v46 = vld [vmem:[#allocation9 + $0xe8] sm:$0xf] }
 0x396   :  { %v6583_v43 = vadd.f32 %v6567_v49, %v704_v41  ;;  %1037 = vmatpush.bf16.msrb.mxu0 %v4564_v1  ;;  %v4516_v41 = vor.u32 %v5812_v15, %v4515_v39  ;;  %v4603_v50 = vld [vmem:[#allocation9 + $0xc8] sm:$0xf]  ;;  %v4645_v39 = vld [vmem:[#allocation9 + $0x130] sm:$0xf0]  ;;  %v5838_v15 = vld [vmem:[#allocation9 + $0x104] sm:$0xf] }
 0x398   :  { %6152 = vtanh.f32 %v6583_v43 }
 0x399   :  { %v6151_v42 = vpop.eup %6150  ;;  %6154 = vpow2.f32 %v4496_v57 }
 0x39a   :  { %v690_v44 = vmul.f32 %v6151_v42, %v688_v38  ;;  %vm695_vm5 = vweird.f32 %v6151_v42  ;;  %1038 = vmatpush.bf16.msrb.mxu0 %v4548_v34  ;;  %v4532_v38 = vor.u32 %v5816_v37, %v4531_v36 }
 0x39b   :  { %vm696_vm8 = vmor %vm694_vm6, %vm695_vm5 }
 0x39c   :  { %v691_v45 = vsub.f32 1.0, %v690_v44  ;;  %v5808_v44 = vld [vmem:[#allocation9 + $0xc] sm:$0xf0] }
 0x39e   :  { %v692_v48 = vmul.f32 %v6151_v42, %v691_v45  ;;  %v6153_v54 = vpop.eup %6152  ;;  %1039 = vmatpush.bf16.msrb.mxu0 %v4532_v38 }
 0x39f   :  { %v6155_v59 = vpop.eup %6154 }
 0x3a0   :  { %v693_v51 = vadd.f32 %v6151_v42, %v692_v48  ;;  %v751_v60 = vadd.f32 1.0, %v6155_v59  ;;  %v5837_v48 = vld [vmem:[#allocation9 + $0xf4] sm:$0xf0]  ;;  %v4571_v59 = vld [vmem:[#allocation9 + $0x88] sm:$0xf] }
 0x3a2   :  { %v697_v53 = vsel %vm696_vm8, %v6151_v42, %v693_v51  ;;  %6156 = vrcp.f32 %v751_v60  ;;  %v763_v4 = vand.u32 2147483648, %v751_v60  ;;  %vm757_vm11 = vweird.f32 %v751_v60  ;;  %1040 = vmatpush.bf16.msrb.mxu0 %v4516_v41  ;;  %v4499_v42 = vld [vmem:[#allocation9] sm:$0xf] }
 0x3a3   :  { %v702_v55 = vsel %vm699_vm9, %v701_v52, %v697_v53  ;;  %v761_v5 = vand.u32 2147483647, %v751_v60  ;;  %v4500_v45 = vor.u32 %v5808_v44, %v4499_v42  ;;  %v4620_v51 = vor.u32 %v5837_v48, %v4619_v46  ;;  %v5833_v52 = vld [vmem:[#allocation9 + $0xd4] sm:$0xf0]  ;;  %v4629_v42 = vld [vmem:[#allocation9 + $0x110] sm:$0xf0] }
 0x3a4   :  { %v6586_v56 = vmul.f32 %v6153_v54, %v702_v55  ;;  %v764_v7 = vor.u32 1.1754944e-38, %v763_v4  ;;  %v4604_v53 = vor.u32 %v5833_v52, %v4603_v50  ;;  %v4587_v54 = vld [vmem:[#allocation9 + $0xa8] sm:$0xf]  ;;  %v5829_v55 = vld [vmem:[#allocation9 + $0xb4] sm:$0xf0]  ;;  %v4632_v46 = vor.u32 %v5838_v15, %v4629_v42 }
 0x3a5   :  { %vm762_vm13 = vcmp.eq.f32.partialorder %v761_v5, 8.507059e+37  ;;  %v4588_v57 = vor.u32 %v5829_v55, %v4587_v54  ;;  %v5817_v4 = vld [vmem:[#allocation9 + $0x54] sm:$0xf0]  ;;  %v5835_v44 = vld [vmem:[#allocation9 + $0xec] sm:$0xf] }
 0x3a6   :  { %v6590_v49 = vpack.c.bf16 %v6586_v56, %v6586_v56  ;;  %1041 = vmatpush.bf16.msrb.mxu0 %v4500_v45  ;;  %v4621_v45 = vld [vmem:[#allocation9 + $0xf8] sm:$0xf0]  ;;  %v5831_v50 = vld [vmem:[#allocation9 + $0xcc] sm:$0xf] }
 0x3a7   :  { %v4624_v48 = vor.u32 %v5835_v44, %v4621_v45  ;;  %v4509_v15 = vld [vmem:[#allocation9 + $0x18] sm:$0xf0] }
 0x3a8   :  { %1068 = vmatmul.bf16.vlgmr.msrb.gmra.mxu1 %v6590_v49  ;;  %v6157_v61 = vpop.eup %6156 }
 0x3a9   :  { %v753_v62 = vmul.f32 %v6157_v61, %v751_v60  ;;  %vm758_vm10 = vweird.f32 %v6157_v61  ;;  %v5825_v60 = vld [vmem:[#allocation9 + $0x94] sm:$0xf0] }
 0x3aa   :  { %vm759_vm12 = vmor %vm757_vm11, %vm758_vm10  ;;  %1086 = vmatpush.bf16.msra.mxu0 %v4620_v51  ;;  %v4605_v51 = vld [vmem:[#allocation9 + $0xd8] sm:$0xf0] }
 0x3ab   :  { %v754_v63 = vsub.f32 1.0, %v753_v62  ;;  %v4555_v62 = vld [vmem:[#allocation9 + $0x68] sm:$0xf]  ;;  %v4608_v52 = vor.u32 %v5831_v50, %v4605_v51 }
 0x3ad   :  { %v755_v0 = vmul.f32 %v6157_v61, %v754_v63  ;;  %v5821_v63 = vld [vmem:[#allocation9 + $0x74] sm:$0xf0] }
 0x3ae   :  { %1087 = vmatpush.bf16.msra.mxu0 %v4604_v53 }
 0x3af   :  { %v756_v3 = vadd.f32 %v6157_v61, %v755_v0  ;;  %v4539_v0 = vld [vmem:[#allocation9 + $0x48] sm:$0xf] }
 0x3b1   :  { %v760_v6 = vsel %vm759_vm12, %v6157_v61, %v756_v3  ;;  %v4572_v61 = vor.u32 %v5825_v60, %v4571_v59  ;;  %v4556_v3 = vor.u32 %v5821_v63, %v4555_v62  ;;  %v4643_v62 = vld [vmem:[#allocation9 + $0x120] sm:$0xf]  ;;  %v5844_v63 = vld [vmem:[#allocation9 + $0x12c] sm:$0xf0] }
 0x3b2   :  { %v6594_v9 = vsel %vm762_vm13, %v764_v7, %v760_v6  ;;  %1088 = vmatpush.bf16.msra.mxu0 %v4588_v57  ;;  %v4540_v7 = vor.u32 %v5817_v4, %v4539_v0  ;;  %v5827_v0 = vld [vmem:[#allocation9 + $0xac] sm:$0xf]  ;;  %v4589_v4 = vld [vmem:[#allocation9 + $0xb8] sm:$0xf0] }
 0x3b3   :  { %v768_v5 = vmul.f32 %v6594_v9, %v6507_v40 }
 0x3b6   :  { %1089 = vmatpush.bf16.msra.mxu0 %v4572_v61 }
 0x3ba   :  { %1090 = vmatpush.bf16.msra.mxu0 %v4556_v3  ;;  %v4644_v3 = vor.u32 %v5844_v63, %v4643_v62  ;;  %v5839_v62 = vld [vmem:[#allocation9 + $0x10c] sm:$0xf]  ;;  %v4637_v63 = vld [vmem:[#allocation9 + $0x118] sm:$0xf0] }
 0x3bc   :  { %1053 = vmatpush.bf16.msra.mxu2 %v4644_v3 }
 0x3be   :  { %1091 = vmatpush.bf16.msra.mxu0 %v4540_v7  ;;  %v4592_v7 = vor.u32 %v5827_v0, %v4589_v4 }
 0x3d9   :  { %v771_v8 = vpop.permute.xlu2 %770 }
 0x3da   :  { %v773_v58 = vmul.f32 %v771_v8, %v6594_v9 }
 0x3dc   :  { %775 = vrot.lane.b32.xlu0 %v773_v58, %s6431_s21  ;;  %v4523_v58 = vld [vmem:[#allocation9 + $0x28] sm:$0xf] }
 0x3e1   :  { %v93_v12 = vpop.permute.xlu2 %92 }
 0x3e2   :  { %vm111_vm14 = vcmp.eq.s32.totalorder %v6495_v11, %v93_v12 }
 0x3e3   :  { %v119_v24 = vsel %vm111_vm14, 1.0, %v6430_v13 }
 0x3e4   :  { %95 = vperm.xlu0 %6124, %v80_v25   ;;  %v5813_v25 = vld [vmem:[#allocation9 + $0x34] sm:$0xf0] }
 0x3e5   :  { %v4524_v14 = vor.u32 %v5813_v25, %v4523_v58  ;;  %v5823_v58 = vld [vmem:[#allocation9 + $0x8c] sm:$0xf]  ;;  %v4573_v25 = vld [vmem:[#allocation9 + $0x98] sm:$0xf0] }
 0x3e7   :  { %1092 = vmatpush.bf16.msra.mxu0 %v4524_v14  ;;  %v4576_v14 = vor.u32 %v5823_v58, %v4573_v25  ;;  %v4772_v25 = vld [vmem:[#allocation9 + $0xc0] sm:$0xf] }
 0x3eb   :  { %1093 = vmatpush.bf16.msra.mxu0 %v4508_v21  ;;  %v5815_v21 = vld [vmem:[#allocation9 + $0x4c] sm:$0xf] }
 0x425   :  { %v6601_v30 = vpop.f32.mrf.mxu1 }
 0x42d   :  { %v1071_v31 = vpop.f32.mrf.mxu1 }
 0x44e   :  { %v776_v6 = vpop.permute.xlu0 %775 }
 0x44f   :  { %v6605_v8 = vadd.f32 %v776_v6, %v768_v5  ;;  %v4627_v5 = vld [vmem:[#allocation9 + $0x100] sm:$0xf]  ;;  %v5840_v6 = vld [vmem:[#allocation9 + $0x10c] sm:$0xf0] }
 0x450   :  { %v4628_v12 = vor.u32 %v5840_v6, %v4627_v5  ;;  %v4788_v6 = vld [vmem:[#allocation9 + $0xe0] sm:$0xf] }
 0x451   :  { %6158 = vtanh.f32 %v6605_v8 }
 0x452   :  { %1054 = vmatpush.bf16.msra.mxu2 %v4628_v12  ;;  %v5874_v12 = vld [vmem:[#allocation9 + $0xcc] sm:$0xf0] }
 0x456   :  { %v96_v20 = vpop.permute.xlu0 %95 }
 0x457   :  { %v6159_v40 = vpop.eup %6158  ;;  %vm112_vm15 = vcmp.eq.s32.totalorder %v6495_v11, %v96_v20  ;;  %v4557_v20 = vld [vmem:[#allocation9 + $0x78] sm:$0xf0] }
 0x458   :  { %v120_v26 = vsel %vm112_vm15, 1.0, %v6430_v13  ;;  %781 = vrot.lane.b32.xlu1 %v6159_v40, %s6423_s9  ;;  %v5847_v13 = vld [vmem:[#allocation7 + $0x8] sm:$0xff]  ;;  %v4560_v40 = vor.u32 %v5819_v19, %v4557_v20 }
 0x459   :  { %v126_v27 = vpack.c.bf16 %v120_v26, %v119_v24  ;;  %1232 = vmatpush.bf16.msra.mxu1 %v5847_v13  ;;  %v4541_v24 = vld [vmem:[#allocation9 + $0x58] sm:$0xf0]  ;;  %v4651_v26 = vld [vmem:[#allocation9 + $0x128] sm:$0xf] }
 0x45a   :  { %v4544_v13 = vor.u32 %v5815_v21, %v4541_v24 }
 0x45b   :  { %4308 = vmatmul.msk.bf16.gmra.mxu0 %vm161_vm2, %v126_v27  ;;  %v5845_v27 = vld [vmem:[#allocation9 + $0x134] sm:$0xf0] }
 0x45d   :  { %1233 = vmatpush.bf16.msra.mxu1 %v5846_v32 }
 0x46b   :  { %1042 = vmatmul.bf16.vlgmr.msrb.gmra.mxu0 %v6590_v49 }
 0x47b   :  { %1094 = vmatmul.bf16.vlgmr.msra.gmra.mxu0 %v6590_v49 }
 0x4ca   :  { %v782_v28 = vpop.permute.xlu1 %781 }
 0x4cb   :  { %v784_v29 = vmul.f32 %v782_v28, %v6594_v9  ;;  %v5842_v9 = vld [vmem:[#allocation9 + $0x124] sm:$0xf] }
 0x4cc   :  { %v4648_v41 = vor.u32 %v5842_v9, %v4645_v39  ;;  %v5807_v39 = vld [vmem:[#allocation9 + $0xc] sm:$0xf] }
 0x4cd   :  { %v1203_v1 = vpack.c.bf16 %v784_v29, %v784_v29  ;;  %v4512_v42 = vor.u32 %v5807_v39, %v4509_v15 }
 0x4ce   :  { %1079 = vmatpush.bf16.msra.mxu3 %v4648_v41 }
 0x4cf   :  { %1209 = vrot.lane.b32.xlu1 %v1203_v1, %s6431_s21  ;;  %v4635_v1 = vld [vmem:[#allocation9 + $0x108] sm:$0xf] }
 0x4d2   :  { %1080 = vmatpush.bf16.msra.mxu3 %v4632_v46 }
 0x4d6   :  { %1112 = vmatpush.bf16.msrb.mxu3 %v4624_v48 }
 0x4d8   :  { %v188_v11 = vpop.f32.mrf.mxu0 }
 0x4da   :  { %1113 = vmatpush.bf16.msrb.mxu3 %v4608_v52 }
 0x4de   :  { %1114 = vmatpush.bf16.msrb.mxu3 %v4592_v7  ;;  %v5878_v7 = vld [vmem:[#allocation9 + $0xec] sm:$0xf0] }
 0x4df   :  { %v4789_v58 = vor.u32 %v5878_v7, %v4788_v6  ;;  %v4676_v6 = vld [vmem:[#allocation9] sm:$0xf]  ;;  %v5850_v7 = vld [vmem:[#allocation9 + $0xc] sm:$0xf0] }
 0x4e0   :  { %v6618_v31 = vpop.f32.mrf.mxu0 }
 0x4e1   :  { %1526 = vmatpush.bf16.msrb.mxu0 %v4789_v58  ;;  %v4677_v58 = vor.u32 %v5850_v7, %v4676_v6 }
 0x4e2   :  { %1115 = vmatpush.bf16.msrb.mxu3 %v4576_v14  ;;  %v4756_v14 = vld [vmem:[#allocation9 + $0xa0] sm:$0xf] }
 0x4e6   :  { %1116 = vmatpush.bf16.msrb.mxu3 %v4560_v40 }
 0x4e8   :  { %v6620_v33 = vpop.f32.mrf.mxu0 }
 0x4e9   :  { %v1044_v19 = vadd.f32 %v6620_v33, %v6547_v2 }
 0x4ea   :  { %1117 = vmatpush.bf16.msrb.mxu3 %v4544_v13  ;;  %v5876_v13 = vld [vmem:[#allocation9 + $0xe4] sm:$0xf] }
 0x4f0   :  { %v1045_v34 = vpop.f32.mrf.mxu0 }
 0x4f1   :  { %v5811_v34 = vld [vmem:[#allocation9 + $0x2c] sm:$0xf] }
 0x4f8   :  { %v6622_v36 = vpop.f32.mrf.mxu0 }
 0x500   :  { %v1097_v37 = vpop.f32.mrf.mxu0 }
 0x501   :  { %v4525_v37 = vld [vmem:[#allocation9 + $0x38] sm:$0xf0] }
 0x502   :  { %v4528_v9 = vor.u32 %v5811_v34, %v4525_v37  ;;  %v5862_v37 = vld [vmem:[#allocation9 + $0x6c] sm:$0xf0] }
 0x504   :  { %1118 = vmatpush.bf16.msrb.mxu3 %v4528_v9  ;;  %v4774_v9 = vld [vmem:[#allocation9 + $0xd0] sm:$0xf0] }
 0x508   :  { %1119 = vmatpush.bf16.msrb.mxu3 %v4512_v42  ;;  %v4708_v42 = vld [vmem:[#allocation9 + $0x40] sm:$0xf] }
 0x541   :  { %v1210_v38 = vpop.permute.xlu1 %1209 }
 0x542   :  { %4672 = vmatmul.msk.bf16.vlgmr.msra.gmra.mxu1 %vm238_vm7, %v1210_v38 }
 0x5bf   :  { %v1235_v53 = vpop.f32.mrf.mxu1 }
 0x5c0   :  { %v1239_v54 = vadd.f32 %v1235_v53, %v188_v11  ;;  %v5841_v11 = vld [vmem:[#allocation9 + $0x114] sm:$0xf0] }
 0x5c1   :  { %v4636_v32 = vor.u32 %v5841_v11, %v4635_v1 }
 0x5c2   :  { %6160 = vtanh.f32 %v1239_v54  ;;  %v4673_v59 = vmul.f32 -1.442695, %v1239_v54  ;;  %v5843_v54 = vld [vmem:[#allocation9 + $0x12c] sm:$0xf] }
 0x5c4   :  { %6162 = vpow2.f32 %v4673_v59 }
 0x5c7   :  { %v1237_v55 = vpop.f32.mrf.mxu1 }
 0x5c8   :  { %v6161_v57 = vpop.eup %6160  ;;  %v4653_v55 = vld [vmem:[#allocation9 + $0x138] sm:$0xf0] }
 0x5c9   :  { %1262 = vrot.lane.b32.xlu2 %v6161_v57, %s6423_s9  ;;  %v4656_v59 = vor.u32 %v5843_v54, %v4653_v55 }
 0x5ca   :  { %v6163_v60 = vpop.eup %6162 }
 0x5cb   :  { %v1243_v61 = vadd.f32 1.0, %v6163_v60 }
 0x5cd   :  { %6164 = vrcp.f32 %v1243_v61  ;;  %v1255_v45 = vand.u32 2147483648, %v1243_v61  ;;  %vm1249_vm0 = vweird.f32 %v1243_v61  ;;  %v1253_v46 = vand.u32 2147483647, %v1243_v61 }
 0x5cf   :  { %v1256_v50 = vor.u32 1.1754944e-38, %v1255_v45  ;;  %vm1254_vm3 = vcmp.eq.f32.partialorder %v1253_v46, 8.507059e+37 }
 0x5d1   :  { %786 = vrot.lane.b32.xlu2 %v784_v29, %s6431_s21  ;;  %v4652_v29 = vor.u32 %v5845_v27, %v4651_v26  ;;  %v4740_v27 = vld [vmem:[#allocation9 + $0x80] sm:$0xf] }
 0x5d3   :  { %v6165_v18 = vpop.eup %6164  ;;  %1105 = vmatpush.bf16.msrb.mxu2 %v4652_v29 }
 0x5d4   :  { %v1245_v28 = vmul.f32 %v6165_v18, %v1243_v61  ;;  %vm1250_vm2 = vweird.f32 %v6165_v18  ;;  %v4640_v61 = vor.u32 %v5839_v62, %v4637_v63 }
 0x5d5   :  { %vm1251_vm1 = vmor %vm1249_vm0, %vm1250_vm2 }
 0x5d6   :  { %v1246_v38 = vsub.f32 1.0, %v1245_v28  ;;  %v5866_v28 = vld [vmem:[#allocation9 + $0x8c] sm:$0xf0] }
 0x5d7   :  { %1106 = vmatpush.bf16.msrb.mxu2 %v4636_v32  ;;  %v4741_v11 = vor.u32 %v5866_v28, %v4740_v27  ;;  %v4790_v32 = vld [vmem:[#allocation9 + $0xf0] sm:$0xf0]  ;;  %v5856_v28 = vld [vmem:[#allocation9 + $0x44] sm:$0xf] }
 0x5d8   :  { %v1247_v41 = vmul.f32 %v6165_v18, %v1246_v38  ;;  %v4793_v34 = vor.u32 %v5876_v13, %v4790_v32  ;;  %v5872_v38 = vld [vmem:[#allocation9 + $0xc4] sm:$0xf] }
 0x5da   :  { %v1248_v44 = vadd.f32 %v6165_v18, %v1247_v41  ;;  %1552 = vmatpush.bf16.msrb.mxu1 %v4793_v34  ;;  %v4777_v41 = vor.u32 %v5872_v38, %v4774_v9  ;;  %v5852_v9 = vld [vmem:[#allocation9 + $0x24] sm:$0xf] }
 0x5dc   :  { %v1252_v48 = vsel %vm1251_vm1, %v6165_v18, %v1248_v44  ;;  %v5870_v18 = vld [vmem:[#allocation9 + $0xac] sm:$0xf0] }
 0x5dd   :  { %v6627_v52 = vsel %vm1254_vm3, %v1256_v50, %v1252_v48  ;;  %v4757_v20 = vor.u32 %v5870_v18, %v4756_v14  ;;  %v5858_v44 = vld [vmem:[#allocation9 + $0x4c] sm:$0xf0]  ;;  %v5868_v48 = vld [vmem:[#allocation9 + $0xa4] sm:$0xf]  ;;  %v4758_v50 = vld [vmem:[#allocation9 + $0xb0] sm:$0xf0] }
 0x5de   :  { %v1260_v0 = vmul.f32 %v6627_v52, %v6605_v8  ;;  %v1070_v8 = vadd.f32 %v6601_v30, %v6565_v47  ;;  %v4724_v30 = vld [vmem:[#allocation9 + $0x60] sm:$0xf]  ;;  %1553 = vmatpush.bf16.msrb.mxu1 %v4777_v41  ;;  %v4709_v46 = vor.u32 %v5858_v44, %v4708_v42  ;;  %v4761_v54 = vor.u32 %v5868_v48, %v4758_v50  ;;  %v4766_v44 = vld [vmem:[#allocation9 + $0xb8] sm:$0xf0] }
 0x5df   :  { %v4725_v33 = vor.u32 %v5862_v37, %v4724_v30  ;;  %v5873_v30 = vld [vmem:[#allocation9 + $0xcc] sm:$0xf]  ;;  %v4782_v37 = vld [vmem:[#allocation9 + $0xd8] sm:$0xf0] }
 0x5e0   :  { %v4785_v38 = vor.u32 %v5873_v30, %v4782_v37 }
 0x5e2   :  { %1554 = vmatpush.bf16.msrb.mxu1 %v4761_v54  ;;  %v5865_v54 = vld [vmem:[#allocation9 + $0x8c] sm:$0xf] }
 0x623   :  { %v1263_v51 = vpop.permute.xlu2 %1262 }
 0x624   :  { %v1265_v53 = vmul.f32 %v1263_v51, %v6627_v52 }
 0x626   :  { %1267 = vrot.lane.b32.xlu0 %v1265_v53, %s6431_s21 }
 0x62b   :  { %v787_v57 = vpop.permute.xlu2 %786 }
 0x62c   :  { %v790_v60 = vpack.c.bf16 %v787_v57, %v787_v57  ;;  %v4692_v57 = vld [vmem:[#allocation9 + $0x20] sm:$0xf] }
 0x62e   :  { %4657 = vmatmul.msk.bf16.vlgmr.msra.gmra.mxu2 %vm238_vm7, %v790_v60  ;;  %4658 = vmatmul.msk.bf16.vlgmr.msra.gmra.mxu3 %vm238_vm7, %v790_v60 }
 0x62f   :  { %1131 = vmatpush.bf16.msra.mxu2 %v4656_v59  ;;  %v5854_v59 = vld [vmem:[#allocation9 + $0x2c] sm:$0xf0] }
 0x630   :  { %v4693_v63 = vor.u32 %v5854_v59, %v4692_v57  ;;  %v4750_v57 = vld [vmem:[#allocation9 + $0x98] sm:$0xf0] }
 0x631   :  { %v4753_v7 = vor.u32 %v5865_v54, %v4750_v57  ;;  %v4804_v57 = vld [vmem:[#allocation9 + $0x100] sm:$0xf] }
 0x633   :  { %1132 = vmatpush.bf16.msra.mxu2 %v4640_v61  ;;  %v5864_v61 = vld [vmem:[#allocation9 + $0x84] sm:$0xf] }
 0x63e   :  { %4659 = vmatmul.msk.bf16.vlgmr.msrb.gmra.mxu2 %vm238_vm7, %v790_v60  ;;  %1120 = vmatmul.bf16.vlgmr.msrb.gmra.mxu3 %v6590_v49  ;;  %v4773_v49 = vor.u32 %v5874_v12, %v4772_v25  ;;  %v5860_v25 = vld [vmem:[#allocation9 + $0x64] sm:$0xf]  ;;  %v4726_v12 = vld [vmem:[#allocation9 + $0x70] sm:$0xf0] }
 0x640   :  { %1527 = vmatpush.bf16.msrb.mxu0 %v4773_v49  ;;  %v5877_v49 = vld [vmem:[#allocation9 + $0xec] sm:$0xf] }
 0x644   :  { %1528 = vmatpush.bf16.msrb.mxu0 %v4757_v20 }
 0x648   :  { %1529 = vmatpush.bf16.msrb.mxu0 %v4741_v11 }
 0x64c   :  { %1530 = vmatpush.bf16.msrb.mxu0 %v4725_v33 }
 0x64e   :  { %4660 = vmatmul.msk.bf16.vlgmr.msra.gmra.mxu2 %vm238_vm7, %v790_v60 }
 0x650   :  { %1531 = vmatpush.bf16.msrb.mxu0 %v4709_v46 }
 0x654   :  { %1532 = vmatpush.bf16.msrb.mxu0 %v4693_v63  ;;  %v5848_v63 = vld [vmem:[#allocation9 + $0x4] sm:$0xf] }
 0x658   :  { %1533 = vmatpush.bf16.msrb.mxu0 %v4677_v58 }
 0x698   :  { %v1268_v3 = vpop.permute.xlu0 %1267 }
 0x699   :  { %v6638_v4 = vadd.f32 %v1268_v3, %v1260_v0  ;;  %v4742_v0 = vld [vmem:[#allocation9 + $0x90] sm:$0xf0]  ;;  %v1096_v3 = vadd.f32 %v6622_v36, %v6557_v22 }
 0x69b   :  { %6166 = vtanh.f32 %v6638_v4 }
 0x6a1   :  { %v6167_v5 = vpop.eup %6166 }
 0x6a2   :  { %1273 = vrot.lane.b32.xlu1 %v6167_v5, %s6423_s9  ;;  %v4745_v5 = vor.u32 %v5864_v61, %v4742_v0  ;;  %v4678_v61 = vld [vmem:[#allocation9 + $0x10] sm:$0xf0] }
 0x6a4   :  { %1555 = vmatpush.bf16.msrb.mxu1 %v4745_v5 }
 0x6b1   :  { %v1056_v21 = vpop.f32.mrf.mxu2  ;;  %v1082_v40 = vpop.f32.mrf.mxu3 }
 0x6b2   :  { %v1057_v24 = vadd.f32 %v1056_v21, %v1044_v19  ;;  %v1083_v26 = vadd.f32 %v1082_v40, %v1070_v8  ;;  %v4729_v8 = vor.u32 %v5860_v25, %v4726_v12  ;;  %v4798_v19 = vld [vmem:[#allocation9 + $0xf8] sm:$0xf0]  ;;  %v4681_v12 = vor.u32 %v5848_v63, %v4678_v61  ;;  %v4822_v61 = vld [vmem:[#allocation9 + $0x130] sm:$0xf0] }
 0x6b3   :  { %v4801_v40 = vor.u32 %v5877_v49, %v4798_v19  ;;  %v4734_v19 = vld [vmem:[#allocation9 + $0x78] sm:$0xf0] }
 0x6b4   :  { %v4661_v29 = vmul.f32 -1.442695, %v1057_v24  ;;  %v4662_v1 = vmul.f32 -1.442695, %v1083_v26  ;;  %1556 = vmatpush.bf16.msrb.mxu1 %v4729_v8  ;;  %v5861_v8 = vld [vmem:[#allocation9 + $0x6c] sm:$0xf] }
 0x6b5   :  { %1604 = vmatpush.bf16.msra.mxu0 %v4801_v40  ;;  %v4718_v40 = vld [vmem:[#allocation9 + $0x58] sm:$0xf0] }
 0x6b6   :  { %6168 = vpow2.f32 %v4661_v29  ;;  %v4710_v29 = vld [vmem:[#allocation9 + $0x50] sm:$0xf0] }
 0x6b7   :  { %6170 = vpow2.f32 %v4662_v1  ;;  %v4713_v34 = vor.u32 %v5856_v28, %v4710_v29  ;;  %v5849_v29 = vld [vmem:[#allocation9 + $0xc] sm:$0xf] }
 0x6b9   :  { %v1058_v39 = vpop.f32.mrf.mxu2  ;;  %v1084_v15 = vpop.f32.mrf.mxu3  ;;  %1605 = vmatpush.bf16.msra.mxu0 %v4785_v38  ;;  %1557 = vmatpush.bf16.msrb.mxu1 %v4713_v34 }
 0x6ba   :  { %v4694_v39 = vld [vmem:[#allocation9 + $0x30] sm:$0xf0]  ;;  %v5869_v15 = vld [vmem:[#allocation9 + $0xac] sm:$0xf] }
 0x6bb   :  { %v4769_v46 = vor.u32 %v5869_v15, %v4766_v44 }
 0x6bc   :  { %v6169_v45 = vpop.eup %6168 }
 0x6bd   :  { %v6171_v51 = vpop.eup %6170  ;;  %v6646_v53 = vadd.f32 1.0, %v6169_v45  ;;  %1606 = vmatpush.bf16.msra.mxu0 %v4769_v46 }
 0x6be   :  { %v6648_v55 = vadd.f32 1.0, %v6171_v51  ;;  %v4697_v51 = vor.u32 %v5852_v9, %v4694_v39 }
 0x6bf   :  { %6172 = vrcp.f32 %v6646_v53  ;;  %v1151_v36 = vand.u32 2147483647, %v6646_v53  ;;  %v1153_v27 = vand.u32 2147483648, %v6646_v53  ;;  %vm1147_vm6 = vweird.f32 %v6646_v53 }
 0x6c0   :  { %6174 = vrcp.f32 %v6648_v55  ;;  %v1172_v11 = vand.u32 2147483648, %v6648_v55  ;;  %v1170_v42 = vand.u32 2147483647, %v6648_v55  ;;  %vm1166_vm8 = vweird.f32 %v6648_v55  ;;  %1558 = vmatpush.bf16.msrb.mxu1 %v4697_v51  ;;  %v5886_v51 = vld [vmem:[#allocation9 + $0x12c] sm:$0xf0] }
 0x6c1   :  { %v1108_v60 = vpop.f32.mrf.mxu2  ;;  %v6652_v62 = vpop.f32.mrf.mxu3  ;;  %v1154_v48 = vor.u32 1.1754944e-38, %v1153_v27  ;;  %vm1152_vm11 = vcmp.eq.f32.partialorder %v1151_v36, 8.507059e+37  ;;  %1607 = vmatpush.bf16.msra.mxu0 %v4753_v7  ;;  %v5853_v36 = vld [vmem:[#allocation9 + $0x2c] sm:$0xf]  ;;  %v5880_v7 = vld [vmem:[#allocation9 + $0x104] sm:$0xf] }
 0x6c2   :  { %v1109_v18 = vadd.f32 %v1108_v60, %v1096_v3  ;;  %v1173_v59 = vor.u32 1.1754944e-38, %v1172_v11  ;;  %vm1171_vm12 = vcmp.eq.f32.partialorder %v1170_v42, 8.507059e+37  ;;  %v1122_v6 = vadd.f32 %v6652_v62, %v6575_v17 }
 0x6c4   :  { %6176 = vtanh.f32 %v1109_v18  ;;  %1559 = vmatpush.bf16.msrb.mxu1 %v4681_v12 }
 0x6c5   :  { %v6173_v14 = vpop.eup %6172 }
 0x6c6   :  { %v6175_v20 = vpop.eup %6174  ;;  %v1143_v21 = vmul.f32 %v6173_v14, %v6646_v53  ;;  %vm1148_vm4 = vweird.f32 %v6173_v14 }
 0x6c7   :  { %v1162_v24 = vmul.f32 %v6175_v20, %v6648_v55  ;;  %vm1167_vm5 = vweird.f32 %v6175_v20  ;;  %vm1149_vm9 = vmor %vm1147_vm6, %vm1148_vm4 }
 0x6c8   :  { %v1144_v26 = vsub.f32 1.0, %v1143_v21  ;;  %vm1168_vm10 = vmor %vm1166_vm8, %vm1167_vm5  ;;  %v5857_v21 = vld [vmem:[#allocation9 + $0x4c] sm:$0xf] }
 0x6c9   :  { %v1163_v1 = vsub.f32 1.0, %v1162_v24  ;;  %v1110_v13 = vpop.f32.mrf.mxu2  ;;  %v1123_v32 = vpop.f32.mrf.mxu3  ;;  %v4721_v62 = vor.u32 %v5857_v21, %v4718_v40  ;;  %v4748_v21 = vld [vmem:[#allocation9 + $0x88] sm:$0xf]  ;;  %v5867_v40 = vld [vmem:[#allocation9 + $0x94] sm:$0xf0] }
 0x6ca   :  { %v1145_v33 = vmul.f32 %v6173_v14, %v1144_v26  ;;  %v6177_v0 = vpop.eup %6176 }
 0x6cb   :  { %v1164_v41 = vmul.f32 %v6175_v20, %v1163_v1  ;;  %v4686_v1 = vld [vmem:[#allocation9 + $0x18] sm:$0xf0] }
 0x6cc   :  { %v1146_v45 = vadd.f32 %v6173_v14, %v1145_v33  ;;  %v4689_v11 = vor.u32 %v5849_v29, %v4686_v1  ;;  %v5863_v1 = vld [vmem:[#allocation9 + $0x74] sm:$0xf0] }
 0x6cd   :  { %v1165_v50 = vadd.f32 %v6175_v20, %v1164_v41 }
 0x6ce   :  { %v1150_v60 = vsel %vm1149_vm9, %v6173_v14, %v1146_v45 }
 0x6cf   :  { %v1155_v53 = vsel %vm1152_vm11, %v1154_v48, %v1150_v60  ;;  %v1169_v3 = vsel %vm1168_vm10, %v6175_v20, %v1165_v50  ;;  %v4737_v20 = vor.u32 %v5861_v8, %v4734_v19  ;;  %v4820_v50 = vld [vmem:[#allocation9 + $0x120] sm:$0xf]  ;;  %v5884_v60 = vld [vmem:[#allocation9 + $0x124] sm:$0xf]  ;;  %v4830_v8 = vld [vmem:[#allocation9 + $0x138] sm:$0xf0] }
 0x6d0   :  { %v1174_v5 = vsel %vm1171_vm12, %v1173_v59, %v1169_v3  ;;  %v1197_v55 = vmul.f32 %v6177_v0, %v1155_v53  ;;  %v4821_v54 = vor.u32 %v5886_v51, %v4820_v50  ;;  %v5882_v59 = vld [vmem:[#allocation9 + $0x10c] sm:$0xf0]  ;;  %v4796_v0 = vld [vmem:[#allocation9 + $0xe8] sm:$0xf]  ;;  %v5879_v53 = vld [vmem:[#allocation9 + $0xf4] sm:$0xf0]  ;;  %v4825_v3 = vor.u32 %v5884_v60, %v4822_v61 }
 0x6d1   :  { %v1196_v58 = vmul.f32 %v1174_v5, %v6583_v43  ;;  %v1134_v25 = vpop.f32.mrf.mxu2  ;;  %1608 = vmatpush.bf16.msra.mxu0 %v4737_v20  ;;  %v4702_v43 = vld [vmem:[#allocation9 + $0x38] sm:$0xf0]  ;;  %v4805_v63 = vor.u32 %v5882_v59, %v4804_v57  ;;  %v4797_v5 = vor.u32 %v5879_v53, %v4796_v0  ;;  %v5888_v61 = vld [vmem:[#allocation7] sm:$0xff]  ;;  %v4965_v53 = vld [vmem:[#allocation9 + $0xe0] sm:$0xf] }
 0x6d2   :  { %v1135_v49 = vadd.f32 %v1134_v25, %v1122_v6  ;;  %v4705_v27 = vor.u32 %v5853_v36, %v4702_v43  ;;  %1545 = vmatpush.bf16.msrb.mxu2 %v4821_v54  ;;  %1571 = vmatpush.bf16.msra.mxu3 %v4825_v3  ;;  %v4764_v25 = vld [vmem:[#allocation9 + $0xa8] sm:$0xf]  ;;  %v4814_v36 = vld [vmem:[#allocation9 + $0x118] sm:$0xf0]  ;;  %v5920_v3 = vld [vmem:[#allocation9 + $0xec] sm:$0xf0] }
 0x6d3   :  { %v6668_v14 = vadd.f32 %v1197_v55, %v1196_v58  ;;  %v4780_v55 = vld [vmem:[#allocation9 + $0xc8] sm:$0xf]  ;;  %v4806_v58 = vld [vmem:[#allocation9 + $0x110] sm:$0xf0]  ;;  %v5889_v60 = vld [vmem:[#allocation7 + $0x8] sm:$0xff] }
 0x6d4   :  { %v4663_v18 = vmul.f32 -1.442695, %v1135_v49  ;;  %v4809_v12 = vor.u32 %v5880_v7, %v4806_v58  ;;  %v5871_v49 = vld [vmem:[#allocation9 + $0xb4] sm:$0xf0]  ;;  %v4933_v7 = vld [vmem:[#allocation9 + $0xa0] sm:$0xf] }
 0x6d5   :  { %1609 = vmatpush.bf16.msra.mxu0 %v4721_v62  ;;  %v4765_v19 = vor.u32 %v5871_v49, %v4764_v25  ;;  %v4749_v62 = vor.u32 %v5867_v40, %v4748_v21  ;;  %v5912_v58 = vld [vmem:[#allocation9 + $0xac] sm:$0xf0] }
 0x6d6   :  { %6178 = vpow2.f32 %v4663_v18  ;;  %1546 = vmatpush.bf16.msrb.mxu2 %v4805_v63  ;;  %v5885_v18 = vld [vmem:[#allocation9 + $0x12c] sm:$0xf]  ;;  %1572 = vmatpush.bf16.msra.mxu3 %v4809_v12  ;;  %v4934_v25 = vor.u32 %v5912_v58, %v4933_v7  ;;  %v4917_v12 = vld [vmem:[#allocation9 + $0x80] sm:$0xf]  ;;  %v5908_v49 = vld [vmem:[#allocation9 + $0x8c] sm:$0xf0] }
 0x6d7   :  { %v4833_v20 = vor.u32 %v5885_v18, %v4830_v8  ;;  %v5918_v18 = vld [vmem:[#allocation9 + $0xe4] sm:$0xf]  ;;  %v4967_v8 = vld [vmem:[#allocation9 + $0xf0] sm:$0xf0]  ;;  %v5904_v21 = vld [vmem:[#allocation9 + $0x6c] sm:$0xf0] }
 0x6d9   :  { %v1136_v24 = vpop.f32.mrf.mxu2  ;;  %1610 = vmatpush.bf16.msra.mxu0 %v4705_v27  ;;  %1623 = vmatpush.bf16.msra.mxu1 %v4833_v20  ;;  %v5887_v27 = vld [vmem:[#allocation9 + $0x134] sm:$0xf0]  ;;  %v4901_v20 = vld [vmem:[#allocation9 + $0x60] sm:$0xf] }
 0x6da   :  { %1578 = vmatpush.bf16.msra.mxu2 %v4797_v5  ;;  %v5881_v24 = vld [vmem:[#allocation9 + $0x10c] sm:$0xf]  ;;  %v4966_v5 = vor.u32 %v5920_v3, %v4965_v53  ;;  %v4902_v40 = vor.u32 %v5904_v21, %v4901_v20  ;;  %v4943_v20 = vld [vmem:[#allocation9 + $0xb8] sm:$0xf0] }
 0x6db   :  { %v4817_v43 = vor.u32 %v5881_v24, %v4814_v36  ;;  %v4951_v24 = vld [vmem:[#allocation9 + $0xd0] sm:$0xf0] }
 0x6dc   :  { %v6179_v26 = vpop.eup %6178 }
 0x6dd   :  { %v1180_v28 = vadd.f32 1.0, %v6179_v26  ;;  %1611 = vmatpush.bf16.msra.mxu0 %v4689_v11  ;;  %1624 = vmatpush.bf16.msra.mxu1 %v4817_v43  ;;  %v4828_v26 = vld [vmem:[#allocation9 + $0x128] sm:$0xf]  ;;  %v4885_v43 = vld [vmem:[#allocation9 + $0x40] sm:$0xf] }
 0x6de   :  { %v4829_v29 = vor.u32 %v5887_v27, %v4828_v26  ;;  %v4716_v11 = vld [vmem:[#allocation9 + $0x48] sm:$0xf]  ;;  %v5900_v26 = vld [vmem:[#allocation9 + $0x4c] sm:$0xf0] }
 0x6df   :  { %6180 = vrcp.f32 %v1180_v28  ;;  %v1192_v30 = vand.u32 2147483648, %v1180_v28  ;;  %v1190_v33 = vand.u32 2147483647, %v1180_v28  ;;  %vm1186_vm14 = vweird.f32 %v1180_v28 }
 0x6e0   :  { %6182 = vtanh.f32 %v6668_v14  ;;  %1597 = vmatpush.bf16.msrb.mxu3 %v4829_v29  ;;  %v4886_v27 = vor.u32 %v5900_v26, %v4885_v43  ;;  %v4935_v29 = vld [vmem:[#allocation9 + $0xb0] sm:$0xf0]  ;;  %v5907_v26 = vld [vmem:[#allocation9 + $0x8c] sm:$0xf] }
 0x6e1   :  { %v1193_v9 = vor.u32 1.1754944e-38, %v1192_v30  ;;  %vm1191_vm2 = vcmp.eq.f32.partialorder %v1190_v33, 8.507059e+37  ;;  %v5883_v30 = vld [vmem:[#allocation9 + $0x114] sm:$0xf0]  ;;  %v4855_v43 = vld [vmem:[#allocation9 + $0x10] sm:$0xf0] }
 0x6e5   :  { %v6181_v13 = vpop.eup %6180 }
 0x6e6   :  { %v1182_v32 = vmul.f32 %v6181_v13, %v1180_v28  ;;  %vm1187_vm13 = vweird.f32 %v6181_v13  ;;  %v6183_v15 = vpop.eup %6182  ;;  %v4732_v28 = vld [vmem:[#allocation9 + $0x68] sm:$0xf] }
 0x6e7   :  { %vm1188_vm15 = vmor %vm1186_vm14, %vm1187_vm13 }
 0x6e8   :  { %v1183_v34 = vsub.f32 1.0, %v1182_v32  ;;  %v4733_v32 = vor.u32 %v5863_v1, %v4732_v28  ;;  %v5910_v28 = vld [vmem:[#allocation9 + $0xa4] sm:$0xf] }
 0x6e9   :  { %v4938_v1 = vor.u32 %v5910_v28, %v4935_v29  ;;  %v4927_v29 = vld [vmem:[#allocation9 + $0x98] sm:$0xf0] }
 0x6ea   :  { %v1184_v37 = vmul.f32 %v6181_v13, %v1183_v34  ;;  %v4812_v34 = vld [vmem:[#allocation9 + $0x108] sm:$0xf] }
 0x6ec   :  { %v1185_v38 = vadd.f32 %v6181_v13, %v1184_v37  ;;  %v4813_v37 = vor.u32 %v5883_v30, %v4812_v34  ;;  %v5906_v30 = vld [vmem:[#allocation9 + $0x84] sm:$0xf] }
 0x6ee   :  { %v1189_v39 = vsel %vm1188_vm15, %v6181_v13, %v1185_v38  ;;  %v5859_v13 = vld [vmem:[#allocation9 + $0x54] sm:$0xf0]  ;;  %1598 = vmatpush.bf16.msrb.mxu3 %v4813_v37  ;;  %v4919_v37 = vld [vmem:[#allocation9 + $0x90] sm:$0xf0] }
 0x6ef   :  { %v1194_v41 = vsel %vm1191_vm2, %v1193_v9, %v1189_v39  ;;  %v4717_v33 = vor.u32 %v5859_v13, %v4716_v11  ;;  %v4700_v39 = vld [vmem:[#allocation9 + $0x28] sm:$0xf]  ;;  %v4869_v11 = vld [vmem:[#allocation9 + $0x20] sm:$0xf]  ;;  %v5896_v13 = vld [vmem:[#allocation9 + $0x2c] sm:$0xf0] }
 0x6f0   :  { %v6671_v42 = vmul.f32 %v6183_v15, %v1194_v41  ;;  %v5855_v15 = vld [vmem:[#allocation9 + $0x34] sm:$0xf0]  ;;  %v4870_v34 = vor.u32 %v5896_v13, %v4869_v11  ;;  %v4930_v13 = vor.u32 %v5907_v26, %v4927_v29 }
 0x6f1   :  { %v4701_v41 = vor.u32 %v5855_v15, %v4700_v39  ;;  %v4922_v39 = vor.u32 %v5906_v30, %v4919_v37  ;;  %v4911_v30 = vld [vmem:[#allocation9 + $0x78] sm:$0xf0] }
 0x6f2   :  { %v6675_v44 = vpack.c.bf16 %v6671_v42, %v6671_v42 }
 0x6f4   :  { %1534 = vmatmul.bf16.vlgmr.msrb.gmra.mxu0 %v6675_v44  ;;  %1560 = vmatmul.bf16.vlgmr.msrb.gmra.mxu1 %v6675_v44 }
 0x704   :  { %1612 = vmatmul.bf16.vlgmr.msra.gmra.mxu0 %v6675_v44 }
 0x714   :  { %v1274_v45 = vpop.permute.xlu1 %1273 }
 0x715   :  { %v1276_v46 = vmul.f32 %v1274_v45, %v6627_v52  ;;  %v5875_v52 = vld [vmem:[#allocation9 + $0xd4] sm:$0xf0]  ;;  %v4684_v45 = vld [vmem:[#allocation9 + $0x8] sm:$0xf] }
 0x716   :  { %v4781_v6 = vor.u32 %v5875_v52, %v4780_v55  ;;  %v4949_v55 = vld [vmem:[#allocation9 + $0xc0] sm:$0xf]  ;;  %v5916_v52 = vld [vmem:[#allocation9 + $0xcc] sm:$0xf0] }
 0x717   :  { %v1695_v48 = vpack.c.bf16 %v1276_v46, %v1276_v46  ;;  %1278 = vrot.lane.b32.xlu0 %v1276_v46, %s6431_s21  ;;  %v5851_v46 = vld [vmem:[#allocation9 + $0x14] sm:$0xf0] }
 0x718   :  { %1579 = vmatpush.bf16.msra.mxu2 %v4781_v6  ;;  %v4950_v6 = vor.u32 %v5916_v52, %v4949_v55  ;;  %v5898_v55 = vld [vmem:[#allocation9 + $0x44] sm:$0xf]  ;;  %v4887_v52 = vld [vmem:[#allocation9 + $0x50] sm:$0xf0] }
 0x719   :  { %1701 = vrot.lane.b32.xlu1 %v1695_v48, %s6431_s21  ;;  %v4685_v48 = vor.u32 %v5851_v46, %v4684_v45  ;;  %v5892_v45 = vld [vmem:[#allocation9 + $0xc] sm:$0xf0] }
 0x71c   :  { %1580 = vmatpush.bf16.msra.mxu2 %v4765_v19  ;;  %v4970_v19 = vor.u32 %v5918_v18, %v4967_v8  ;;  %v4871_v18 = vld [vmem:[#allocation9 + $0x30] sm:$0xf0]  ;;  %v5911_v8 = vld [vmem:[#allocation9 + $0xac] sm:$0xf] }
 0x720   :  { %1581 = vmatpush.bf16.msra.mxu2 %v4749_v62  ;;  %v5914_v62 = vld [vmem:[#allocation9 + $0xc4] sm:$0xf] }
 0x721   :  { %v4954_v36 = vor.u32 %v5914_v62, %v4951_v24  ;;  %v4946_v62 = vor.u32 %v5911_v8, %v4943_v20 }
 0x724   :  { %1582 = vmatpush.bf16.msra.mxu2 %v4733_v32 }
 0x728   :  { %1583 = vmatpush.bf16.msra.mxu2 %v4717_v33 }
 0x72c   :  { %1584 = vmatpush.bf16.msra.mxu2 %v4701_v41  ;;  %v4853_v41 = vld [vmem:[#allocation9] sm:$0xf] }
 0x730   :  { %1585 = vmatpush.bf16.msra.mxu2 %v4685_v48  ;;  %v4854_v48 = vor.u32 %v5892_v45, %v4853_v41 }
 0x771   :  { %v6683_v38 = vpop.f32.mrf.mxu0  ;;  %v6685_v9 = vpop.f32.mrf.mxu1 }
 0x779   :  { %v1537_v50 = vpop.f32.mrf.mxu0  ;;  %v1563_v51 = vpop.f32.mrf.mxu1 }
 0x77a   :  { %v5902_v50 = vld [vmem:[#allocation9 + $0x64] sm:$0xf]  ;;  %v4903_v51 = vld [vmem:[#allocation9 + $0x70] sm:$0xf0] }
 0x781   :  { %v1613_v54 = vpop.f32.mrf.mxu0 }
 0x782   :  { %v1614_v32 = vadd.f32 %v1613_v54, %v6575_v17  ;;  %v1562_v54 = vadd.f32 %v6685_v9, %v6565_v47  ;;  %v4959_v9 = vld [vmem:[#allocation9 + $0xd8] sm:$0xf0] }
 0x789   :  { %v1615_v57 = vpop.f32.mrf.mxu0  ;;  %v1279_v59 = vpop.permute.xlu0 %1278 }
 0x78a   :  { %v1282_v63 = vpack.c.bf16 %v1279_v59, %v1279_v59  ;;  %v1536_v57 = vadd.f32 %v6683_v38, %v6547_v2  ;;  %v4906_v59 = vor.u32 %v5902_v50, %v4903_v51 }
 0x78b   :  { %v1702_v0 = vpop.permute.xlu1 %1701 }
 0x78c   :  { %4834 = vmatmul.msk.bf16.vlgmr.msrb.gmra.mxu2 %vm238_vm7, %v1282_v63  ;;  %4835 = vmatmul.msk.bf16.vlgmr.msra.gmra.mxu3 %vm238_vm7, %v1282_v63 }
 0x78d   :  { %4837 = vmatmul.msk.bf16.vlgmr.msra.gmra.mxu1 %vm238_vm7, %v1282_v63  ;;  %1724 = vmatpush.bf16.msra.mxu3 %v5889_v60  ;;  %v5919_v60 = vld [vmem:[#allocation9 + $0xec] sm:$0xf] }
 0x78e   :  { %2018 = vmatpush.bf16.msrb.mxu2 %v4966_v5 }
 0x791   :  { %1725 = vmatpush.bf16.msra.mxu3 %v5888_v61 }
 0x792   :  { %2019 = vmatpush.bf16.msrb.mxu2 %v4950_v6  ;;  %v5915_v6 = vld [vmem:[#allocation9 + $0xcc] sm:$0xf] }
 0x796   :  { %2020 = vmatpush.bf16.msrb.mxu2 %v4934_v25  ;;  %v4890_v25 = vor.u32 %v5898_v55, %v4887_v52 }
 0x79c   :  { %1586 = vmatmul.bf16.vlgmr.msra.gmra.mxu2 %v6675_v44  ;;  %4836 = vmatmul.msk.bf16.vlgmr.msrb.gmra.mxu3 %vm238_vm7, %v1282_v63  ;;  %v4918_v44 = vor.u32 %v5908_v49, %v4917_v12  ;;  %v4975_v63 = vld [vmem:[#allocation9 + $0xf8] sm:$0xf0]  ;;  %v4962_v12 = vor.u32 %v5915_v6, %v4959_v9  ;;  %v5891_v6 = vld [vmem:[#allocation9 + $0xc] sm:$0xf] }
 0x79d   :  { %2044 = vmatpush.bf16.msrb.mxu3 %v4970_v19  ;;  %v4978_v53 = vor.u32 %v5919_v60, %v4975_v63 }
 0x79e   :  { %2021 = vmatpush.bf16.msrb.mxu2 %v4918_v44  ;;  %v5894_v44 = vld [vmem:[#allocation9 + $0x24] sm:$0xf] }
 0x79f   :  { %v4874_v19 = vor.u32 %v5894_v44, %v4871_v18 }
 0x7a1   :  { %2045 = vmatpush.bf16.msrb.mxu3 %v4954_v36  ;;  %v5890_v36 = vld [vmem:[#allocation9 + $0x4] sm:$0xf] }
 0x7a2   :  { %2022 = vmatpush.bf16.msrb.mxu2 %v4902_v40  ;;  %v4858_v28 = vor.u32 %v5890_v36, %v4855_v43 }
 0x7a5   :  { %2046 = vmatpush.bf16.msrb.mxu3 %v4938_v1 }
 0x7a6   :  { %2023 = vmatpush.bf16.msrb.mxu2 %v4886_v27 }
 0x7a9   :  { %2047 = vmatpush.bf16.msrb.mxu3 %v4922_v39  ;;  %v5899_v39 = vld [vmem:[#allocation9 + $0x4c] sm:$0xf] }
 0x7aa   :  { %2024 = vmatpush.bf16.msrb.mxu2 %v4870_v34  ;;  %v5903_v34 = vld [vmem:[#allocation9 + $0x6c] sm:$0xf] }
 0x7ab   :  { %v4914_v45 = vor.u32 %v5903_v34, %v4911_v30 }
 0x7ac   :  { %4849 = vmatmul.msk.bf16.vlgmr.msra.gmra.mxu3 %vm238_vm7, %v1702_v0 }
 0x7ad   :  { %2048 = vmatpush.bf16.msrb.mxu3 %v4906_v59 }
 0x7ae   :  { %2025 = vmatpush.bf16.msrb.mxu2 %v4854_v48 }
 0x7b1   :  { %2049 = vmatpush.bf16.msrb.mxu3 %v4890_v25 }
 0x7b2   :  { %2096 = vmatpush.bf16.msra.mxu2 %v4978_v53 }
 0x7b5   :  { %2050 = vmatpush.bf16.msrb.mxu3 %v4874_v19 }
 0x7b6   :  { %2097 = vmatpush.bf16.msra.mxu2 %v4962_v12 }
 0x7b9   :  { %2051 = vmatpush.bf16.msrb.mxu3 %v4858_v28 }
 0x7ba   :  { %2098 = vmatpush.bf16.msra.mxu2 %v4946_v62 }
 0x7be   :  { %2099 = vmatpush.bf16.msra.mxu2 %v4930_v13 }
 0x7c2   :  { %2100 = vmatpush.bf16.msra.mxu2 %v4914_v45 }
 0x80a   :  { %v1626_v33 = vpop.f32.mrf.mxu1 }
 0x80b   :  { %v1627_v15 = vadd.f32 %v1626_v33, %v1614_v32 }
 0x80d   :  { %v4840_v46 = vmul.f32 -1.442695, %v1627_v15  ;;  %v4895_v15 = vld [vmem:[#allocation9 + $0x58] sm:$0xf0] }
 0x80e   :  { %v4898_v48 = vor.u32 %v5899_v39, %v4895_v15 }
 0x80f   :  { %6184 = vpow2.f32 %v4840_v46  ;;  %v1548_v61 = vpop.f32.mrf.mxu2  ;;  %v1574_v0 = vpop.f32.mrf.mxu3 }
 0x810   :  { %v1549_v3 = vadd.f32 %v1548_v61, %v1536_v57  ;;  %v1575_v5 = vadd.f32 %v1574_v0, %v1562_v54  ;;  %v5895_v57 = vld [vmem:[#allocation9 + $0x2c] sm:$0xf]  ;;  %v4879_v54 = vld [vmem:[#allocation9 + $0x38] sm:$0xf0]  ;;  %2101 = vmatpush.bf16.msra.mxu2 %v4898_v48 }
 0x811   :  { %v4882_v53 = vor.u32 %v5895_v57, %v4879_v54 }
 0x812   :  { %v4838_v7 = vmul.f32 -1.442695, %v1549_v3  ;;  %v4839_v38 = vmul.f32 -1.442695, %v1575_v5  ;;  %v1628_v58 = vpop.f32.mrf.mxu1 }
 0x814   :  { %6186 = vpow2.f32 %v4838_v7  ;;  %v4863_v7 = vld [vmem:[#allocation9 + $0x18] sm:$0xf0]  ;;  %2102 = vmatpush.bf16.msra.mxu2 %v4882_v53 }
 0x815   :  { %v6185_v49 = vpop.eup %6184  ;;  %6188 = vpow2.f32 %v4839_v38  ;;  %v4866_v18 = vor.u32 %v5891_v6, %v4863_v7 }
 0x816   :  { %v6698_v24 = vadd.f32 1.0, %v6185_v49 }
 0x817   :  { %v1550_v21 = vpop.f32.mrf.mxu2  ;;  %v1576_v40 = vpop.f32.mrf.mxu3 }
 0x818   :  { %6190 = vrcp.f32 %v6698_v24  ;;  %2103 = vmatpush.bf16.msra.mxu2 %v4866_v18  ;;  %vm1678_vm11 = vweird.f32 %v6698_v24  ;;  %v1682_v34 = vand.u32 2147483647, %v6698_v24  ;;  %v4981_v18 = vld [vmem:[#allocation9 + $0x100] sm:$0xf] }
 0x81a   :  { %v6187_v27 = vpop.eup %6186  ;;  %vm1683_vm13 = vcmp.eq.f32.partialorder %v1682_v34, 8.507059e+37 }
 0x81b   :  { %v6189_v1 = vpop.eup %6188  ;;  %v1633_v11 = vadd.f32 1.0, %v6187_v27 }
 0x81c   :  { %v1652_v32 = vadd.f32 1.0, %v6189_v1 }
 0x81d   :  { %6192 = vrcp.f32 %v1633_v11  ;;  %v1645_v5 = vand.u32 2147483648, %v1633_v11  ;;  %v1643_v25 = vand.u32 2147483647, %v1633_v11  ;;  %vm1639_vm3 = vweird.f32 %v1633_v11 }
 0x81e   :  { %6194 = vrcp.f32 %v1652_v32  ;;  %v6702_v46 = vpop.eup %6190  ;;  %v1664_v38 = vand.u32 2147483648, %v1652_v32  ;;  %v1662_v12 = vand.u32 2147483647, %v1652_v32  ;;  %vm1658_vm4 = vweird.f32 %v1652_v32 }
 0x81f   :  { %v1587_v37 = vpop.f32.mrf.mxu2  ;;  %v1600_v33 = vpop.f32.mrf.mxu3  ;;  %v1674_v61 = vmul.f32 %v6702_v46, %v6698_v24  ;;  %v1646_v8 = vor.u32 1.1754944e-38, %v1645_v5  ;;  %vm1644_vm8 = vcmp.eq.f32.partialorder %v1643_v25, 8.507059e+37  ;;  %vm1679_vm10 = vweird.f32 %v6702_v46 }
 0x820   :  { %v1588_v41 = vadd.f32 %v1587_v37, %v6557_v22  ;;  %v1665_v20 = vor.u32 1.1754944e-38, %v1664_v38  ;;  %vm1663_vm9 = vcmp.eq.f32.partialorder %v1662_v12, 8.507059e+37  ;;  %vm1680_vm12 = vmor %vm1678_vm11, %vm1679_vm10 }
 0x821   :  { %v1675_v49 = vsub.f32 1.0, %v1674_v61 }
 0x822   :  { %v1601_v51 = vadd.f32 %v1600_v33, %v1588_v41 }
 0x823   :  { %v6193_v50 = vpop.eup %6192  ;;  %v1676_v43 = vmul.f32 %v6702_v46, %v1675_v49  ;;  %v4997_v49 = vld [vmem:[#allocation9 + $0x120] sm:$0xf] }
 0x824   :  { %v6195_v59 = vpop.eup %6194  ;;  %v1635_v60 = vmul.f32 %v6193_v50, %v1633_v11  ;;  %6196 = vtanh.f32 %v1601_v51  ;;  %vm1640_vm0 = vweird.f32 %v6193_v50 }
 0x825   :  { %v1654_v63 = vmul.f32 %v6195_v59, %v1652_v32  ;;  %vm1659_vm1 = vweird.f32 %v6195_v59  ;;  %vm1641_vm5 = vmor %vm1639_vm3, %vm1640_vm0  ;;  %v1677_v13 = vadd.f32 %v6702_v46, %v1676_v43  ;;  %v1684_v32 = vand.u32 2147483648, %v6698_v24  ;;  %v4999_v43 = vld [vmem:[#allocation9 + $0x130] sm:$0xf0] }
 0x826   :  { %v1636_v0 = vsub.f32 1.0, %v1635_v60  ;;  %vm1660_vm6 = vmor %vm1658_vm4, %vm1659_vm1 }
 0x827   :  { %v1655_v3 = vsub.f32 1.0, %v1654_v63  ;;  %v1589_v55 = vpop.f32.mrf.mxu2  ;;  %v1602_v52 = vpop.f32.mrf.mxu3 }
 0x828   :  { %v1637_v58 = vmul.f32 %v6193_v50, %v1636_v0 }
 0x829   :  { %v1656_v9 = vmul.f32 %v6195_v59, %v1655_v3 }
 0x82a   :  { %v1638_v44 = vadd.f32 %v6193_v50, %v1637_v58  ;;  %v6197_v40 = vpop.eup %6196 }
 0x82b   :  { %v1657_v19 = vadd.f32 %v6195_v59, %v1656_v9 }
 0x82c   :  { %v1642_v21 = vsel %vm1641_vm5, %v6193_v50, %v1638_v44  ;;  %v5928_v44 = vld [vmem:[#allocation9 + $0x12c] sm:$0xf0] }
 0x82d   :  { %v1647_v62 = vsel %vm1644_vm8, %v1646_v8, %v1642_v21  ;;  %v1661_v36 = vsel %vm1660_vm6, %v6195_v59, %v1657_v19  ;;  %v4998_v8 = vor.u32 %v5928_v44, %v4997_v49  ;;  %v5924_v19 = vld [vmem:[#allocation9 + $0x10c] sm:$0xf0]  ;;  %v5921_v21 = vld [vmem:[#allocation9 + $0xf4] sm:$0xf0] }
 0x82e   :  { %v1666_v26 = vsel %vm1663_vm9, %v1665_v20, %v1661_v36  ;;  %v1689_v27 = vmul.f32 %v6197_v40, %v1647_v62  ;;  %v4973_v20 = vld [vmem:[#allocation9 + $0xe8] sm:$0xf]  ;;  %v4982_v62 = vor.u32 %v5924_v19, %v4981_v18  ;;  %v5929_v36 = vld [vmem:[#allocation9 + $0x134] sm:$0xf0] }
 0x82f   :  { %v1688_v28 = vmul.f32 %v1666_v26, %v6668_v14  ;;  %v1727_v29 = vpop.f32.mrf.mxu3  ;;  %v1681_v14 = vsel %vm1680_vm12, %v6702_v46, %v1677_v13  ;;  %v5005_v40 = vld [vmem:[#allocation9 + $0x128] sm:$0xf]  ;;  %2037 = vmatpush.bf16.msrb.mxu1 %v4998_v8  ;;  %v4974_v26 = vor.u32 %v5921_v21, %v4973_v20  ;;  %v5917_v13 = vld [vmem:[#allocation9 + $0xd4] sm:$0xf0]  ;;  %v5930_v20 = vld [vmem:[#allocation7] sm:$0xff] }
 0x830   :  { %v1731_v1 = vadd.f32 %v1727_v29, %v6618_v31  ;;  %v1685_v31 = vor.u32 1.1754944e-38, %v1684_v32  ;;  %v5922_v29 = vld [vmem:[#allocation9 + $0x104] sm:$0xf]  ;;  %v4983_v32 = vld [vmem:[#allocation9 + $0x110] sm:$0xf0] }
 0x831   :  { %v6709_v11 = vadd.f32 %v1689_v27, %v1688_v28  ;;  %v5006_v27 = vor.u32 %v5929_v36, %v5005_v40  ;;  %v4986_v34 = vor.u32 %v5922_v29, %v4983_v32  ;;  %v4861_v18 = vld [vmem:[#allocation9 + $0x8] sm:$0xf]  ;;  %v5893_v8 = vld [vmem:[#allocation9 + $0x14] sm:$0xf0]  ;;  %v5142_v36 = vld [vmem:[#allocation9 + $0xe0] sm:$0xf] }
 0x832   :  { %6198 = vtanh.f32 %v1731_v1  ;;  %v1686_v39 = vsel %vm1683_vm13, %v1685_v31, %v1681_v14  ;;  %v4850_v24 = vmul.f32 -1.442695, %v1731_v1  ;;  %v4957_v1 = vld [vmem:[#allocation9 + $0xc8] sm:$0xf]  ;;  %v4862_v19 = vor.u32 %v5893_v8, %v4861_v18  ;;  %v5110_v29 = vld [vmem:[#allocation9 + $0xa0] sm:$0xf] }
 0x833   :  { %6200 = vtanh.f32 %v6709_v11  ;;  %2089 = vmatpush.bf16.msrb.mxu0 %v5006_v27  ;;  %v4989_v14 = vld [vmem:[#allocation9 + $0x108] sm:$0xf]  ;;  %2038 = vmatpush.bf16.msrb.mxu1 %v4982_v62  ;;  %v5958_v27 = vld [vmem:[#allocation9 + $0xcc] sm:$0xf0]  ;;  %v5094_v32 = vld [vmem:[#allocation9 + $0x80] sm:$0xf] }
 0x834   :  { %6202 = vpow2.f32 %v4850_v24  ;;  %v5030_v18 = vld [vmem:[#allocation9] sm:$0xf]  ;;  %v5934_v8 = vld [vmem:[#allocation9 + $0xc] sm:$0xf0] }
 0x837   :  { %v1729_v30 = vpop.f32.mrf.mxu3  ;;  %2070 = vmatpush.bf16.msra.mxu1 %v4974_v26  ;;  %v5126_v26 = vld [vmem:[#allocation9 + $0xc0] sm:$0xf] }
 0x838   :  { %v6199_v37 = vpop.eup %6198  ;;  %v5925_v30 = vld [vmem:[#allocation9 + $0x114] sm:$0xf0] }
 0x839   :  { %v6201_v33 = vpop.eup %6200  ;;  %1754 = vrot.lane.b32.xlu2 %v6199_v37, %s6423_s9  ;;  %v4990_v31 = vor.u32 %v5925_v30, %v4989_v14  ;;  %v4958_v37 = vor.u32 %v5917_v13, %v4957_v1  ;;  %v5954_v1 = vld [vmem:[#allocation9 + $0xac] sm:$0xf0]  ;;  %v5960_v14 = vld [vmem:[#allocation9 + $0xe4] sm:$0xf]  ;;  %v5144_v30 = vld [vmem:[#allocation9 + $0xf0] sm:$0xf0] }
 0x83a   :  { %v6719_v15 = vmul.f32 %v6201_v33, %v1686_v39  ;;  %v6203_v45 = vpop.eup %6202  ;;  %v4941_v33 = vld [vmem:[#allocation9 + $0xa8] sm:$0xf]  ;;  %v5913_v39 = vld [vmem:[#allocation9 + $0xb4] sm:$0xf0]  ;;  %v5111_v13 = vor.u32 %v5954_v1, %v5110_v29  ;;  %v5064_v29 = vld [vmem:[#allocation9 + $0x50] sm:$0xf0] }
 0x83b   :  { %v1735_v46 = vadd.f32 1.0, %v6203_v45  ;;  %2090 = vmatpush.bf16.msrb.mxu0 %v4990_v31  ;;  %2071 = vmatpush.bf16.msra.mxu1 %v4958_v37  ;;  %v4942_v24 = vor.u32 %v5913_v39, %v4941_v33  ;;  %v4925_v45 = vld [vmem:[#allocation9 + $0x88] sm:$0xf]  ;;  %v5147_v31 = vor.u32 %v5960_v14, %v5144_v30  ;;  %v5078_v37 = vld [vmem:[#allocation9 + $0x60] sm:$0xf] }
 0x83c   :  { %v6723_v41 = vpack.c.bf16 %v6719_v15, %v6719_v15  ;;  %v5946_v33 = vld [vmem:[#allocation9 + $0x6c] sm:$0xf0]  ;;  %v5957_v1 = vld [vmem:[#allocation9 + $0xcc] sm:$0xf]  ;;  %v5936_v14 = vld [vmem:[#allocation9 + $0x24] sm:$0xf] }
 0x83d   :  { %6204 = vrcp.f32 %v1735_v46  ;;  %v1747_v59 = vand.u32 2147483648, %v1735_v46  ;;  %vm1741_vm15 = vweird.f32 %v1735_v46  ;;  %v1745_v60 = vand.u32 2147483647, %v1735_v46  ;;  %v5048_v30 = vld [vmem:[#allocation9 + $0x30] sm:$0xf0] }
 0x83e   :  { %2026 = vmatmul.bf16.vlgmr.msrb.gmra.mxu2 %v6723_v41  ;;  %2052 = vmatmul.bf16.vlgmr.msrb.gmra.mxu3 %v6723_v41  ;;  %v5079_v39 = vor.u32 %v5946_v33, %v5078_v37  ;;  %v5120_v33 = vld [vmem:[#allocation9 + $0xb8] sm:$0xf0] }
 0x83f   :  { %v1748_v61 = vor.u32 1.1754944e-38, %v1747_v59  ;;  %vm1746_vm0 = vcmp.eq.f32.partialorder %v1745_v60, 8.507059e+37  ;;  %2072 = vmatpush.bf16.msra.mxu1 %v4942_v24  ;;  %v5905_v59 = vld [vmem:[#allocation9 + $0x74] sm:$0xf0]  ;;  %v5956_v24 = vld [vmem:[#allocation9 + $0xc4] sm:$0xf] }
 0x843   :  { %v6205_v48 = vpop.eup %6204 }
 0x844   :  { %v1737_v50 = vmul.f32 %v6205_v48, %v1735_v46  ;;  %vm1742_vm14 = vweird.f32 %v6205_v48  ;;  %v5909_v46 = vld [vmem:[#allocation9 + $0x94] sm:$0xf0] }
 0x845   :  { %vm1743_vm2 = vmor %vm1741_vm15, %vm1742_vm14 }
 0x846   :  { %v1738_v51 = vsub.f32 1.0, %v1737_v50 }
 0x848   :  { %v1739_v57 = vmul.f32 %v6205_v48, %v1738_v51 }
 0x84a   :  { %v1740_v54 = vadd.f32 %v6205_v48, %v1739_v57 }
 0x84c   :  { %v1744_v63 = vsel %vm1743_vm2, %v6205_v48, %v1740_v54  ;;  %v4926_v48 = vor.u32 %v5909_v46, %v4925_v45  ;;  %v4909_v54 = vld [vmem:[#allocation9 + $0x68] sm:$0xf]  ;;  %v5128_v45 = vld [vmem:[#allocation9 + $0xd0] sm:$0xf0] }
 0x84d   :  { %v1749_v53 = vsel %vm1746_vm0, %v1748_v61, %v1744_v63  ;;  %v4910_v60 = vor.u32 %v5905_v59, %v4909_v54  ;;  %v4893_v63 = vld [vmem:[#allocation9 + $0x48] sm:$0xf]  ;;  %v5901_v61 = vld [vmem:[#allocation9 + $0x54] sm:$0xf0]  ;;  %v5131_v46 = vor.u32 %v5956_v24, %v5128_v45  ;;  %v5051_v24 = vor.u32 %v5936_v14, %v5048_v30 }
 0x84e   :  { %2104 = vmatmul.bf16.vlgmr.msra.gmra.mxu2 %v6723_v41  ;;  %v1752_v58 = vmul.f32 %v1749_v53, %v6638_v4  ;;  %v5926_v4 = vld [vmem:[#allocation9 + $0x124] sm:$0xf]  ;;  %2073 = vmatpush.bf16.msra.mxu1 %v4926_v48 }
 0x84f   :  { %v5002_v28 = vor.u32 %v5926_v4, %v4999_v43  ;;  %v5962_v4 = vld [vmem:[#allocation9 + $0xec] sm:$0xf0] }
 0x850   :  { %v5143_v43 = vor.u32 %v5962_v4, %v5142_v36  ;;  %v5961_v4 = vld [vmem:[#allocation9 + $0xec] sm:$0xf] }
 0x851   :  { %2063 = vmatpush.bf16.msra.mxu3 %v5002_v28  ;;  %v5127_v28 = vor.u32 %v5958_v27, %v5126_v26 }
 0x852   :  { %2074 = vmatpush.bf16.msra.mxu1 %v4910_v60 }
 0x855   :  { %2064 = vmatpush.bf16.msra.mxu3 %v4986_v34  ;;  %v5950_v34 = vld [vmem:[#allocation9 + $0x8c] sm:$0xf0] }
 0x893   :  { %v1755_v0 = vpop.permute.xlu2 %1754 }
 0x894   :  { %v1757_v3 = vmul.f32 %v1755_v0, %v1749_v53  ;;  %v5931_v0 = vld [vmem:[#allocation7 + $0x8] sm:$0xff] }
 0x895   :  { %2216 = vmatpush.bf16.msra.mxu0 %v5931_v0 }
 0x896   :  { %1759 = vrot.lane.b32.xlu0 %v1757_v3, %s6431_s21  ;;  %v5927_v3 = vld [vmem:[#allocation9 + $0x12c] sm:$0xf] }
 0x899   :  { %2217 = vmatpush.bf16.msra.mxu0 %v5930_v20 }
 0x8c1   :  { %v6729_v5 = vpop.f32.mrf.mxu2  ;;  %v6731_v55 = vpop.f32.mrf.mxu3 }
 0x8c2   :  { %v2028_v48 = vadd.f32 %v6729_v5, %v6547_v2  ;;  %v2054_v5 = vadd.f32 %v6731_v55, %v6565_v47  ;;  %v5152_v55 = vld [vmem:[#allocation9 + $0xf8] sm:$0xf0] }
 0x8c3   :  { %v5155_v26 = vor.u32 %v5961_v4, %v5152_v55 }
 0x8c9   :  { %v2029_v52 = vpop.f32.mrf.mxu2  ;;  %v2055_v6 = vpop.f32.mrf.mxu3 }
 0x8ca   :  { %v4894_v52 = vor.u32 %v5901_v61, %v4893_v63  ;;  %v4877_v6 = vld [vmem:[#allocation9 + $0x28] sm:$0xf]  ;;  %v5952_v63 = vld [vmem:[#allocation9 + $0xa4] sm:$0xf]  ;;  %v5112_v61 = vld [vmem:[#allocation9 + $0xb0] sm:$0xf0] }
 0x8cb   :  { %v5115_v0 = vor.u32 %v5952_v63, %v5112_v61 }
 0x8cc   :  { %2075 = vmatpush.bf16.msra.mxu1 %v4894_v52  ;;  %v5046_v52 = vld [vmem:[#allocation9 + $0x20] sm:$0xf] }
 0x8d1   :  { %v6733_v7 = vpop.f32.mrf.mxu2 }
 0x8d9   :  { %v2107_v38 = vpop.f32.mrf.mxu2 }
 0x8da   :  { %v5007_v38 = vld [vmem:[#allocation9 + $0x138] sm:$0xf0] }
 0x908   :  { %v1760_v25 = vpop.permute.xlu0 %1759 }
 0x909   :  { %v6736_v9 = vadd.f32 %v1760_v25, %v1752_v58  ;;  %v5897_v58 = vld [vmem:[#allocation9 + $0x34] sm:$0xf0]  ;;  %v5010_v25 = vor.u32 %v5927_v3, %v5007_v38 }
 0x90a   :  { %v4878_v44 = vor.u32 %v5897_v58, %v4877_v6  ;;  %v5938_v6 = vld [vmem:[#allocation9 + $0x2c] sm:$0xf0]  ;;  %v5948_v58 = vld [vmem:[#allocation9 + $0x84] sm:$0xf] }
 0x90b   :  { %6206 = vtanh.f32 %v6736_v9  ;;  %2115 = vmatpush.bf16.msrb.mxu3 %v5010_v25  ;;  %v5047_v38 = vor.u32 %v5938_v6, %v5046_v52  ;;  %v5096_v25 = vld [vmem:[#allocation9 + $0x90] sm:$0xf0] }
 0x90c   :  { %2076 = vmatpush.bf16.msra.mxu1 %v4878_v44 }
 0x910   :  { %2077 = vmatpush.bf16.msra.mxu1 %v4862_v19 }
 0x911   :  { %v6207_v12 = vpop.eup %6206 }
 0x912   :  { %1765 = vrot.lane.b32.xlu1 %v6207_v12, %s6423_s9  ;;  %v4991_v12 = vld [vmem:[#allocation9 + $0x118] sm:$0xf0] }
 0x984   :  { %v1766_v50 = vpop.permute.xlu1 %1765 }
 0x985   :  { %v1768_v51 = vmul.f32 %v1766_v50, %v1749_v53  ;;  %v5923_v53 = vld [vmem:[#allocation9 + $0x10c] sm:$0xf] }
 0x986   :  { %v4994_v49 = vor.u32 %v5923_v53, %v4991_v12  ;;  %v5099_v12 = vor.u32 %v5948_v58, %v5096_v25 }
 0x987   :  { %v2187_v57 = vpack.c.bf16 %v1768_v51, %v1768_v51  ;;  %1770 = vrot.lane.b32.xlu2 %v1768_v51, %s6431_s21  ;;  %v5062_v51 = vld [vmem:[#allocation9 + $0x40] sm:$0xf] }
 0x988   :  { %2116 = vmatpush.bf16.msrb.mxu3 %v4994_v49 }
 0x989   :  { %2193 = vrot.lane.b32.xlu0 %v2187_v57, %s6431_s21  ;;  %v5942_v57 = vld [vmem:[#allocation9 + $0x4c] sm:$0xf0] }
 0x98a   :  { %v5063_v60 = vor.u32 %v5942_v57, %v5062_v51  ;;  %v5949_v51 = vld [vmem:[#allocation9 + $0x8c] sm:$0xf]  ;;  %v5104_v57 = vld [vmem:[#allocation9 + $0x98] sm:$0xf0] }
 0x9e1   :  { %v1771_v21 = vpop.permute.xlu2 %1770 }
 0x9e2   :  { %v1774_v40 = vpack.c.bf16 %v1771_v21, %v1771_v21  ;;  %v5031_v21 = vor.u32 %v5934_v8, %v5030_v18 }
 0x9e4   :  { %5011 = vmatmul.msk.bf16.vlgmr.msrb.gmra.mxu1 %vm238_vm7, %v1774_v40  ;;  %5012 = vmatmul.msk.bf16.vlgmr.msra.gmra.mxu3 %vm238_vm7, %v1774_v40 }
 0x9e5   :  { %5013 = vmatmul.msk.bf16.vlgmr.msrb.gmra.mxu0 %vm238_vm7, %v1774_v40  ;;  %2510 = vmatpush.bf16.msrb.mxu1 %v5143_v43 }
 0x9e6   :  { %2536 = vmatpush.bf16.msrb.mxu0 %v5147_v31  ;;  %v5953_v31 = vld [vmem:[#allocation9 + $0xac] sm:$0xf] }
 0x9e7   :  { %v5123_v45 = vor.u32 %v5953_v31, %v5120_v33 }
 0x9e9   :  { %2511 = vmatpush.bf16.msrb.mxu1 %v5127_v28  ;;  %v5940_v28 = vld [vmem:[#allocation9 + $0x44] sm:$0xf] }
 0x9ea   :  { %2537 = vmatpush.bf16.msrb.mxu0 %v5131_v46  ;;  %v5932_v46 = vld [vmem:[#allocation9 + $0x4] sm:$0xf] }
 0x9ed   :  { %2512 = vmatpush.bf16.msrb.mxu1 %v5111_v13 }
 0x9ee   :  { %2538 = vmatpush.bf16.msrb.mxu0 %v5115_v0  ;;  %v5107_v0 = vor.u32 %v5949_v51, %v5104_v57 }
 0x9f2   :  { %2539 = vmatpush.bf16.msrb.mxu0 %v5099_v12 }
 0x9f4   :  { %2078 = vmatmul.bf16.vlgmr.msra.gmra.mxu1 %v6723_v41  ;;  %5014 = vmatmul.msk.bf16.vlgmr.msrb.gmra.mxu3 %vm238_vm7, %v1774_v40  ;;  %v5095_v41 = vor.u32 %v5950_v34, %v5094_v32  ;;  %v5944_v40 = vld [vmem:[#allocation9 + $0x64] sm:$0xf]  ;;  %v5136_v32 = vld [vmem:[#allocation9 + $0xd8] sm:$0xf0]  ;;  %v5067_v34 = vor.u32 %v5940_v28, %v5064_v29 }
 0x9f5   :  { %v5056_v28 = vld [vmem:[#allocation9 + $0x38] sm:$0xf0] }
 0x9f6   :  { %2513 = vmatpush.bf16.msrb.mxu1 %v5095_v41  ;;  %v5139_v41 = vor.u32 %v5957_v1, %v5136_v32 }
 0x9fa   :  { %2514 = vmatpush.bf16.msrb.mxu1 %v5079_v39 }
 0x9fb   :  { %v2194_v62 = vpop.permute.xlu0 %2193 }
 0x9fc   :  { %5026 = vmatmul.msk.bf16.vlgmr.msra.gmra.mxu0 %vm238_vm7, %v2194_v62  ;;  %v5080_v62 = vld [vmem:[#allocation9 + $0x70] sm:$0xf0] }
 0x9fd   :  { %v5083_v36 = vor.u32 %v5944_v40, %v5080_v62 }
 0x9fe   :  { %2515 = vmatpush.bf16.msrb.mxu1 %v5063_v60  ;;  %v2106_v60 = vadd.f32 %v6733_v7, %v6575_v17  ;;  %v5945_v7 = vld [vmem:[#allocation9 + $0x6c] sm:$0xf] }
 0x9ff   :  { %2540 = vmatpush.bf16.msrb.mxu0 %v5083_v36 }
 0xa02   :  { %2516 = vmatpush.bf16.msrb.mxu1 %v5047_v38 }
 0xa03   :  { %2541 = vmatpush.bf16.msrb.mxu0 %v5067_v34 }
 0xa06   :  { %2517 = vmatpush.bf16.msrb.mxu1 %v5031_v21 }
 0xa07   :  { %2542 = vmatpush.bf16.msrb.mxu0 %v5051_v24  ;;  %v5040_v24 = vld [vmem:[#allocation9 + $0x18] sm:$0xf0] }
 0xa0a   :  { %2588 = vmatpush.bf16.msra.mxu1 %v5155_v26  ;;  %v5937_v26 = vld [vmem:[#allocation9 + $0x2c] sm:$0xf] }
 0xa0b   :  { %v5059_v14 = vor.u32 %v5937_v26, %v5056_v28 }
 0xa0e   :  { %2589 = vmatpush.bf16.msra.mxu1 %v5139_v41 }
 0xa12   :  { %2590 = vmatpush.bf16.msra.mxu1 %v5123_v45 }
 0xa16   :  { %2591 = vmatpush.bf16.msra.mxu1 %v5107_v0 }
 0xa61   :  { %v2040_v50 = vpop.f32.mrf.mxu1 }
 0xa62   :  { %v2041_v54 = vadd.f32 %v2040_v50, %v2028_v48  ;;  %v6750_v59 = vpop.f32.mrf.mxu0  ;;  %v5032_v48 = vld [vmem:[#allocation9 + $0x10] sm:$0xf0] }
 0xa63   :  { %v5035_v61 = vor.u32 %v5932_v46, %v5032_v48 }
 0xa64   :  { %v5015_v3 = vmul.f32 -1.442695, %v2041_v54 }
 0xa65   :  { %2543 = vmatpush.bf16.msrb.mxu0 %v5035_v61 }
 0xa66   :  { %6208 = vpow2.f32 %v5015_v3 }
 0xa67   :  { %v2066_v53 = vpop.f32.mrf.mxu3 }
 0xa68   :  { %v2067_v49 = vadd.f32 %v2066_v53, %v2054_v5 }
 0xa69   :  { %v2042_v44 = vpop.f32.mrf.mxu1 }
 0xa6a   :  { %v5016_v19 = vmul.f32 -1.442695, %v2067_v49  ;;  %v2094_v20 = vpop.f32.mrf.mxu0  ;;  %v5088_v49 = vld [vmem:[#allocation9 + $0x78] sm:$0xf0] }
 0xa6b   :  { %v5091_v8 = vor.u32 %v5945_v7, %v5088_v49  ;;  %v5072_v20 = vld [vmem:[#allocation9 + $0x58] sm:$0xf0] }
 0xa6c   :  { %v6209_v43 = vpop.eup %6208  ;;  %6210 = vpow2.f32 %v5016_v19  ;;  %v5941_v19 = vld [vmem:[#allocation9 + $0x4c] sm:$0xf] }
 0xa6d   :  { %v6754_v27 = vadd.f32 1.0, %v6209_v43  ;;  %2592 = vmatpush.bf16.msra.mxu1 %v5091_v8  ;;  %v5075_v4 = vor.u32 %v5941_v19, %v5072_v20 }
 0xa6f   :  { %6212 = vrcp.f32 %v6754_v27  ;;  %v2068_v13 = vpop.f32.mrf.mxu3  ;;  %v2137_v62 = vand.u32 2147483648, %v6754_v27  ;;  %vm2131_vm3 = vweird.f32 %v6754_v27  ;;  %v2135_v36 = vand.u32 2147483647, %v6754_v27 }
 0xa71   :  { %v2079_v37 = vpop.f32.mrf.mxu1  ;;  %vm2136_vm8 = vcmp.eq.f32.partialorder %v2135_v36, 8.507059e+37  ;;  %2593 = vmatpush.bf16.msra.mxu1 %v5075_v4 }
 0xa72   :  { %v6211_v39 = vpop.eup %6210  ;;  %v2080_v3 = vadd.f32 %v2079_v37, %v6557_v22 }
 0xa73   :  { %v6757_v50 = vadd.f32 1.0, %v6211_v39  ;;  %v5933_v39 = vld [vmem:[#allocation9 + $0xc] sm:$0xf] }
 0xa74   :  { %v2093_v18 = vadd.f32 %v6750_v59, %v2080_v3  ;;  %v5043_v57 = vor.u32 %v5933_v39, %v5040_v24  ;;  %v5968_v24 = vld [vmem:[#allocation9 + $0x124] sm:$0xf] }
 0xa75   :  { %v6213_v54 = vpop.eup %6212  ;;  %6214 = vrcp.f32 %v6757_v50  ;;  %v2156_v59 = vand.u32 2147483648, %v6757_v50  ;;  %v2154_v1 = vand.u32 2147483647, %v6757_v50  ;;  %vm2150_vm6 = vweird.f32 %v6757_v50  ;;  %2594 = vmatpush.bf16.msra.mxu1 %v5059_v14 }
 0xa76   :  { %v2127_v63 = vmul.f32 %v6213_v54, %v6754_v27  ;;  %vm2132_vm1 = vweird.f32 %v6213_v54  ;;  %v2138_v27 = vor.u32 1.1754944e-38, %v2137_v62 }
 0xa77   :  { %v2118_v52 = vpop.f32.mrf.mxu3  ;;  %vm6774_vm4 = vmor %vm2131_vm3, %vm2132_vm1  ;;  %v2157_v31 = vor.u32 1.1754944e-38, %v2156_v59  ;;  %vm2155_vm10 = vcmp.eq.f32.partialorder %v2154_v1, 8.507059e+37 }
 0xa78   :  { %v2128_v6 = vsub.f32 1.0, %v2127_v63  ;;  %v2119_v5 = vadd.f32 %v2118_v52, %v2106_v60 }
 0xa79   :  { %v2081_v38 = vpop.f32.mrf.mxu1  ;;  %v2219_v58 = vpop.f32.mrf.mxu0  ;;  %2595 = vmatpush.bf16.msra.mxu1 %v5043_v57  ;;  %v5964_v57 = vld [vmem:[#allocation9 + $0x104] sm:$0xf] }
 0xa7a   :  { %v2129_v25 = vmul.f32 %v6213_v54, %v2128_v6  ;;  %v5017_v53 = vmul.f32 -1.442695, %v2119_v5  ;;  %v6765_v12 = vadd.f32 %v2219_v58, %v6550_v10 }
 0xa7b   :  { %v6215_v44 = vpop.eup %6214 }
 0xa7c   :  { %v2146_v21 = vmul.f32 %v6215_v44, %v6757_v50  ;;  %v2130_v40 = vadd.f32 %v6213_v54, %v2129_v25  ;;  %6216 = vpow2.f32 %v5017_v53  ;;  %vm2151_vm5 = vweird.f32 %v6215_v44 }
 0xa7d   :  { %6218 = vtanh.f32 %v6765_v12  ;;  %vm2152_vm9 = vmor %vm2150_vm6, %vm2151_vm5  ;;  %v5027_v7 = vmul.f32 -1.442695, %v6765_v12 }
 0xa7e   :  { %v2147_v10 = vsub.f32 1.0, %v2146_v21  ;;  %6220 = vtanh.f32 %v2093_v18  ;;  %v2134_v13 = vsel %vm6774_vm4, %v6213_v54, %v2130_v40 }
 0xa7f   :  { %v2120_v43 = vpop.f32.mrf.mxu3  ;;  %v2139_v37 = vsel %vm2136_vm8, %v2138_v27, %v2134_v13 }
 0xa80   :  { %v2148_v29 = vmul.f32 %v6215_v44, %v2147_v10 }
 0xa81   :  { %v2221_v32 = vpop.f32.mrf.mxu0 }
 0xa82   :  { %v6217_v34 = vpop.eup %6216  ;;  %v2149_v41 = vadd.f32 %v6215_v44, %v2148_v29 }
 0xa83   :  { %v6219_v30 = vpop.eup %6218  ;;  %v2164_v33 = vadd.f32 1.0, %v6217_v34 }
 0xa84   :  { %v2153_v45 = vsel %vm2152_vm9, %v6215_v44, %v2149_v41  ;;  %2246 = vrot.lane.b32.xlu1 %v6219_v30, %s6423_s9  ;;  %v6221_v46 = vpop.eup %6220 }
 0xa85   :  { %v2158_v48 = vsel %vm2155_vm10, %v2157_v31, %v2153_v45  ;;  %6222 = vrcp.f32 %v2164_v33  ;;  %v2181_v50 = vmul.f32 %v6221_v46, %v2139_v37  ;;  %v2176_v0 = vand.u32 2147483648, %v2164_v33  ;;  %v5174_v31 = vld [vmem:[#allocation9 + $0x120] sm:$0xf]  ;;  %v5970_v37 = vld [vmem:[#allocation9 + $0x12c] sm:$0xf0] }
 0xa86   :  { %v2180_v51 = vmul.f32 %v2158_v48, %v6709_v11  ;;  %v2174_v52 = vand.u32 2147483647, %v2164_v33  ;;  %vm2170_vm12 = vweird.f32 %v2164_v33  ;;  %v5175_v39 = vor.u32 %v5970_v37, %v5174_v31  ;;  %v5176_v45 = vld [vmem:[#allocation9 + $0x130] sm:$0xf0]  ;;  %v5150_v48 = vld [vmem:[#allocation9 + $0xe8] sm:$0xf] }
 0xa87   :  { %v2177_v5 = vor.u32 1.1754944e-38, %v2176_v0  ;;  %v5179_v46 = vor.u32 %v5968_v24, %v5176_v45  ;;  %v5969_v0 = vld [vmem:[#allocation9 + $0x12c] sm:$0xf]  ;;  %v5319_v45 = vld [vmem:[#allocation9 + $0xe0] sm:$0xf] }
 0xa88   :  { %v6784_v54 = vadd.f32 %v2181_v50, %v2180_v51  ;;  %vm2175_vm14 = vcmp.eq.f32.partialorder %v2174_v52, 8.507059e+37  ;;  %v5963_v51 = vld [vmem:[#allocation9 + $0xf4] sm:$0xf0]  ;;  %2529 = vmatpush.bf16.msra.mxu3 %v5175_v39 }
 0xa89   :  { %2555 = vmatpush.bf16.msrb.mxu2 %v5179_v46  ;;  %v5959_v52 = vld [vmem:[#allocation9 + $0xd4] sm:$0xf0]  ;;  %v6004_v46 = vld [vmem:[#allocation9 + $0xec] sm:$0xf0] }
 0xa8a   :  { %6224 = vtanh.f32 %v6784_v54 }
 0xa8b   :  { %v6223_v60 = vpop.eup %6222  ;;  %6226 = vpow2.f32 %v5027_v7  ;;  %v5118_v7 = vld [vmem:[#allocation9 + $0xa8] sm:$0xf] }
 0xa8c   :  { %v2166_v63 = vmul.f32 %v6223_v60, %v2164_v33  ;;  %vm2171_vm11 = vweird.f32 %v6223_v60  ;;  %v5158_v33 = vld [vmem:[#allocation9 + $0x100] sm:$0xf] }
 0xa8d   :  { %vm2172_vm13 = vmor %vm2170_vm12, %vm2171_vm11 }
 0xa8e   :  { %v2167_v61 = vsub.f32 1.0, %v2166_v63  ;;  %v5151_v63 = vor.u32 %v5963_v51, %v5150_v48  ;;  %v5320_v48 = vor.u32 %v6004_v46, %v5319_v45  ;;  %v5303_v51 = vld [vmem:[#allocation9 + $0xc0] sm:$0xf] }
 0xa90   :  { %v2168_v3 = vmul.f32 %v6223_v60, %v2167_v61  ;;  %v6225_v38 = vpop.eup %6224 }
 0xa91   :  { %v6227_v49 = vpop.eup %6226 }
 0xa92   :  { %v2169_v6 = vadd.f32 %v6223_v60, %v2168_v3  ;;  %v2227_v44 = vadd.f32 1.0, %v6227_v49  ;;  %v5134_v3 = vld [vmem:[#allocation9 + $0xc8] sm:$0xf]  ;;  %v5955_v49 = vld [vmem:[#allocation9 + $0xb4] sm:$0xf0] }
 0xa94   :  { %v2173_v11 = vsel %vm2172_vm13, %v6223_v60, %v2169_v6  ;;  %6228 = vrcp.f32 %v2227_v44  ;;  %v2239_v40 = vand.u32 2147483648, %v2227_v44  ;;  %vm2233_vm2 = vweird.f32 %v2227_v44  ;;  %v5160_v60 = vld [vmem:[#allocation9 + $0x110] sm:$0xf0]  ;;  %v5184_v6 = vld [vmem:[#allocation9 + $0x138] sm:$0xf0] }
 0xa95   :  { %v2178_v58 = vsel %vm2175_vm14, %v2177_v5, %v2173_v11  ;;  %v2237_v62 = vand.u32 2147483647, %v2227_v44  ;;  %v5163_v61 = vor.u32 %v5964_v57, %v5160_v60  ;;  %v5187_v5 = vor.u32 %v5969_v0, %v5184_v6  ;;  %v5965_v11 = vld [vmem:[#allocation9 + $0x10c] sm:$0xf]  ;;  %v5287_v60 = vld [vmem:[#allocation9 + $0xa0] sm:$0xf] }
 0xa96   :  { %v6787_v25 = vmul.f32 %v6225_v38, %v2178_v58  ;;  %v2240_v36 = vor.u32 1.1754944e-38, %v2239_v40  ;;  %v5168_v38 = vld [vmem:[#allocation9 + $0x118] sm:$0xf0]  ;;  %v5135_v58 = vor.u32 %v5959_v52, %v5134_v3  ;;  %v5947_v40 = vld [vmem:[#allocation9 + $0x74] sm:$0xf0] }
 0xa97   :  { %vm2238_vm1 = vcmp.eq.f32.partialorder %v2237_v62, 8.507059e+37  ;;  %2556 = vmatpush.bf16.msrb.mxu2 %v5163_v61  ;;  %2607 = vmatpush.bf16.msra.mxu0 %v5187_v5  ;;  %v5182_v62 = vld [vmem:[#allocation9 + $0x128] sm:$0xf]  ;;  %v5271_v0 = vld [vmem:[#allocation9 + $0x80] sm:$0xf] }
 0xa98   :  { %v6791_v53 = vpack.c.bf16 %v6787_v25, %v6787_v25  ;;  %v5992_v3 = vld [vmem:[#allocation9 + $0x8c] sm:$0xf0]  ;;  %v6002_v52 = vld [vmem:[#allocation9 + $0xe4] sm:$0xf]  ;;  %v5321_v6 = vld [vmem:[#allocation9 + $0xf0] sm:$0xf0] }
 0xa99   :  { %v5324_v5 = vor.u32 %v6002_v52, %v5321_v6  ;;  %v5995_v52 = vld [vmem:[#allocation9 + $0xac] sm:$0xf] }
 0xa9a   :  { %2518 = vmatmul.bf16.vlgmr.msrb.gmra.mxu1 %v6791_v53  ;;  %2544 = vmatmul.bf16.vlgmr.msrb.gmra.mxu0 %v6791_v53  ;;  %v6229_v18 = vpop.eup %6228 }
 0xa9b   :  { %v2229_v8 = vmul.f32 %v6229_v18, %v2227_v44  ;;  %vm2234_vm15 = vweird.f32 %v6229_v18  ;;  %v5171_v44 = vor.u32 %v5965_v11, %v5168_v38  ;;  %v5255_v11 = vld [vmem:[#allocation9 + $0x60] sm:$0xf]  ;;  %v5988_v38 = vld [vmem:[#allocation9 + $0x6c] sm:$0xf0] }
 0xa9c   :  { %vm2235_vm0 = vmor %vm2233_vm2, %vm2234_vm15 }
 0xa9d   :  { %v2230_v19 = vsub.f32 1.0, %v2229_v8  ;;  %2608 = vmatpush.bf16.msra.mxu0 %v5171_v44  ;;  %v5102_v8 = vld [vmem:[#allocation9 + $0x88] sm:$0xf] }
 0xa9f   :  { %v2231_v20 = vmul.f32 %v6229_v18, %v2230_v19  ;;  %v5951_v19 = vld [vmem:[#allocation9 + $0x94] sm:$0xf0] }
 0xaa1   :  { %v2232_v21 = vadd.f32 %v6229_v18, %v2231_v20  ;;  %v5103_v20 = vor.u32 %v5951_v19, %v5102_v8  ;;  %v5984_v8 = vld [vmem:[#allocation9 + $0x4c] sm:$0xf0] }
 0xaa3   :  { %v2236_v10 = vsel %vm2235_vm0, %v6229_v18, %v2232_v21  ;;  %v5119_v18 = vor.u32 %v5955_v49, %v5118_v7  ;;  %v5086_v21 = vld [vmem:[#allocation9 + $0x68] sm:$0xf]  ;;  %v5998_v7 = vld [vmem:[#allocation9 + $0xc4] sm:$0xf]  ;;  %v5305_v49 = vld [vmem:[#allocation9 + $0xd0] sm:$0xf0] }
 0xaa4   :  { %v2241_v59 = vsel %vm2238_vm1, %v2240_v36, %v2236_v10  ;;  %v5971_v10 = vld [vmem:[#allocation9 + $0x134] sm:$0xf0]  ;;  %v5087_v36 = vor.u32 %v5947_v40, %v5086_v21  ;;  %v5308_v44 = vor.u32 %v5998_v7, %v5305_v49  ;;  %v5289_v21 = vld [vmem:[#allocation9 + $0xb0] sm:$0xf0] }
 0xaa5   :  { %v2244_v13 = vmul.f32 %v2241_v59, %v6736_v9  ;;  %v5966_v9 = vld [vmem:[#allocation9 + $0x10c] sm:$0xf0] }
 0xaa6   :  { %v5159_v50 = vor.u32 %v5966_v9, %v5158_v33  ;;  %v5973_v33 = vld [vmem:[#allocation7 + $0x8] sm:$0xff]  ;;  %v5972_v9 = vld [vmem:[#allocation7] sm:$0xff] }
 0xaa8   :  { %2530 = vmatpush.bf16.msra.mxu3 %v5159_v50  ;;  %v6000_v50 = vld [vmem:[#allocation9 + $0xcc] sm:$0xf0] }
 0xaa9   :  { %v5304_v57 = vor.u32 %v6000_v50, %v5303_v51  ;;  %v5982_v51 = vld [vmem:[#allocation9 + $0x44] sm:$0xf]  ;;  %v5241_v50 = vld [vmem:[#allocation9 + $0x50] sm:$0xf0] }
 0xaaa   :  { %2596 = vmatmul.bf16.vlgmr.msra.gmra.mxu1 %v6791_v53 }
 0xaac   :  { %2562 = vmatpush.bf16.msrb.mxu3 %v5151_v63  ;;  %v5996_v63 = vld [vmem:[#allocation9 + $0xac] sm:$0xf0] }
 0xaad   :  { %v5288_v61 = vor.u32 %v5996_v63, %v5287_v60  ;;  %v5244_v60 = vor.u32 %v5982_v51, %v5241_v50  ;;  %v5313_v63 = vld [vmem:[#allocation9 + $0xd8] sm:$0xf0] }
 0xab0   :  { %2563 = vmatpush.bf16.msrb.mxu3 %v5135_v58  ;;  %v5256_v58 = vor.u32 %v5988_v38, %v5255_v11  ;;  %v5297_v11 = vld [vmem:[#allocation9 + $0xb8] sm:$0xf0] }
 0xab1   :  { %v5300_v38 = vor.u32 %v5995_v52, %v5297_v11 }
 0xab4   :  { %2564 = vmatpush.bf16.msrb.mxu3 %v5119_v18  ;;  %v5239_v18 = vld [vmem:[#allocation9 + $0x40] sm:$0xf] }
 0xab5   :  { %v5240_v19 = vor.u32 %v5984_v8, %v5239_v18  ;;  %v5209_v18 = vld [vmem:[#allocation9 + $0x10] sm:$0xf0]  ;;  %v5991_v8 = vld [vmem:[#allocation9 + $0x8c] sm:$0xf] }
 0xab8   :  { %2565 = vmatpush.bf16.msrb.mxu3 %v5103_v20  ;;  %v5994_v20 = vld [vmem:[#allocation9 + $0xa4] sm:$0xf] }
 0xab9   :  { %v5292_v40 = vor.u32 %v5994_v20, %v5289_v21 }
 0xabc   :  { %2566 = vmatpush.bf16.msrb.mxu3 %v5087_v36 }
 0xaf6   :  { %v2247_v4 = vpop.permute.xlu1 %2246 }
 0xaf7   :  { %v2249_v12 = vmul.f32 %v2247_v4, %v2241_v59  ;;  %v5183_v4 = vor.u32 %v5971_v10, %v5182_v62  ;;  %v5223_v62 = vld [vmem:[#allocation9 + $0x20] sm:$0xf]  ;;  %v5980_v10 = vld [vmem:[#allocation9 + $0x2c] sm:$0xf0] }
 0xaf8   :  { %v5224_v36 = vor.u32 %v5980_v10, %v5223_v62 }
 0xaf9   :  { %2251 = vrot.lane.b32.xlu2 %v2249_v12, %s6431_s21  ;;  %v5943_v12 = vld [vmem:[#allocation9 + $0x54] sm:$0xf0]  ;;  %2581 = vmatpush.bf16.msra.mxu2 %v5183_v4  ;;  %v5990_v4 = vld [vmem:[#allocation9 + $0x84] sm:$0xf] }
 0xb17   :  { %v6798_v55 = vpop.f32.mrf.mxu1  ;;  %v6800_v43 = vpop.f32.mrf.mxu0 }
 0xb1f   :  { %v2521_v26 = vpop.f32.mrf.mxu1  ;;  %v2547_v28 = vpop.f32.mrf.mxu0 }
 0xb20   :  { %v5166_v26 = vld [vmem:[#allocation9 + $0x108] sm:$0xf] }
 0xb27   :  { %v6802_v29 = vpop.f32.mrf.mxu1 }
 0xb2f   :  { %v2599_v1 = vpop.f32.mrf.mxu1 }
 0xb30   :  { %v5967_v1 = vld [vmem:[#allocation9 + $0x114] sm:$0xf0] }
 0xb53   :  { %v2252_v27 = vpop.permute.xlu2 %2251 }
 0xb54   :  { %v6805_v32 = vadd.f32 %v2252_v27, %v2244_v13  ;;  %v5167_v13 = vor.u32 %v5967_v1, %v5166_v26  ;;  %v5054_v27 = vld [vmem:[#allocation9 + $0x28] sm:$0xf] }
 0xb56   :  { %6230 = vtanh.f32 %v6805_v32  ;;  %2582 = vmatpush.bf16.msra.mxu2 %v5167_v13  ;;  %v5207_v13 = vld [vmem:[#allocation9] sm:$0xf] }
 0xb5c   :  { %v6231_v34 = vpop.eup %6230 }
 0xb5d   :  { %2257 = vrot.lane.b32.xlu0 %v6231_v34, %s6423_s9  ;;  %v5939_v34 = vld [vmem:[#allocation9 + $0x34] sm:$0xf0] }
 0xbcf   :  { %v2258_v41 = vpop.permute.xlu0 %2257 }
 0xbd0   :  { %v2260_v14 = vmul.f32 %v2258_v41, %v2241_v59  ;;  %v5070_v59 = vld [vmem:[#allocation9 + $0x48] sm:$0xf]  ;;  %v5055_v41 = vor.u32 %v5939_v34, %v5054_v27  ;;  %v5976_v27 = vld [vmem:[#allocation9 + $0xc] sm:$0xf0] }
 0xbd1   :  { %v5071_v28 = vor.u32 %v5943_v12, %v5070_v59  ;;  %v5273_v59 = vld [vmem:[#allocation9 + $0x90] sm:$0xf0]  ;;  %v2598_v12 = vadd.f32 %v6802_v29, %v6575_v17  ;;  %v5208_v34 = vor.u32 %v5976_v27, %v5207_v13  ;;  %v2546_v29 = vadd.f32 %v6800_v43, %v6565_v47  ;;  %v5978_v43 = vld [vmem:[#allocation9 + $0x24] sm:$0xf] }
 0xbd2   :  { %v2679_v30 = vpack.c.bf16 %v2260_v14, %v2260_v14  ;;  %2262 = vrot.lane.b32.xlu1 %v2260_v14, %s6431_s21  ;;  %v5038_v14 = vld [vmem:[#allocation9 + $0x8] sm:$0xf]  ;;  %v5276_v26 = vor.u32 %v5990_v4, %v5273_v59  ;;  %v5987_v4 = vld [vmem:[#allocation9 + $0x6c] sm:$0xf]  ;;  %v5265_v59 = vld [vmem:[#allocation9 + $0x78] sm:$0xf0] }
 0xbd3   :  { %2567 = vmatpush.bf16.msrb.mxu3 %v5071_v28  ;;  %v5268_v27 = vor.u32 %v5987_v4, %v5265_v59 }
 0xbd4   :  { %2685 = vrot.lane.b32.xlu2 %v2679_v30, %s6431_s21  ;;  %v5935_v30 = vld [vmem:[#allocation9 + $0x14] sm:$0xf0] }
 0xbd5   :  { %v5039_v31 = vor.u32 %v5935_v30, %v5038_v14  ;;  %v5257_v14 = vld [vmem:[#allocation9 + $0x70] sm:$0xf0]  ;;  %v6003_v30 = vld [vmem:[#allocation9 + $0xec] sm:$0xf] }
 0xbd7   :  { %2568 = vmatpush.bf16.msrb.mxu3 %v5055_v41  ;;  %v5986_v41 = vld [vmem:[#allocation9 + $0x64] sm:$0xf] }
 0xbdb   :  { %2569 = vmatpush.bf16.msrb.mxu3 %v5039_v31 }
 0xc2e   :  { %v2686_v24 = vpop.permute.xlu2 %2685 }
 0xc44   :  { %v2263_v37 = vpop.permute.xlu1 %2262 }
 0xc45   :  { %v2266_v39 = vpack.c.bf16 %v2263_v37, %v2263_v37  ;;  %v5260_v37 = vor.u32 %v5986_v41, %v5257_v14 }
 0xc47   :  { %5188 = vmatmul.msk.bf16.vlgmr.msra.gmra.mxu3 %vm238_vm7, %v2266_v39  ;;  %5189 = vmatmul.msk.bf16.vlgmr.msrb.gmra.mxu2 %vm238_vm7, %v2266_v39 }
 0xc48   :  { %5191 = vmatmul.msk.bf16.vlgmr.msra.gmra.mxu0 %vm238_vm7, %v2266_v39  ;;  %2708 = vmatpush.bf16.msrb.mxu2 %v5973_v33  ;;  %v5329_v33 = vld [vmem:[#allocation9 + $0xf8] sm:$0xf0] }
 0xc49   :  { %3002 = vmatpush.bf16.msra.mxu3 %v5320_v48 }
 0xc4c   :  { %2709 = vmatpush.bf16.msrb.mxu2 %v5972_v9  ;;  %v5332_v9 = vor.u32 %v6003_v30, %v5329_v33 }
 0xc4d   :  { %3003 = vmatpush.bf16.msra.mxu3 %v5304_v57  ;;  %v5999_v57 = vld [vmem:[#allocation9 + $0xcc] sm:$0xf] }
 0xc51   :  { %3004 = vmatpush.bf16.msra.mxu3 %v5288_v61 }
 0xc57   :  { %2570 = vmatmul.bf16.vlgmr.msrb.gmra.mxu3 %v6791_v53  ;;  %5190 = vmatmul.msk.bf16.vlgmr.msra.gmra.mxu2 %vm238_vm7, %v2266_v39  ;;  %v5272_v53 = vor.u32 %v5992_v3, %v5271_v0  ;;  %v2520_v39 = vadd.f32 %v6798_v55, %v6547_v2  ;;  %v5316_v3 = vor.u32 %v5999_v57, %v5313_v63  ;;  %v5975_v57 = vld [vmem:[#allocation9 + $0xc] sm:$0xf] }
 0xc58   :  { %3028 = vmatpush.bf16.msra.mxu2 %v5324_v5 }
 0xc59   :  { %3005 = vmatpush.bf16.msra.mxu3 %v5272_v53  ;;  %v5225_v53 = vld [vmem:[#allocation9 + $0x30] sm:$0xf0] }
 0xc5a   :  { %v5228_v5 = vor.u32 %v5978_v43, %v5225_v53 }
 0xc5c   :  { %3029 = vmatpush.bf16.msra.mxu2 %v5308_v44  ;;  %v5974_v44 = vld [vmem:[#allocation9 + $0x4] sm:$0xf] }
 0xc5d   :  { %3006 = vmatpush.bf16.msra.mxu3 %v5256_v58  ;;  %v5212_v21 = vor.u32 %v5974_v44, %v5209_v18 }
 0xc60   :  { %3030 = vmatpush.bf16.msra.mxu2 %v5292_v40 }
 0xc61   :  { %3007 = vmatpush.bf16.msra.mxu3 %v5240_v19  ;;  %v5281_v19 = vld [vmem:[#allocation9 + $0x98] sm:$0xf0] }
 0xc62   :  { %v5284_v40 = vor.u32 %v5991_v8, %v5281_v19 }
 0xc64   :  { %3031 = vmatpush.bf16.msra.mxu2 %v5276_v26 }
 0xc65   :  { %3008 = vmatpush.bf16.msra.mxu3 %v5224_v36 }
 0xc67   :  { %5203 = vmatmul.msk.bf16.vlgmr.msrb.gmra.mxu2 %vm238_vm7, %v2686_v24 }
 0xc68   :  { %3032 = vmatpush.bf16.msra.mxu2 %v5260_v37  ;;  %v5233_v37 = vld [vmem:[#allocation9 + $0x38] sm:$0xf0] }
 0xc69   :  { %3009 = vmatpush.bf16.msra.mxu3 %v5208_v34 }
 0xc6c   :  { %3033 = vmatpush.bf16.msra.mxu2 %v5244_v60  ;;  %v5217_v60 = vld [vmem:[#allocation9 + $0x18] sm:$0xf0] }
 0xc6d   :  { %3080 = vmatpush.bf16.msrb.mxu3 %v5332_v9  ;;  %v5220_v52 = vor.u32 %v5975_v57, %v5217_v60 }
 0xc70   :  { %3034 = vmatpush.bf16.msra.mxu2 %v5228_v5 }
 0xc71   :  { %3081 = vmatpush.bf16.msrb.mxu3 %v5316_v3 }
 0xc74   :  { %3035 = vmatpush.bf16.msra.mxu2 %v5212_v21 }
 0xc75   :  { %3082 = vmatpush.bf16.msrb.mxu3 %v5300_v38 }
 0xc79   :  { %3083 = vmatpush.bf16.msrb.mxu3 %v5284_v40 }
 0xc7d   :  { %3084 = vmatpush.bf16.msrb.mxu3 %v5268_v27 }
 0xcc5   :  { %v2610_v28 = vpop.f32.mrf.mxu0 }
 0xcc6   :  { %v2611_v1 = vadd.f32 %v2610_v28, %v2598_v12  ;;  %v5983_v28 = vld [vmem:[#allocation9 + $0x4c] sm:$0xf] }
 0xcc8   :  { %v5194_v31 = vmul.f32 -1.442695, %v2611_v1  ;;  %v5249_v1 = vld [vmem:[#allocation9 + $0x58] sm:$0xf0] }
 0xcc9   :  { %v5252_v41 = vor.u32 %v5983_v28, %v5249_v1 }
 0xcca   :  { %6232 = vpow2.f32 %v5194_v31  ;;  %v2532_v24 = vpop.f32.mrf.mxu3  ;;  %v2558_v45 = vpop.f32.mrf.mxu2  ;;  %v5979_v31 = vld [vmem:[#allocation9 + $0x2c] sm:$0xf] }
 0xccb   :  { %v2533_v46 = vadd.f32 %v2532_v24, %v2520_v39  ;;  %v2559_v48 = vadd.f32 %v2558_v45, %v2546_v29  ;;  %3085 = vmatpush.bf16.msrb.mxu3 %v5252_v41  ;;  %v5236_v45 = vor.u32 %v5979_v31, %v5233_v37 }
 0xccd   :  { %v5192_v61 = vmul.f32 -1.442695, %v2533_v46  ;;  %v5193_v0 = vmul.f32 -1.442695, %v2559_v48  ;;  %v2612_v55 = vpop.f32.mrf.mxu0 }
 0xccf   :  { %6234 = vpow2.f32 %v5192_v61  ;;  %3086 = vmatpush.bf16.msrb.mxu3 %v5236_v45 }
 0xcd0   :  { %v6233_v6 = vpop.eup %6232  ;;  %6236 = vpow2.f32 %v5193_v0 }
 0xcd1   :  { %v6823_v49 = vadd.f32 1.0, %v6233_v6 }
 0xcd2   :  { %v2534_v58 = vpop.f32.mrf.mxu3  ;;  %v2560_v7 = vpop.f32.mrf.mxu2 }
 0xcd3   :  { %6238 = vrcp.f32 %v6823_v49  ;;  %3087 = vmatpush.bf16.msrb.mxu3 %v5220_v52  ;;  %vm2662_vm13 = vweird.f32 %v6823_v49  ;;  %v2666_v4 = vand.u32 2147483647, %v6823_v49  ;;  %v5335_v52 = vld [vmem:[#allocation9 + $0x100] sm:$0xf] }
 0xcd5   :  { %v6235_v20 = vpop.eup %6234  ;;  %vm2667_vm15 = vcmp.eq.f32.partialorder %v2666_v4, 8.507059e+37 }
 0xcd6   :  { %v6237_v62 = vpop.eup %6236  ;;  %v2617_v10 = vadd.f32 1.0, %v6235_v20 }
 0xcd7   :  { %v2636_v36 = vadd.f32 1.0, %v6237_v62 }
 0xcd8   :  { %6240 = vrcp.f32 %v2617_v10  ;;  %v2629_v48 = vand.u32 2147483648, %v2617_v10  ;;  %v2627_v0 = vand.u32 2147483647, %v2617_v10  ;;  %vm2623_vm5 = vweird.f32 %v2617_v10 }
 0xcd9   :  { %6242 = vrcp.f32 %v2636_v36  ;;  %v6827_v34 = vpop.eup %6238  ;;  %v2648_v63 = vand.u32 2147483648, %v2636_v36  ;;  %v2646_v3 = vand.u32 2147483647, %v2636_v36  ;;  %vm2642_vm6 = vweird.f32 %v2636_v36 }
 0xcda   :  { %v2571_v12 = vpop.f32.mrf.mxu3  ;;  %v2584_v26 = vpop.f32.mrf.mxu2  ;;  %v2658_v9 = vmul.f32 %v6827_v34, %v6823_v49  ;;  %v2630_v6 = vor.u32 1.1754944e-38, %v2629_v48  ;;  %vm2628_vm10 = vcmp.eq.f32.partialorder %v2627_v0, 8.507059e+37  ;;  %vm2663_vm12 = vweird.f32 %v6827_v34 }
 0xcdb   :  { %v2572_v13 = vadd.f32 %v2571_v12, %v6557_v22  ;;  %v2649_v11 = vor.u32 1.1754944e-38, %v2648_v63  ;;  %vm2647_vm11 = vcmp.eq.f32.partialorder %v2646_v3, 8.507059e+37  ;;  %vm2664_vm14 = vmor %vm2662_vm13, %vm2663_vm12 }
 0xcdc   :  { %v2659_v43 = vsub.f32 1.0, %v2658_v9 }
 0xcdd   :  { %v2585_v30 = vadd.f32 %v2584_v26, %v2572_v13 }
 0xcde   :  { %v6241_v14 = vpop.eup %6240  ;;  %v2660_v18 = vmul.f32 %v6827_v34, %v2659_v43  ;;  %v5351_v43 = vld [vmem:[#allocation9 + $0x120] sm:$0xf] }
 0xcdf   :  { %v6243_v33 = vpop.eup %6242  ;;  %v2619_v39 = vmul.f32 %v6241_v14, %v2617_v10  ;;  %6244 = vtanh.f32 %v2585_v30  ;;  %vm2624_vm3 = vweird.f32 %v6241_v14 }
 0xce0   :  { %v2638_v29 = vmul.f32 %v6243_v33, %v2636_v36  ;;  %vm2643_vm4 = vweird.f32 %v6243_v33  ;;  %vm2625_vm8 = vmor %vm2623_vm5, %vm2624_vm3  ;;  %v2661_v10 = vadd.f32 %v6827_v34, %v2660_v18  ;;  %v2668_v36 = vand.u32 2147483648, %v6823_v49  ;;  %v6006_v18 = vld [vmem:[#allocation9 + $0x104] sm:$0xf] }
 0xce1   :  { %v2620_v24 = vsub.f32 1.0, %v2619_v39  ;;  %vm2644_vm9 = vmor %vm2642_vm6, %vm2643_vm4 }
 0xce2   :  { %v2639_v46 = vsub.f32 1.0, %v2638_v29  ;;  %v2573_v51 = vpop.f32.mrf.mxu3  ;;  %v2586_v50 = vpop.f32.mrf.mxu2  ;;  %v2669_v59 = vor.u32 1.1754944e-38, %v2668_v36  ;;  %v5361_v36 = vld [vmem:[#allocation9 + $0x138] sm:$0xf0] }
 0xce3   :  { %v2621_v61 = vmul.f32 %v6241_v14, %v2620_v24 }
 0xce4   :  { %v2640_v55 = vmul.f32 %v6243_v33, %v2639_v46 }
 0xce5   :  { %v2622_v53 = vadd.f32 %v6241_v14, %v2621_v61  ;;  %v6245_v58 = vpop.eup %6244 }
 0xce6   :  { %v2641_v5 = vadd.f32 %v6243_v33, %v2640_v55 }
 0xce7   :  { %v2626_v38 = vsel %vm2625_vm8, %v6241_v14, %v2622_v53  ;;  %v6012_v53 = vld [vmem:[#allocation9 + $0x12c] sm:$0xf0] }
 0xce8   :  { %v2631_v7 = vsel %vm2628_vm10, %v2630_v6, %v2626_v38  ;;  %v2645_v44 = vsel %vm2644_vm9, %v6243_v33, %v2641_v5  ;;  %v5352_v6 = vor.u32 %v6012_v53, %v5351_v43  ;;  %v6008_v5 = vld [vmem:[#allocation9 + $0x10c] sm:$0xf0]  ;;  %v5353_v38 = vld [vmem:[#allocation9 + $0x130] sm:$0xf0]  ;;  %v5215_v53 = vld [vmem:[#allocation9 + $0x8] sm:$0xf] }
 0xce9   :  { %v2650_v8 = vsel %vm2647_vm11, %v2649_v11, %v2645_v44  ;;  %v2673_v19 = vmul.f32 %v6245_v58, %v2631_v7  ;;  %v6010_v11 = vld [vmem:[#allocation9 + $0x124] sm:$0xf]  ;;  %v5327_v7 = vld [vmem:[#allocation9 + $0xe8] sm:$0xf]  ;;  %v6005_v44 = vld [vmem:[#allocation9 + $0xf4] sm:$0xf0] }
 0xcea   :  { %v2672_v20 = vmul.f32 %v2650_v8, %v6784_v54  ;;  %v2711_v21 = vpop.f32.mrf.mxu2  ;;  %v2665_v54 = vsel %vm2664_vm14, %v6827_v34, %v2661_v10  ;;  %v5356_v58 = vor.u32 %v6010_v11, %v5353_v38  ;;  %3021 = vmatpush.bf16.msrb.mxu0 %v5352_v6  ;;  %v5337_v8 = vld [vmem:[#allocation9 + $0x110] sm:$0xf0]  ;;  %v6001_v10 = vld [vmem:[#allocation9 + $0xd4] sm:$0xf0] }
 0xceb   :  { %v2715_v40 = vadd.f32 %v2711_v21, %v6554_v16  ;;  %v2670_v28 = vsel %vm2667_vm15, %v2669_v59, %v2665_v54  ;;  %v6011_v21 = vld [vmem:[#allocation9 + $0x12c] sm:$0xf]  ;;  %v5345_v59 = vld [vmem:[#allocation9 + $0x118] sm:$0xf0] }
 0xcec   :  { %v6834_v62 = vadd.f32 %v2673_v19, %v2672_v20  ;;  %3047 = vmatpush.bf16.msrb.mxu1 %v5356_v58  ;;  %v5328_v19 = vor.u32 %v6005_v44, %v5327_v7  ;;  %v5340_v20 = vor.u32 %v6006_v18, %v5337_v8  ;;  %v5364_v4 = vor.u32 %v6011_v21, %v5361_v36  ;;  %v6007_v54 = vld [vmem:[#allocation9 + $0x10c] sm:$0xf]  ;;  %v6015_v11 = vld [vmem:[#allocation7 + $0x8] sm:$0xff]  ;;  %v6014_v58 = vld [vmem:[#allocation7] sm:$0xff] }
 0xced   :  { %6246 = vtanh.f32 %v2715_v40  ;;  %v5204_v49 = vmul.f32 -1.442695, %v2715_v40  ;;  %v5311_v40 = vld [vmem:[#allocation9 + $0xc8] sm:$0xf]  ;;  %v5496_v44 = vld [vmem:[#allocation9 + $0xe0] sm:$0xf] }
 0xcee   :  { %6248 = vtanh.f32 %v6834_v62  ;;  %3099 = vmatpush.bf16.msrb.mxu2 %v5364_v4  ;;  %v5480_v8 = vld [vmem:[#allocation9 + $0xc0] sm:$0xf]  ;;  %v6034_v4 = vld [vmem:[#allocation9 + $0x8c] sm:$0xf0] }
 0xcef   :  { %6250 = vpow2.f32 %v5204_v49  ;;  %v5464_v21 = vld [vmem:[#allocation9 + $0xa0] sm:$0xf] }
 0xcf0   :  { %3048 = vmatpush.bf16.msrb.mxu1 %v5340_v20  ;;  %v5448_v36 = vld [vmem:[#allocation9 + $0x80] sm:$0xf] }
 0xcf2   :  { %v2713_v16 = vpop.f32.mrf.mxu2 }
 0xcf3   :  { %v6247_v12 = vpop.eup %6246  ;;  %v5312_v16 = vor.u32 %v6001_v10, %v5311_v40  ;;  %v6038_v40 = vld [vmem:[#allocation9 + $0xac] sm:$0xf0] }
 0xcf4   :  { %v6249_v26 = vpop.eup %6248  ;;  %2738 = vrot.lane.b32.xlu0 %v6247_v12, %s6423_s9  ;;  %v5295_v12 = vld [vmem:[#allocation9 + $0xa8] sm:$0xf]  ;;  %v5465_v10 = vor.u32 %v6038_v40, %v5464_v21  ;;  %v6020_v40 = vld [vmem:[#allocation9 + $0x24] sm:$0xf] }
 0xcf5   :  { %v6844_v1 = vmul.f32 %v6249_v26, %v2670_v28  ;;  %v6251_v27 = vpop.eup %6250  ;;  %v5997_v26 = vld [vmem:[#allocation9 + $0xb4] sm:$0xf0]  ;;  %v5348_v28 = vor.u32 %v6007_v54, %v5345_v59  ;;  %v6044_v54 = vld [vmem:[#allocation9 + $0xe4] sm:$0xf]  ;;  %v5498_v59 = vld [vmem:[#allocation9 + $0xf0] sm:$0xf0] }
 0xcf6   :  { %v2719_v34 = vadd.f32 1.0, %v6251_v27  ;;  %v5296_v49 = vor.u32 %v5997_v26, %v5295_v12  ;;  %v5432_v12 = vld [vmem:[#allocation9 + $0x60] sm:$0xf]  ;;  %v6030_v26 = vld [vmem:[#allocation9 + $0x6c] sm:$0xf0] }
 0xcf7   :  { %v6848_v13 = vpack.c.bf16 %v6844_v1, %v6844_v1  ;;  %3100 = vmatpush.bf16.msrb.mxu2 %v5348_v28  ;;  %v5433_v28 = vor.u32 %v6030_v26, %v5432_v12 }
 0xcf8   :  { %6252 = vrcp.f32 %v2719_v34  ;;  %v2731_v33 = vand.u32 2147483648, %v2719_v34  ;;  %vm2725_vm0 = vweird.f32 %v2719_v34  ;;  %v2729_v39 = vand.u32 2147483647, %v2719_v34 }
 0xcf9   :  { %3010 = vmatmul.bf16.vlgmr.msra.gmra.mxu3 %v6848_v13  ;;  %3036 = vmatmul.bf16.vlgmr.msra.gmra.mxu2 %v6848_v13 }
 0xcfa   :  { %v2732_v9 = vor.u32 1.1754944e-38, %v2731_v33  ;;  %vm2730_vm3 = vcmp.eq.f32.partialorder %v2729_v39, 8.507059e+37  ;;  %v5989_v33 = vld [vmem:[#allocation9 + $0x74] sm:$0xf0]  ;;  %v5359_v39 = vld [vmem:[#allocation9 + $0x128] sm:$0xf] }
 0xcfe   :  { %v6253_v41 = vpop.eup %6252 }
 0xcff   :  { %v2721_v14 = vmul.f32 %v6253_v41, %v2719_v34  ;;  %vm2726_vm2 = vweird.f32 %v6253_v41 }
 0xd00   :  { %vm2727_vm1 = vmor %vm2725_vm0, %vm2726_vm2 }
 0xd01   :  { %v2722_v30 = vsub.f32 1.0, %v2721_v14  ;;  %v5279_v14 = vld [vmem:[#allocation9 + $0x88] sm:$0xf] }
 0xd03   :  { %v2723_v31 = vmul.f32 %v6253_v41, %v2722_v30  ;;  %v5993_v30 = vld [vmem:[#allocation9 + $0x94] sm:$0xf0] }
 0xd05   :  { %v2724_v37 = vadd.f32 %v6253_v41, %v2723_v31  ;;  %v5280_v31 = vor.u32 %v5993_v30, %v5279_v14  ;;  %v6026_v14 = vld [vmem:[#allocation9 + $0x4c] sm:$0xf0] }
 0xd07   :  { %v2728_v29 = vsel %vm2727_vm1, %v6253_v41, %v2724_v37  ;;  %v5263_v37 = vld [vmem:[#allocation9 + $0x68] sm:$0xf] }
 0xd08   :  { %v2733_v45 = vsel %vm2730_vm3, %v2732_v9, %v2728_v29  ;;  %v6013_v29 = vld [vmem:[#allocation9 + $0x134] sm:$0xf0]  ;;  %v5264_v9 = vor.u32 %v5989_v33, %v5263_v37  ;;  %v5466_v37 = vld [vmem:[#allocation9 + $0xb0] sm:$0xf0] }
 0xd09   :  { %3088 = vmatmul.bf16.vlgmr.msrb.gmra.mxu3 %v6848_v13  ;;  %v2736_v61 = vmul.f32 %v2733_v45, %v6805_v32  ;;  %v5336_v32 = vor.u32 %v6008_v5, %v5335_v52  ;;  %v5977_v52 = vld [vmem:[#allocation9 + $0x14] sm:$0xf0] }
 0xd0a   :  { %v5216_v6 = vor.u32 %v5977_v52, %v5215_v53 }
 0xd0b   :  { %3022 = vmatpush.bf16.msrb.mxu0 %v5336_v32  ;;  %v6046_v32 = vld [vmem:[#allocation9 + $0xec] sm:$0xf0] }
 0xd0c   :  { %v5497_v18 = vor.u32 %v6046_v32, %v5496_v44  ;;  %v6024_v44 = vld [vmem:[#allocation9 + $0x44] sm:$0xf]  ;;  %v5418_v32 = vld [vmem:[#allocation9 + $0x50] sm:$0xf0] }
 0xd0f   :  { %3054 = vmatpush.bf16.msra.mxu0 %v5328_v19  ;;  %v6042_v19 = vld [vmem:[#allocation9 + $0xcc] sm:$0xf0] }
 0xd10   :  { %v5481_v20 = vor.u32 %v6042_v19, %v5480_v8 }
 0xd13   :  { %3055 = vmatpush.bf16.msra.mxu0 %v5312_v16  ;;  %v5501_v16 = vor.u32 %v6044_v54, %v5498_v59  ;;  %v5474_v54 = vld [vmem:[#allocation9 + $0xb8] sm:$0xf0] }
 0xd17   :  { %3056 = vmatpush.bf16.msra.mxu0 %v5296_v49  ;;  %v6040_v49 = vld [vmem:[#allocation9 + $0xc4] sm:$0xf] }
 0xd1b   :  { %3057 = vmatpush.bf16.msra.mxu0 %v5280_v31  ;;  %v6036_v31 = vld [vmem:[#allocation9 + $0xa4] sm:$0xf] }
 0xd1c   :  { %v5469_v33 = vor.u32 %v6036_v31, %v5466_v37 }
 0xd1f   :  { %3058 = vmatpush.bf16.msra.mxu0 %v5264_v9 }
 0xd66   :  { %v2739_v24 = vpop.permute.xlu0 %2738 }
 0xd67   :  { %v2741_v46 = vmul.f32 %v2739_v24, %v2733_v45  ;;  %v5360_v24 = vor.u32 %v6013_v29, %v5359_v39  ;;  %v5400_v39 = vld [vmem:[#allocation9 + $0x20] sm:$0xf]  ;;  %v6022_v29 = vld [vmem:[#allocation9 + $0x2c] sm:$0xf0] }
 0xd68   :  { %v5401_v9 = vor.u32 %v6022_v29, %v5400_v39  ;;  %v6029_v39 = vld [vmem:[#allocation9 + $0x6c] sm:$0xf] }
 0xd69   :  { %2743 = vrot.lane.b32.xlu1 %v2741_v46, %s6431_s21  ;;  %v5247_v46 = vld [vmem:[#allocation9 + $0x48] sm:$0xf]  ;;  %3073 = vmatpush.bf16.msra.mxu1 %v5360_v24  ;;  %v6032_v24 = vld [vmem:[#allocation9 + $0x84] sm:$0xf] }
 0xd7c   :  { %v6854_v48 = vpop.f32.mrf.mxu3  ;;  %v6856_v51 = vpop.f32.mrf.mxu2 }
 0xd7d   :  { %v3038_v53 = vadd.f32 %v6856_v51, %v6565_v47 }
 0xd84   :  { %v3013_v50 = vpop.f32.mrf.mxu3  ;;  %v3039_v57 = vpop.f32.mrf.mxu2 }
 0xd85   :  { %v5985_v50 = vld [vmem:[#allocation9 + $0x54] sm:$0xf0]  ;;  %v5343_v57 = vld [vmem:[#allocation9 + $0x108] sm:$0xf] }
 0xd8c   :  { %v6858_v60 = vpop.f32.mrf.mxu3 }
 0xd8d   :  { %v3090_v51 = vadd.f32 %v6858_v60, %v6575_v17  ;;  %v6033_v60 = vld [vmem:[#allocation9 + $0x8c] sm:$0xf] }
 0xd94   :  { %v3091_v63 = vpop.f32.mrf.mxu3 }
 0xd95   :  { %v6009_v63 = vld [vmem:[#allocation9 + $0x114] sm:$0xf0] }
 0xddb   :  { %v2744_v0 = vpop.permute.xlu1 %2743 }
 0xddc   :  { %v6861_v55 = vadd.f32 %v2744_v0, %v2736_v61  ;;  %v5344_v61 = vor.u32 %v6009_v63, %v5343_v57  ;;  %v5231_v0 = vld [vmem:[#allocation9 + $0x28] sm:$0xf]  ;;  %v5384_v57 = vld [vmem:[#allocation9] sm:$0xf] }
 0xdde   :  { %6254 = vtanh.f32 %v6861_v55  ;;  %3074 = vmatpush.bf16.msra.mxu1 %v5344_v61  ;;  %v6028_v61 = vld [vmem:[#allocation9 + $0x64] sm:$0xf] }
 0xde4   :  { %v6255_v3 = vpop.eup %6254 }
 0xde5   :  { %2749 = vrot.lane.b32.xlu2 %v6255_v3, %s6423_s9  ;;  %v5981_v3 = vld [vmem:[#allocation9 + $0x34] sm:$0xf0] }
 0xde6   :  { %v5232_v43 = vor.u32 %v5981_v3, %v5231_v0  ;;  %v5434_v0 = vld [vmem:[#allocation9 + $0x70] sm:$0xf0]  ;;  %v6045_v3 = vld [vmem:[#allocation9 + $0xec] sm:$0xf] }
 0xde7   :  { %v5437_v52 = vor.u32 %v6028_v61, %v5434_v0 }
 0xe3f   :  { %v2750_v27 = vpop.permute.xlu2 %2749 }
 0xe40   :  { %v2752_v34 = vmul.f32 %v2750_v27, %v2733_v45  ;;  %v5248_v45 = vor.u32 %v5985_v50, %v5247_v46  ;;  %v5482_v27 = vld [vmem:[#allocation9 + $0xd0] sm:$0xf0] }
 0xe41   :  { %v5450_v46 = vld [vmem:[#allocation9 + $0x90] sm:$0xf0] }
 0xe42   :  { %v3171_v41 = vpack.c.bf16 %v2752_v34, %v2752_v34  ;;  %2754 = vrot.lane.b32.xlu0 %v2752_v34, %s6431_s21  ;;  %3059 = vmatpush.bf16.msra.mxu0 %v5248_v45  ;;  %v5485_v34 = vor.u32 %v6040_v49, %v5482_v27  ;;  %v5453_v50 = vor.u32 %v6032_v24, %v5450_v46  ;;  %v6018_v45 = vld [vmem:[#allocation9 + $0xc] sm:$0xf0]  ;;  %v6016_v49 = vld [vmem:[#allocation9 + $0x4] sm:$0xf]  ;;  %v5386_v27 = vld [vmem:[#allocation9 + $0x10] sm:$0xf0] }
 0xe43   :  { %v5385_v63 = vor.u32 %v6018_v45, %v5384_v57  ;;  %v6025_v57 = vld [vmem:[#allocation9 + $0x4c] sm:$0xf]  ;;  %v5426_v45 = vld [vmem:[#allocation9 + $0x58] sm:$0xf0] }
 0xe44   :  { %3177 = vrot.lane.b32.xlu1 %v3171_v41, %s6431_s21  ;;  %v5416_v41 = vld [vmem:[#allocation9 + $0x40] sm:$0xf]  ;;  %v5429_v0 = vor.u32 %v6025_v57, %v5426_v45 }
 0xe45   :  { %v5417_v30 = vor.u32 %v6026_v14, %v5416_v41  ;;  %v5389_v41 = vor.u32 %v6016_v49, %v5386_v27  ;;  %v5458_v14 = vld [vmem:[#allocation9 + $0x98] sm:$0xf0] }
 0xe46   :  { %3060 = vmatpush.bf16.msra.mxu0 %v5232_v43  ;;  %v3012_v43 = vadd.f32 %v6854_v48, %v6547_v2  ;;  %v5490_v48 = vld [vmem:[#allocation9 + $0xd8] sm:$0xf0]  ;;  %v5461_v37 = vor.u32 %v6033_v60, %v5458_v14 }
 0xe4a   :  { %3061 = vmatpush.bf16.msra.mxu0 %v5216_v6  ;;  %v5506_v6 = vld [vmem:[#allocation9 + $0xf8] sm:$0xf0] }
 0xeb4   :  { %v2755_v5 = vpop.permute.xlu0 %2754 }
 0xeb5   :  { %v2758_v38 = vpack.c.bf16 %v2755_v5, %v2755_v5 }
 0xeb6   :  { %v3178_v7 = vpop.permute.xlu1 %3177 }
 0xeb7   :  { %5365 = vmatmul.msk.bf16.vlgmr.msrb.gmra.mxu0 %vm238_vm7, %v2758_v38  ;;  %5366 = vmatmul.msk.bf16.vlgmr.msrb.gmra.mxu1 %vm238_vm7, %v2758_v38 }
 0xeb8   :  { %5368 = vmatmul.msk.bf16.vlgmr.msrb.gmra.mxu2 %vm238_vm7, %v2758_v38  ;;  %3200 = vmatpush.bf16.msrb.mxu1 %v6015_v11 }
 0xeb9   :  { %3494 = vmatpush.bf16.msrb.mxu0 %v5497_v18  ;;  %v6041_v18 = vld [vmem:[#allocation9 + $0xcc] sm:$0xf] }
 0xeba   :  { %v5493_v21 = vor.u32 %v6041_v18, %v5490_v48 }
 0xebc   :  { %3201 = vmatpush.bf16.msrb.mxu1 %v6014_v58 }
 0xebd   :  { %3495 = vmatpush.bf16.msrb.mxu0 %v5481_v20  ;;  %v5421_v20 = vor.u32 %v6024_v44, %v5418_v32  ;;  %v6017_v44 = vld [vmem:[#allocation9 + $0xc] sm:$0xf]  ;;  %v5394_v32 = vld [vmem:[#allocation9 + $0x18] sm:$0xf0] }
 0xec1   :  { %3496 = vmatpush.bf16.msrb.mxu0 %v5465_v10  ;;  %v5402_v10 = vld [vmem:[#allocation9 + $0x30] sm:$0xf0] }
 0xec7   :  { %3062 = vmatmul.bf16.vlgmr.msra.gmra.mxu0 %v6848_v13  ;;  %5367 = vmatmul.msk.bf16.vlgmr.msra.gmra.mxu1 %vm238_vm7, %v2758_v38  ;;  %v5449_v13 = vor.u32 %v6034_v4, %v5448_v36  ;;  %v5509_v38 = vor.u32 %v6045_v3, %v5506_v6  ;;  %v6037_v36 = vld [vmem:[#allocation9 + $0xac] sm:$0xf] }
 0xec8   :  { %3520 = vmatpush.bf16.msra.mxu1 %v5501_v16  ;;  %v5477_v26 = vor.u32 %v6037_v36, %v5474_v54  ;;  %v5397_v36 = vor.u32 %v6017_v44, %v5394_v32 }
 0xec9   :  { %3497 = vmatpush.bf16.msrb.mxu0 %v5449_v13  ;;  %v5405_v13 = vor.u32 %v6020_v40, %v5402_v10 }
 0xecc   :  { %3521 = vmatpush.bf16.msra.mxu1 %v5485_v34 }
 0xecd   :  { %3498 = vmatpush.bf16.msrb.mxu0 %v5433_v28 }
 0xed0   :  { %3522 = vmatpush.bf16.msra.mxu1 %v5469_v33 }
 0xed1   :  { %3499 = vmatpush.bf16.msrb.mxu0 %v5417_v30 }
 0xed4   :  { %3523 = vmatpush.bf16.msra.mxu1 %v5453_v50 }
 0xed5   :  { %3500 = vmatpush.bf16.msrb.mxu0 %v5401_v9  ;;  %v5442_v9 = vld [vmem:[#allocation9 + $0x78] sm:$0xf0] }
 0xed6   :  { %v5445_v50 = vor.u32 %v6029_v39, %v5442_v9 }
 0xed7   :  { %5380 = vmatmul.msk.bf16.vlgmr.msrb.gmra.mxu1 %vm238_vm7, %v3178_v7 }
 0xed8   :  { %3524 = vmatpush.bf16.msra.mxu1 %v5437_v52 }
 0xed9   :  { %3501 = vmatpush.bf16.msrb.mxu0 %v5385_v63 }
 0xedc   :  { %3525 = vmatpush.bf16.msra.mxu1 %v5421_v20 }
 0xedd   :  { %3572 = vmatpush.bf16.msra.mxu0 %v5509_v38 }
 0xee0   :  { %3526 = vmatpush.bf16.msra.mxu1 %v5405_v13 }
 0xee1   :  { %3573 = vmatpush.bf16.msra.mxu0 %v5493_v21 }
 0xee4   :  { %3527 = vmatpush.bf16.msra.mxu1 %v5389_v41 }
 0xee5   :  { %3574 = vmatpush.bf16.msra.mxu0 %v5477_v26 }
 0xee9   :  { %3575 = vmatpush.bf16.msra.mxu0 %v5461_v37 }
 0xeed   :  { %3576 = vmatpush.bf16.msra.mxu0 %v5445_v50 }
 0xef1   :  { %3577 = vmatpush.bf16.msra.mxu0 %v5429_v0 }
 0xf34   :  { %v3024_v5 = vpop.f32.mrf.mxu0  ;;  %v3050_v11 = vpop.f32.mrf.mxu1 }
 0xf35   :  { %v3025_v58 = vadd.f32 %v3024_v5, %v3012_v43  ;;  %v3051_v7 = vadd.f32 %v3050_v11, %v3038_v53  ;;  %v6021_v43 = vld [vmem:[#allocation9 + $0x2c] sm:$0xf]  ;;  %v5410_v53 = vld [vmem:[#allocation9 + $0x38] sm:$0xf0] }
 0xf37   :  { %v5369_v8 = vmul.f32 -1.442695, %v3025_v58  ;;  %v5370_v19 = vmul.f32 -1.442695, %v3051_v7  ;;  %v5413_v58 = vor.u32 %v6021_v43, %v5410_v53 }
 0xf39   :  { %6256 = vpow2.f32 %v5369_v8  ;;  %3578 = vmatpush.bf16.msra.mxu0 %v5413_v58 }
 0xf3a   :  { %6258 = vpow2.f32 %v5370_v19 }
 0xf3b   :  { %v3102_v4 = vpop.f32.mrf.mxu2 }
 0xf3c   :  { %v3103_v59 = vadd.f32 %v3102_v4, %v3090_v51  ;;  %v3026_v16 = vpop.f32.mrf.mxu0  ;;  %v3052_v12 = vpop.f32.mrf.mxu1 }
 0xf3d   :  { %3579 = vmatpush.bf16.msra.mxu0 %v5397_v36 }
 0xf3e   :  { %v5371_v28 = vmul.f32 -1.442695, %v3103_v59 }
 0xf3f   :  { %v6257_v34 = vpop.eup %6256 }
 0xf40   :  { %v6259_v30 = vpop.eup %6258  ;;  %v3109_v31 = vadd.f32 1.0, %v6257_v34  ;;  %6260 = vpow2.f32 %v5371_v28 }
 0xf41   :  { %v3128_v33 = vadd.f32 1.0, %v6259_v30 }
 0xf42   :  { %6262 = vrcp.f32 %v3109_v31  ;;  %v3121_v8 = vand.u32 2147483648, %v3109_v31  ;;  %v3119_v51 = vand.u32 2147483647, %v3109_v31  ;;  %vm3115_vm6 = vweird.f32 %v3109_v31 }
 0xf43   :  { %6264 = vrcp.f32 %v3128_v33  ;;  %v3104_v29 = vpop.f32.mrf.mxu2  ;;  %v3140_v48 = vand.u32 2147483648, %v3128_v33  ;;  %v3138_v10 = vand.u32 2147483647, %v3128_v33  ;;  %vm3134_vm8 = vweird.f32 %v3128_v33 }
 0xf44   :  { %v3063_v24 = vpop.f32.mrf.mxu0  ;;  %v3076_v46 = vpop.f32.mrf.mxu1  ;;  %v3122_v59 = vor.u32 1.1754944e-38, %v3121_v8  ;;  %vm3120_vm11 = vcmp.eq.f32.partialorder %v3119_v51, 8.507059e+37 }
 0xf45   :  { %v3064_v63 = vadd.f32 %v3063_v24, %v6557_v22  ;;  %v3141_v12 = vor.u32 1.1754944e-38, %v3140_v48  ;;  %vm3139_vm12 = vcmp.eq.f32.partialorder %v3138_v10, 8.507059e+37 }
 0xf46   :  { %v6261_v61 = vpop.eup %6260 }
 0xf47   :  { %v6880_v3 = vadd.f32 1.0, %v6261_v61  ;;  %v3077_v6 = vadd.f32 %v3076_v46, %v3064_v63 }
 0xf48   :  { %v6263_v52 = vpop.eup %6262 }
 0xf49   :  { %v6265_v5 = vpop.eup %6264  ;;  %v3111_v11 = vmul.f32 %v6263_v52, %v3109_v31  ;;  %6266 = vrcp.f32 %v6880_v3  ;;  %vm3116_vm4 = vweird.f32 %v6263_v52  ;;  %v3160_v29 = vand.u32 2147483648, %v6880_v3 }
 0xf4a   :  { %v3130_v38 = vmul.f32 %v6265_v5, %v3128_v33  ;;  %6268 = vtanh.f32 %v3077_v6  ;;  %vm3135_vm5 = vweird.f32 %v6265_v5  ;;  %vm3117_vm9 = vmor %vm3115_vm6, %vm3116_vm4  ;;  %vm3154_vm14 = vweird.f32 %v6880_v3 }
 0xf4b   :  { %v3112_v7 = vsub.f32 1.0, %v3111_v11  ;;  %vm3136_vm10 = vmor %vm3134_vm8, %vm3135_vm5  ;;  %v3158_v9 = vand.u32 2147483647, %v6880_v3  ;;  %v3161_v46 = vor.u32 1.1754944e-38, %v3160_v29  ;;  %v5538_v29 = vld [vmem:[#allocation9 + $0x138] sm:$0xf0] }
 0xf4c   :  { %v3131_v18 = vsub.f32 1.0, %v3130_v38  ;;  %v3065_v19 = vpop.f32.mrf.mxu0  ;;  %v3078_v20 = vpop.f32.mrf.mxu1 }
 0xf4d   :  { %v3113_v21 = vmul.f32 %v6263_v52, %v3112_v7  ;;  %vm3159_vm2 = vcmp.eq.f32.partialorder %v3158_v9, 8.507059e+37 }
 0xf4e   :  { %v3132_v40 = vmul.f32 %v6265_v5, %v3131_v18 }
 0xf4f   :  { %v6267_v4 = vpop.eup %6266  ;;  %v3114_v13 = vadd.f32 %v6263_v52, %v3113_v21 }
 0xf50   :  { %v3150_v54 = vmul.f32 %v6267_v4, %v6880_v3  ;;  %v3133_v16 = vadd.f32 %v6265_v5, %v3132_v40  ;;  %v6269_v28 = vpop.eup %6268  ;;  %vm3155_vm13 = vweird.f32 %v6267_v4 }
 0xf51   :  { %v3118_v26 = vsel %vm3117_vm9, %v6263_v52, %v3114_v13  ;;  %vm3156_vm15 = vmor %vm3154_vm14, %vm3155_vm13  ;;  %v5528_v13 = vld [vmem:[#allocation9 + $0x120] sm:$0xf] }
 0xf52   :  { %v3151_v49 = vsub.f32 1.0, %v3150_v54  ;;  %v3123_v27 = vsel %vm3120_vm11, %v3122_v59, %v3118_v26  ;;  %v3137_v34 = vsel %vm3136_vm10, %v6265_v5, %v3133_v16  ;;  %v6054_v54 = vld [vmem:[#allocation9 + $0x12c] sm:$0xf0]  ;;  %v5512_v59 = vld [vmem:[#allocation9 + $0x100] sm:$0xf] }
 0xf53   :  { %v3142_v41 = vsel %vm3139_vm12, %v3141_v12, %v3137_v34  ;;  %v3165_v60 = vmul.f32 %v6269_v28, %v3123_v27  ;;  %v5529_v16 = vor.u32 %v6054_v54, %v5528_v13  ;;  %v6050_v12 = vld [vmem:[#allocation9 + $0x10c] sm:$0xf0]  ;;  %v6052_v26 = vld [vmem:[#allocation9 + $0x124] sm:$0xf]  ;;  %v5530_v28 = vld [vmem:[#allocation9 + $0x130] sm:$0xf0] }
 0xf54   :  { %v3152_v14 = vmul.f32 %v6267_v4, %v3151_v49  ;;  %v3164_v30 = vmul.f32 %v3142_v41, %v6834_v62  ;;  %v3203_v31 = vpop.f32.mrf.mxu1  ;;  %v5533_v49 = vor.u32 %v6052_v26, %v5530_v28  ;;  %v5504_v27 = vld [vmem:[#allocation9 + $0xe8] sm:$0xf]  ;;  %v6047_v34 = vld [vmem:[#allocation9 + $0xf4] sm:$0xf0]  ;;  %v6048_v41 = vld [vmem:[#allocation9 + $0x104] sm:$0xf] }
 0xf55   :  { %v3207_v37 = vadd.f32 %v3203_v31, %v6559_v23  ;;  %3513 = vmatpush.bf16.msra.mxu2 %v5529_v16  ;;  %v6053_v31 = vld [vmem:[#allocation9 + $0x12c] sm:$0xf]  ;;  %v5392_v54 = vld [vmem:[#allocation9 + $0x8] sm:$0xf]  ;;  %v6057_v26 = vld [vmem:[#allocation7 + $0x8] sm:$0xff] }
 0xf56   :  { %v6886_v33 = vadd.f32 %v3165_v60, %v3164_v30  ;;  %v3153_v39 = vadd.f32 %v6267_v4, %v3152_v14  ;;  %v5514_v60 = vld [vmem:[#allocation9 + $0x110] sm:$0xf0]  ;;  %3539 = vmatpush.bf16.msra.mxu3 %v5533_v49  ;;  %v5505_v14 = vor.u32 %v6047_v34, %v5504_v27  ;;  %v5541_v9 = vor.u32 %v6053_v31, %v5538_v29  ;;  %v5673_v34 = vld [vmem:[#allocation9 + $0xe0] sm:$0xf] }
 0xf57   :  { %6270 = vtanh.f32 %v3207_v37  ;;  %v5381_v61 = vmul.f32 -1.442695, %v3207_v37  ;;  %v5517_v30 = vor.u32 %v6048_v41, %v5514_v60  ;;  %v5488_v37 = vld [vmem:[#allocation9 + $0xc8] sm:$0xf]  ;;  %v6056_v49 = vld [vmem:[#allocation7] sm:$0xff] }
 0xf58   :  { %6272 = vtanh.f32 %v6886_v33  ;;  %v3157_v24 = vsel %vm3156_vm15, %v6267_v4, %v3153_v39  ;;  %v6043_v39 = vld [vmem:[#allocation9 + $0xd4] sm:$0xf0]  ;;  %3591 = vmatpush.bf16.msrb.mxu1 %v5541_v9  ;;  %v5657_v60 = vld [vmem:[#allocation9 + $0xc0] sm:$0xf]  ;;  %v6076_v9 = vld [vmem:[#allocation9 + $0x8c] sm:$0xf0] }
 0xf59   :  { %v3162_v57 = vsel %vm3159_vm2, %v3161_v46, %v3157_v24  ;;  %6274 = vpow2.f32 %v5381_v61  ;;  %v6049_v24 = vld [vmem:[#allocation9 + $0x10c] sm:$0xf]  ;;  %v5522_v46 = vld [vmem:[#allocation9 + $0x118] sm:$0xf0]  ;;  %v5641_v31 = vld [vmem:[#allocation9 + $0xa0] sm:$0xf] }
 0xf5a   :  { %3540 = vmatpush.bf16.msra.mxu3 %v5517_v30  ;;  %v5625_v29 = vld [vmem:[#allocation9 + $0x80] sm:$0xf] }
 0xf5c   :  { %v3205_v62 = vpop.f32.mrf.mxu1 }
 0xf5d   :  { %v6271_v50 = vpop.eup %6270  ;;  %v5489_v62 = vor.u32 %v6043_v39, %v5488_v37  ;;  %v6080_v37 = vld [vmem:[#allocation9 + $0xac] sm:$0xf0] }
 0xf5e   :  { %v6273_v23 = vpop.eup %6272  ;;  %3230 = vrot.lane.b32.xlu2 %v6271_v50, %s6423_s9  ;;  %v5472_v50 = vld [vmem:[#allocation9 + $0xa8] sm:$0xf]  ;;  %v5642_v39 = vor.u32 %v6080_v37, %v5641_v31 }
 0xf5f   :  { %v6893_v45 = vmul.f32 %v6273_v23, %v3162_v57  ;;  %v6275_v0 = vpop.eup %6274  ;;  %v6039_v23 = vld [vmem:[#allocation9 + $0xb4] sm:$0xf0]  ;;  %v5525_v57 = vor.u32 %v6049_v24, %v5522_v46  ;;  %v6086_v24 = vld [vmem:[#allocation9 + $0xe4] sm:$0xf]  ;;  %v5675_v46 = vld [vmem:[#allocation9 + $0xf0] sm:$0xf0] }
 0xf60   :  { %v3211_v3 = vadd.f32 1.0, %v6275_v0  ;;  %v5473_v61 = vor.u32 %v6039_v23, %v5472_v50  ;;  %v5609_v50 = vld [vmem:[#allocation9 + $0x60] sm:$0xf]  ;;  %v6072_v23 = vld [vmem:[#allocation9 + $0x6c] sm:$0xf0] }
 0xf61   :  { %v6897_v63 = vpack.c.bf16 %v6893_v45, %v6893_v45  ;;  %3592 = vmatpush.bf16.msrb.mxu1 %v5525_v57  ;;  %v5610_v57 = vor.u32 %v6072_v23, %v5609_v50  ;;  %v5651_v50 = vld [vmem:[#allocation9 + $0xb8] sm:$0xf0] }
 0xf62   :  { %6276 = vrcp.f32 %v3211_v3  ;;  %v3223_v11 = vand.u32 2147483648, %v3211_v3  ;;  %vm3217_vm1 = vweird.f32 %v3211_v3  ;;  %v3221_v38 = vand.u32 2147483647, %v3211_v3 }
 0xf63   :  { %3502 = vmatmul.bf16.vlgmr.msrb.gmra.mxu0 %v6897_v63  ;;  %3528 = vmatmul.bf16.vlgmr.msra.gmra.mxu1 %v6897_v63 }
 0xf64   :  { %v3224_v7 = vor.u32 1.1754944e-38, %v3223_v11  ;;  %vm3222_vm4 = vcmp.eq.f32.partialorder %v3221_v38, 8.507059e+37  ;;  %v6055_v11 = vld [vmem:[#allocation9 + $0x134] sm:$0xf0]  ;;  %v5440_v38 = vld [vmem:[#allocation9 + $0x68] sm:$0xf] }
 0xf68   :  { %v6277_v43 = vpop.eup %6276 }
 0xf69   :  { %v3213_v53 = vmul.f32 %v6277_v43, %v3211_v3  ;;  %vm3218_vm0 = vweird.f32 %v6277_v43 }
 0xf6a   :  { %vm3219_vm3 = vmor %vm3217_vm1, %vm3218_vm0 }
 0xf6b   :  { %v3214_v52 = vsub.f32 1.0, %v3213_v53  ;;  %v5456_v53 = vld [vmem:[#allocation9 + $0x88] sm:$0xf] }
 0xf6d   :  { %v3215_v6 = vmul.f32 %v6277_v43, %v3214_v52  ;;  %v6035_v52 = vld [vmem:[#allocation9 + $0x94] sm:$0xf0] }
 0xf6f   :  { %v3216_v5 = vadd.f32 %v6277_v43, %v3215_v6  ;;  %v5457_v6 = vor.u32 %v6035_v52, %v5456_v53  ;;  %v6068_v53 = vld [vmem:[#allocation9 + $0x4c] sm:$0xf0] }
 0xf71   :  { %v3220_v58 = vsel %vm3219_vm3, %v6277_v43, %v3216_v5  ;;  %v5536_v5 = vld [vmem:[#allocation9 + $0x128] sm:$0xf] }
 0xf72   :  { %v3225_v32 = vsel %vm3222_vm4, %v3224_v7, %v3220_v58  ;;  %v5537_v58 = vor.u32 %v6055_v11, %v5536_v5  ;;  %v6031_v7 = vld [vmem:[#allocation9 + $0x74] sm:$0xf0]  ;;  %v5643_v5 = vld [vmem:[#allocation9 + $0xb0] sm:$0xf0] }
 0xf73   :  { %3580 = vmatmul.bf16.vlgmr.msra.gmra.mxu0 %v6897_v63  ;;  %v3228_v40 = vmul.f32 %v3225_v32, %v6861_v55  ;;  %v5513_v55 = vor.u32 %v6050_v12, %v5512_v59  ;;  %v6019_v59 = vld [vmem:[#allocation9 + $0x14] sm:$0xf0] }
 0xf74   :  { %3565 = vmatpush.bf16.msrb.mxu3 %v5537_v58  ;;  %v5393_v16 = vor.u32 %v6019_v59, %v5392_v54  ;;  %v6064_v58 = vld [vmem:[#allocation9 + $0x2c] sm:$0xf0]  ;;  %v6070_v54 = vld [vmem:[#allocation9 + $0x64] sm:$0xf]  ;;  %v5611_v59 = vld [vmem:[#allocation9 + $0x70] sm:$0xf0] }
 0xf75   :  { %3514 = vmatpush.bf16.msra.mxu2 %v5513_v55  ;;  %v6088_v55 = vld [vmem:[#allocation9 + $0xec] sm:$0xf0] }
 0xf76   :  { %v5674_v41 = vor.u32 %v6088_v55, %v5673_v34 }
 0xf79   :  { %3546 = vmatpush.bf16.msrb.mxu2 %v5505_v14  ;;  %v6084_v14 = vld [vmem:[#allocation9 + $0xcc] sm:$0xf0] }
 0xf7a   :  { %v5658_v30 = vor.u32 %v6084_v14, %v5657_v60  ;;  %v6066_v60 = vld [vmem:[#allocation9 + $0x44] sm:$0xf]  ;;  %v5595_v14 = vld [vmem:[#allocation9 + $0x50] sm:$0xf0] }
 0xf7d   :  { %3547 = vmatpush.bf16.msrb.mxu2 %v5489_v62  ;;  %v5678_v62 = vor.u32 %v6086_v24, %v5675_v46  ;;  %v5579_v24 = vld [vmem:[#allocation9 + $0x30] sm:$0xf0]  ;;  %v6079_v46 = vld [vmem:[#allocation9 + $0xac] sm:$0xf] }
 0xf81   :  { %3548 = vmatpush.bf16.msrb.mxu2 %v5473_v61  ;;  %v6082_v61 = vld [vmem:[#allocation9 + $0xc4] sm:$0xf] }
 0xf85   :  { %3549 = vmatpush.bf16.msrb.mxu2 %v5457_v6  ;;  %v6078_v6 = vld [vmem:[#allocation9 + $0xa4] sm:$0xf] }
 0xf86   :  { %v5646_v11 = vor.u32 %v6078_v6, %v5643_v5  ;;  %v5635_v5 = vld [vmem:[#allocation9 + $0x98] sm:$0xf0] }
 0xfb8   :  { %v3231_v44 = vpop.permute.xlu2 %3230 }
 0xfb9   :  { %v3233_v18 = vmul.f32 %v3231_v44, %v3225_v32  ;;  %v5424_v44 = vld [vmem:[#allocation9 + $0x48] sm:$0xf] }
 0xfbb   :  { %3235 = vrot.lane.b32.xlu0 %v3233_v18, %s6431_s21  ;;  %v6027_v18 = vld [vmem:[#allocation9 + $0x54] sm:$0xf0] }
 0xfe0   :  { %v6903_v8 = vpop.f32.mrf.mxu0  ;;  %v6905_v19 = vpop.f32.mrf.mxu1 }
 0xfe8   :  { %v3505_v20 = vpop.f32.mrf.mxu0  ;;  %v3531_v48 = vpop.f32.mrf.mxu1 }
 0xfe9   :  { %v5441_v20 = vor.u32 %v6031_v7, %v5440_v38  ;;  %v5520_v48 = vld [vmem:[#allocation9 + $0x108] sm:$0xf]  ;;  %v5577_v38 = vld [vmem:[#allocation9 + $0x20] sm:$0xf] }
 0xfeb   :  { %3550 = vmatpush.bf16.msrb.mxu2 %v5441_v20  ;;  %v5627_v20 = vld [vmem:[#allocation9 + $0x90] sm:$0xf0] }
 0xff0   :  { %v6907_v21 = vpop.f32.mrf.mxu0 }
 0xff1   :  { %v3582_v7 = vadd.f32 %v6907_v21, %v6575_v17  ;;  %v3530_v21 = vadd.f32 %v6905_v19, %v6565_v47  ;;  %v5667_v19 = vld [vmem:[#allocation9 + $0xd8] sm:$0xf0] }
 0xff8   :  { %v3583_v51 = vpop.f32.mrf.mxu0 }
 0xff9   :  { %v6051_v51 = vld [vmem:[#allocation9 + $0x114] sm:$0xf0] }
0x102d   :  { %v3236_v10 = vpop.permute.xlu0 %3235 }
0x102e   :  { %v6910_v36 = vadd.f32 %v3236_v10, %v3228_v40  ;;  %v5425_v40 = vor.u32 %v6027_v18, %v5424_v44  ;;  %v5408_v10 = vld [vmem:[#allocation9 + $0x28] sm:$0xf]  ;;  %v5578_v44 = vor.u32 %v6064_v58, %v5577_v38  ;;  %v6074_v18 = vld [vmem:[#allocation9 + $0x84] sm:$0xf] }
0x1030   :  { %6278 = vtanh.f32 %v6910_v36  ;;  %3551 = vmatpush.bf16.msrb.mxu2 %v5425_v40  ;;  %v5561_v40 = vld [vmem:[#allocation9] sm:$0xf] }
0x1036   :  { %v6279_v4 = vpop.eup %6278 }
0x1037   :  { %3241 = vrot.lane.b32.xlu1 %v6279_v4, %s6423_s9  ;;  %v6023_v4 = vld [vmem:[#allocation9 + $0x34] sm:$0xf0] }
0x1038   :  { %v5409_v13 = vor.u32 %v6023_v4, %v5408_v10  ;;  %v6060_v10 = vld [vmem:[#allocation9 + $0xc] sm:$0xf0] }
0x103a   :  { %3552 = vmatpush.bf16.msrb.mxu2 %v5409_v13  ;;  %v5562_v13 = vor.u32 %v6060_v10, %v5561_v40 }
0x103e   :  { %3553 = vmatpush.bf16.msrb.mxu2 %v5393_v16  ;;  %v3504_v16 = vadd.f32 %v6903_v8, %v6547_v2 }
0x10a9   :  { %v3242_v0 = vpop.permute.xlu1 %3241 }
0x10aa   :  { %v3244_v3 = vmul.f32 %v3242_v0, %v3225_v32  ;;  %v5521_v32 = vor.u32 %v6051_v51, %v5520_v48  ;;  %v5659_v0 = vld [vmem:[#allocation9 + $0xd0] sm:$0xf0]  ;;  %v5630_v51 = vor.u32 %v6074_v18, %v5627_v20  ;;  %v5619_v18 = vld [vmem:[#allocation9 + $0x78] sm:$0xf0] }
0x10ac   :  { %v3663_v43 = vpack.c.bf16 %v3244_v3, %v3244_v3  ;;  %3246 = vrot.lane.b32.xlu2 %v3244_v3, %s6431_s21  ;;  %3566 = vmatpush.bf16.msrb.mxu3 %v5521_v32  ;;  %v5662_v3 = vor.u32 %v6082_v61, %v5659_v0  ;;  %v5654_v61 = vor.u32 %v6079_v46, %v5651_v50 }
0x10ae   :  { %3669 = vrot.lane.b32.xlu0 %v3663_v43, %s6431_s21  ;;  %v5593_v43 = vld [vmem:[#allocation9 + $0x40] sm:$0xf] }
0x10af   :  { %v5594_v52 = vor.u32 %v6068_v53, %v5593_v43  ;;  %v5563_v43 = vld [vmem:[#allocation9 + $0x10] sm:$0xf0]  ;;  %v6075_v53 = vld [vmem:[#allocation9 + $0x8c] sm:$0xf] }
0x10b0   :  { %v5638_v58 = vor.u32 %v6075_v53, %v5635_v5 }
0x1106   :  { %v3247_v12 = vpop.permute.xlu2 %3246 }
0x1107   :  { %v3250_v28 = vpack.c.bf16 %v3247_v12, %v3247_v12  ;;  %v5614_v12 = vor.u32 %v6070_v54, %v5611_v59 }
0x1109   :  { %5542 = vmatmul.msk.bf16.vlgmr.msra.gmra.mxu2 %vm238_vm7, %v3250_v28  ;;  %5543 = vmatmul.msk.bf16.vlgmr.msra.gmra.mxu3 %vm238_vm7, %v3250_v28 }
0x110a   :  { %5545 = vmatmul.msk.bf16.vlgmr.msrb.gmra.mxu1 %vm238_vm7, %v3250_v28  ;;  %3692 = vmatpush.bf16.msra.mxu3 %v6057_v26  ;;  %v6087_v26 = vld [vmem:[#allocation9 + $0xec] sm:$0xf] }
0x110b   :  { %3986 = vmatpush.bf16.msra.mxu2 %v5674_v41 }
0x110e   :  { %3693 = vmatpush.bf16.msra.mxu3 %v6056_v49 }
0x110f   :  { %3987 = vmatpush.bf16.msra.mxu2 %v5658_v30  ;;  %v6083_v30 = vld [vmem:[#allocation9 + $0xcc] sm:$0xf] }
0x1113   :  { %3988 = vmatpush.bf16.msra.mxu2 %v5642_v39  ;;  %v5598_v39 = vor.u32 %v6066_v60, %v5595_v14 }
0x1119   :  { %3554 = vmatmul.bf16.vlgmr.msrb.gmra.mxu2 %v6897_v63  ;;  %5544 = vmatmul.msk.bf16.vlgmr.msrb.gmra.mxu3 %vm238_vm7, %v3250_v28  ;;  %v5626_v63 = vor.u32 %v6076_v9, %v5625_v29  ;;  %v5683_v28 = vld [vmem:[#allocation9 + $0xf8] sm:$0xf0]  ;;  %v5670_v29 = vor.u32 %v6083_v30, %v5667_v19  ;;  %v6059_v30 = vld [vmem:[#allocation9 + $0xc] sm:$0xf] }
0x111a   :  { %4012 = vmatpush.bf16.msrb.mxu3 %v5678_v62  ;;  %v5686_v34 = vor.u32 %v6087_v26, %v5683_v28 }
0x111b   :  { %3989 = vmatpush.bf16.msra.mxu2 %v5626_v63  ;;  %v6062_v63 = vld [vmem:[#allocation9 + $0x24] sm:$0xf] }
0x111c   :  { %v5582_v62 = vor.u32 %v6062_v63, %v5579_v24 }
0x111e   :  { %4013 = vmatpush.bf16.msrb.mxu3 %v5662_v3  ;;  %v6058_v3 = vld [vmem:[#allocation9 + $0x4] sm:$0xf] }
0x111f   :  { %3990 = vmatpush.bf16.msra.mxu2 %v5610_v57  ;;  %v5566_v6 = vor.u32 %v6058_v3, %v5563_v43 }
0x1120   :  { %v3670_v27 = vpop.permute.xlu0 %3669 }
0x1122   :  { %4014 = vmatpush.bf16.msrb.mxu3 %v5646_v11 }
0x1123   :  { %3991 = vmatpush.bf16.msra.mxu2 %v5594_v52 }
0x1126   :  { %4015 = vmatpush.bf16.msrb.mxu3 %v5630_v51  ;;  %v6067_v51 = vld [vmem:[#allocation9 + $0x4c] sm:$0xf] }
0x1127   :  { %3992 = vmatpush.bf16.msra.mxu2 %v5578_v44  ;;  %v6071_v44 = vld [vmem:[#allocation9 + $0x6c] sm:$0xf] }
0x1128   :  { %v5622_v10 = vor.u32 %v6071_v44, %v5619_v18 }
0x1129   :  { %5557 = vmatmul.msk.bf16.vlgmr.msra.gmra.mxu3 %vm238_vm7, %v3670_v27 }
0x112a   :  { %4016 = vmatpush.bf16.msrb.mxu3 %v5614_v12 }
0x112b   :  { %3993 = vmatpush.bf16.msra.mxu2 %v5562_v13 }
0x112e   :  { %4017 = vmatpush.bf16.msrb.mxu3 %v5598_v39 }
0x112f   :  { %4064 = vmatpush.bf16.msrb.mxu2 %v5686_v34 }
0x1132   :  { %4018 = vmatpush.bf16.msrb.mxu3 %v5582_v62 }
0x1133   :  { %4065 = vmatpush.bf16.msrb.mxu2 %v5670_v29 }
0x1136   :  { %4019 = vmatpush.bf16.msrb.mxu3 %v5566_v6 }
0x1137   :  { %4066 = vmatpush.bf16.msrb.mxu2 %v5654_v61 }
0x113b   :  { %4067 = vmatpush.bf16.msrb.mxu2 %v5638_v58 }
0x113f   :  { %4068 = vmatpush.bf16.msrb.mxu2 %v5622_v10 }
0x1187   :  { %v3594_v48 = vpop.f32.mrf.mxu1 }
0x1188   :  { %v3595_v32 = vadd.f32 %v3594_v48, %v3582_v7 }
0x118a   :  { %v5548_v4 = vmul.f32 -1.442695, %v3595_v32  ;;  %v5603_v32 = vld [vmem:[#allocation9 + $0x58] sm:$0xf0] }
0x118b   :  { %v5606_v13 = vor.u32 %v6067_v51, %v5603_v32 }
0x118c   :  { %6280 = vpow2.f32 %v5548_v4  ;;  %v3516_v49 = vpop.f32.mrf.mxu2  ;;  %v3542_v27 = vpop.f32.mrf.mxu3 }
0x118d   :  { %v3517_v55 = vadd.f32 %v3516_v49, %v3504_v16  ;;  %v3543_v41 = vadd.f32 %v3542_v27, %v3530_v21  ;;  %v6063_v16 = vld [vmem:[#allocation9 + $0x2c] sm:$0xf]  ;;  %v5587_v21 = vld [vmem:[#allocation9 + $0x38] sm:$0xf0]  ;;  %4069 = vmatpush.bf16.msrb.mxu2 %v5606_v13 }
0x118e   :  { %v5590_v34 = vor.u32 %v6063_v16, %v5587_v21 }
0x118f   :  { %v5546_v31 = vmul.f32 -1.442695, %v3517_v55  ;;  %v5547_v8 = vmul.f32 -1.442695, %v3543_v41  ;;  %v3596_v37 = vpop.f32.mrf.mxu1 }
0x1191   :  { %6282 = vpow2.f32 %v5546_v31  ;;  %v5571_v31 = vld [vmem:[#allocation9 + $0x18] sm:$0xf0]  ;;  %4070 = vmatpush.bf16.msrb.mxu2 %v5590_v34 }
0x1192   :  { %v6281_v9 = vpop.eup %6280  ;;  %6284 = vpow2.f32 %v5547_v8  ;;  %v5574_v24 = vor.u32 %v6059_v30, %v5571_v31 }
0x1193   :  { %v6928_v0 = vadd.f32 1.0, %v6281_v9 }
0x1194   :  { %v3518_v23 = vpop.f32.mrf.mxu2  ;;  %v3544_v57 = vpop.f32.mrf.mxu3 }
0x1195   :  { %6286 = vrcp.f32 %v6928_v0  ;;  %4071 = vmatpush.bf16.msrb.mxu2 %v5574_v24  ;;  %vm3646_vm15 = vweird.f32 %v6928_v0  ;;  %v3650_v44 = vand.u32 2147483647, %v6928_v0  ;;  %v5689_v24 = vld [vmem:[#allocation9 + $0x100] sm:$0xf] }
0x1197   :  { %v6283_v52 = vpop.eup %6282  ;;  %vm3651_vm0 = vcmp.eq.f32.partialorder %v3650_v44, 8.507059e+37 }
0x1198   :  { %v6285_v11 = vpop.eup %6284  ;;  %v3601_v38 = vadd.f32 1.0, %v6283_v52 }
0x1199   :  { %v3620_v7 = vadd.f32 1.0, %v6285_v11 }
0x119a   :  { %6288 = vrcp.f32 %v3601_v38  ;;  %v3613_v41 = vand.u32 2147483648, %v3601_v38  ;;  %v3611_v39 = vand.u32 2147483647, %v3601_v38  ;;  %vm3607_vm8 = vweird.f32 %v3601_v38 }
0x119b   :  { %6290 = vrcp.f32 %v3620_v7  ;;  %v6932_v4 = vpop.eup %6286  ;;  %v3632_v8 = vand.u32 2147483648, %v3620_v7  ;;  %v3630_v29 = vand.u32 2147483647, %v3620_v7  ;;  %vm3626_vm9 = vweird.f32 %v3620_v7 }
0x119c   :  { %v3555_v20 = vpop.f32.mrf.mxu2  ;;  %v3568_v48 = vpop.f32.mrf.mxu3  ;;  %v3642_v49 = vmul.f32 %v6932_v4, %v6928_v0  ;;  %v3614_v46 = vor.u32 1.1754944e-38, %v3613_v41  ;;  %vm3612_vm12 = vcmp.eq.f32.partialorder %v3611_v39, 8.507059e+37  ;;  %vm3647_vm14 = vweird.f32 %v6932_v4 }
0x119d   :  { %v3556_v40 = vadd.f32 %v3555_v20, %v6557_v22  ;;  %v3633_v50 = vor.u32 1.1754944e-38, %v3632_v8  ;;  %vm3631_vm13 = vcmp.eq.f32.partialorder %v3630_v29, 8.507059e+37  ;;  %vm3648_vm2 = vmor %vm3646_vm15, %vm3647_vm14 }
0x119e   :  { %v3643_v9 = vsub.f32 1.0, %v3642_v49 }
0x119f   :  { %v3569_v59 = vadd.f32 %v3568_v48, %v3556_v40 }
0x11a0   :  { %v6289_v54 = vpop.eup %6288  ;;  %v3644_v43 = vmul.f32 %v6932_v4, %v3643_v9  ;;  %v5705_v9 = vld [vmem:[#allocation9 + $0x120] sm:$0xf] }
0x11a1   :  { %v6291_v12 = vpop.eup %6290  ;;  %v3603_v26 = vmul.f32 %v6289_v54, %v3601_v38  ;;  %6292 = vtanh.f32 %v3569_v59  ;;  %vm3608_vm5 = vweird.f32 %v6289_v54 }
0x11a2   :  { %v3622_v28 = vmul.f32 %v6291_v12, %v3620_v7  ;;  %vm3627_vm6 = vweird.f32 %v6291_v12  ;;  %vm3609_vm10 = vmor %vm3607_vm8, %vm3608_vm5  ;;  %v3645_v58 = vadd.f32 %v6932_v4, %v3644_v43  ;;  %v3652_v7 = vand.u32 2147483648, %v6928_v0 }
0x11a3   :  { %v3604_v27 = vsub.f32 1.0, %v3603_v26  ;;  %vm3628_vm11 = vmor %vm3626_vm9, %vm3627_vm6 }
0x11a4   :  { %v3623_v55 = vsub.f32 1.0, %v3622_v28  ;;  %v3557_v60 = vpop.f32.mrf.mxu2  ;;  %v3570_v14 = vpop.f32.mrf.mxu3  ;;  %v3653_v18 = vor.u32 1.1754944e-38, %v3652_v7  ;;  %v6085_v7 = vld [vmem:[#allocation9 + $0xd4] sm:$0xf0] }
0x11a5   :  { %v3605_v37 = vmul.f32 %v6289_v54, %v3604_v27 }
0x11a6   :  { %v3624_v19 = vmul.f32 %v6291_v12, %v3623_v55 }
0x11a7   :  { %v3606_v63 = vadd.f32 %v6289_v54, %v3605_v37  ;;  %v6293_v57 = vpop.eup %6292 }
0x11a8   :  { %v3625_v62 = vadd.f32 %v6291_v12, %v3624_v19 }
0x11a9   :  { %v3610_v23 = vsel %vm3609_vm10, %v6289_v54, %v3606_v63  ;;  %v6096_v63 = vld [vmem:[#allocation9 + $0x12c] sm:$0xf0] }
0x11aa   :  { %v3615_v61 = vsel %vm3612_vm12, %v3614_v46, %v3610_v23  ;;  %v3629_v3 = vsel %vm3628_vm11, %v6291_v12, %v3625_v62  ;;  %v5706_v46 = vor.u32 %v6096_v63, %v5705_v9  ;;  %v6092_v62 = vld [vmem:[#allocation9 + $0x10c] sm:$0xf0]  ;;  %v5707_v23 = vld [vmem:[#allocation9 + $0x130] sm:$0xf0]  ;;  %v6061_v9 = vld [vmem:[#allocation9 + $0x14] sm:$0xf0] }
0x11ab   :  { %v3634_v53 = vsel %vm3631_vm13, %v3633_v50, %v3629_v3  ;;  %v3657_v52 = vmul.f32 %v6293_v57, %v3615_v61  ;;  %v6094_v50 = vld [vmem:[#allocation9 + $0x124] sm:$0xf]  ;;  %v5681_v61 = vld [vmem:[#allocation9 + $0xe8] sm:$0xf]  ;;  %v6089_v3 = vld [vmem:[#allocation9 + $0xf4] sm:$0xf0]  ;;  %v5690_v43 = vor.u32 %v6092_v62, %v5689_v24 }
0x11ac   :  { %v3656_v6 = vmul.f32 %v3634_v53, %v6886_v33  ;;  %v3695_v5 = vpop.f32.mrf.mxu3  ;;  %v3649_v33 = vsel %vm3648_vm2, %v6932_v4, %v3645_v58  ;;  %v5710_v57 = vor.u32 %v6094_v50, %v5707_v23  ;;  %4005 = vmatpush.bf16.msra.mxu1 %v5706_v46  ;;  %v6095_v53 = vld [vmem:[#allocation9 + $0x12c] sm:$0xf]  ;;  %v5691_v58 = vld [vmem:[#allocation9 + $0x110] sm:$0xf0]  ;;  %v6104_v50 = vld [vmem:[%s7023_s5 + $0x30] sm:$0xff] }
0x11ad   :  { %v3699_v11 = vadd.f32 %v3695_v5, %v6562_v35  ;;  %v3654_v51 = vsel %vm3651_vm0, %v3653_v18, %v3649_v33  ;;  %v5713_v33 = vld [vmem:[#allocation9 + $0x128] sm:$0xf]  ;;  %v6097_v18 = vld [vmem:[#allocation9 + $0x134] sm:$0xf0] }
0x11ae   :  { %v6939_v38 = vadd.f32 %v3657_v52, %v3656_v6  ;;  %4031 = vmatpush.bf16.msrb.mxu0 %v5710_v57  ;;  %v5682_v52 = vor.u32 %v6089_v3, %v5681_v61  ;;  %v5665_v6 = vld [vmem:[#allocation9 + $0xc8] sm:$0xf]  ;;  %v6103_v23 = vld [vmem:[%s7023_s5 + $0x28] sm:$0xff]  ;;  %v6102_v57 = vld [vmem:[%s7023_s5 + $0x20] sm:$0xff] }
0x11af   :  { %6294 = vtanh.f32 %v3699_v11  ;;  %v5558_v0 = vmul.f32 -1.442695, %v3699_v11  ;;  %v6090_v11 = vld [vmem:[#allocation9 + $0x104] sm:$0xf]  ;;  %v6105_v46 = vld [vmem:[%s7023_s5 + $0x38] sm:$0xff] }
0x11b0   :  { %6296 = vtanh.f32 %v6939_v38  ;;  %v5694_v44 = vor.u32 %v6090_v11, %v5691_v58  ;;  %4006 = vmatpush.bf16.msra.mxu1 %v5690_v43  ;;  %v6101_v61 = vld [vmem:[%s7023_s5 + $0x18] sm:$0xff]  ;;  %v6100_v3 = vld [vmem:[%s7023_s5 + $0x10] sm:$0xff]  ;;  %v6099_v43 = vld [vmem:[%s7023_s5 + $0x8] sm:$0xff] }
0x11b1   :  { %6298 = vpow2.f32 %v5558_v0  ;;  %v5666_v0 = vor.u32 %v6085_v7, %v5665_v6 }
0x11b2   :  { %4032 = vmatpush.bf16.msrb.mxu0 %v5694_v44 }
0x11b4   :  { %v3697_v35 = vpop.f32.mrf.mxu3  ;;  %4038 = vmatpush.bf16.msrb.mxu1 %v5682_v52  ;;  %v4164_v52 = vpack.c.bf16 %v6893_v45, %v6844_v1 }
0x11b5   :  { %v6295_v20 = vpop.eup %6294  ;;  %v5714_v35 = vor.u32 %v6097_v18, %v5713_v33 }
0x11b6   :  { %v6297_v48 = vpop.eup %6296  ;;  %3722 = vrot.lane.b32.xlu1 %v6295_v20, %s6423_s9  ;;  %v6091_v20 = vld [vmem:[#allocation9 + $0x10c] sm:$0xf] }
0x11b7   :  { %v6949_v32 = vmul.f32 %v6297_v48, %v3654_v51  ;;  %v6299_v10 = vpop.eup %6298  ;;  %v5699_v48 = vld [vmem:[#allocation9 + $0x118] sm:$0xf0]  ;;  %4057 = vmatpush.bf16.msra.mxu0 %v5714_v35 }
0x11b8   :  { %v3703_v4 = vadd.f32 1.0, %v6299_v10  ;;  %v5702_v51 = vor.u32 %v6091_v20, %v5699_v48  ;;  %v5649_v10 = vld [vmem:[#allocation9 + $0xa8] sm:$0xf]  ;;  %4039 = vmatpush.bf16.msrb.mxu1 %v5666_v0 }
0x11b9   :  { %v6953_v40 = vpack.c.bf16 %v6949_v32, %v6949_v32 }
0x11ba   :  { %6300 = vrcp.f32 %v3703_v4  ;;  %v3715_v12 = vand.u32 2147483648, %v3703_v4  ;;  %vm3709_vm3 = vweird.f32 %v3703_v4  ;;  %v3713_v26 = vand.u32 2147483647, %v3703_v4 }
0x11bb   :  { %3994 = vmatmul.bf16.vlgmr.msra.gmra.mxu2 %v6953_v40  ;;  %4020 = vmatmul.bf16.vlgmr.msrb.gmra.mxu3 %v6953_v40 }
0x11bc   :  { %v3716_v49 = vor.u32 1.1754944e-38, %v3715_v12  ;;  %vm3714_vm5 = vcmp.eq.f32.partialorder %v3713_v26, 8.507059e+37  ;;  %v5697_v26 = vld [vmem:[#allocation9 + $0x108] sm:$0xf] }
0x11c0   :  { %v6301_v13 = vpop.eup %6300 }
0x11c1   :  { %v3705_v54 = vmul.f32 %v6301_v13, %v3703_v4  ;;  %vm3710_vm1 = vweird.f32 %v6301_v13  ;;  %v6081_v4 = vld [vmem:[#allocation9 + $0xb4] sm:$0xf0] }
0x11c2   :  { %vm3711_vm4 = vmor %vm3709_vm3, %vm3710_vm1 }
0x11c3   :  { %v3706_v59 = vsub.f32 1.0, %v3705_v54 }
0x11c5   :  { %v3707_v16 = vmul.f32 %v6301_v13, %v3706_v59 }
0x11c7   :  { %v3708_v21 = vadd.f32 %v6301_v13, %v3707_v16  ;;  %v5633_v16 = vld [vmem:[#allocation9 + $0x88] sm:$0xf] }
0x11c9   :  { %v3712_v28 = vsel %vm3711_vm4, %v6301_v13, %v3708_v21  ;;  %v5650_v13 = vor.u32 %v6081_v4, %v5649_v10  ;;  %v6077_v21 = vld [vmem:[#allocation9 + $0x94] sm:$0xf0] }
0x11ca   :  { %v3717_v34 = vsel %vm3714_vm5, %v3716_v49, %v3712_v28  ;;  %v5634_v12 = vor.u32 %v6077_v21, %v5633_v16  ;;  %v6093_v28 = vld [vmem:[#allocation9 + $0x114] sm:$0xf0] }
0x11cb   :  { %4072 = vmatmul.bf16.vlgmr.msrb.gmra.mxu2 %v6953_v40  ;;  %v3720_v37 = vmul.f32 %v3717_v34, %v6910_v36  ;;  %v5715_v36 = vld [vmem:[#allocation9 + $0x138] sm:$0xf0]  ;;  %4040 = vmatpush.bf16.msrb.mxu1 %v5650_v13  ;;  %v5698_v49 = vor.u32 %v6093_v28, %v5697_v26 }
0x11cc   :  { %v5718_v5 = vor.u32 %v6095_v53, %v5715_v36  ;;  %v6098_v53 = vld [vmem:[%s7023_s5] sm:$0xff]  ;;  %v4163_v36 = vpack.c.bf16 %v6787_v25, %v6719_v15 }
0x11cd   :  { %4058 = vmatpush.bf16.msra.mxu0 %v5698_v49 }
0x11ce   :  { %4083 = vmatpush.bf16.msra.mxu3 %v5718_v5 }
0x11cf   :  { %4041 = vmatpush.bf16.msrb.mxu1 %v5634_v12 }
0x11d2   :  { %4084 = vmatpush.bf16.msra.mxu3 %v5702_v51 }
0x1228   :  { %v3723_v27 = vpop.permute.xlu1 %3722 }
0x1229   :  { %v3725_v55 = vmul.f32 %v3723_v27, %v3717_v34  ;;  %v5617_v27 = vld [vmem:[#allocation9 + $0x68] sm:$0xf] }
0x122b   :  { %3727 = vrot.lane.b32.xlu2 %v3725_v55, %s6431_s21  ;;  %v6073_v55 = vld [vmem:[#allocation9 + $0x74] sm:$0xf0] }
0x123e   :  { %v6959_v41 = vpop.f32.mrf.mxu2  ;;  %v6961_v60 = vpop.f32.mrf.mxu3 }
0x123f   :  { %v3996_v6 = vadd.f32 %v6959_v41, %v6547_v2  ;;  %v4022_v5 = vadd.f32 %v6961_v60, %v6565_v47 }
0x1246   :  { %v3997_v14 = vpop.f32.mrf.mxu2  ;;  %v4023_v30 = vpop.f32.mrf.mxu3 }
0x1247   :  { %v5618_v14 = vor.u32 %v6073_v55, %v5617_v27  ;;  %v5601_v30 = vld [vmem:[#allocation9 + $0x48] sm:$0xf] }
0x1249   :  { %4042 = vmatpush.bf16.msrb.mxu1 %v5618_v14 }
0x124e   :  { %v6963_v31 = vpop.f32.mrf.mxu2 }
0x124f   :  { %v4074_v15 = vadd.f32 %v6963_v31, %v6575_v17 }
0x1256   :  { %v4075_v8 = vpop.f32.mrf.mxu2 }
0x1257   :  { %v6069_v8 = vld [vmem:[#allocation9 + $0x54] sm:$0xf0] }
0x1285   :  { %v3728_v39 = vpop.permute.xlu2 %3727 }
0x1286   :  { %v3730_v19 = vadd.f32 %v3728_v39, %v3720_v37  ;;  %v5602_v37 = vor.u32 %v6069_v8, %v5601_v30  ;;  %v5585_v39 = vld [vmem:[#allocation9 + $0x28] sm:$0xf] }
0x1288   :  { %6302 = vtanh.f32 %v3730_v19  ;;  %v6065_v19 = vld [vmem:[#allocation9 + $0x34] sm:$0xf0]  ;;  %4043 = vmatpush.bf16.msrb.mxu1 %v5602_v37 }
0x128e   :  { %v6303_v29 = vpop.eup %6302 }
0x128f   :  { %3733 = vrot.lane.b32.xlu0 %v6303_v29, %s6423_s9  ;;  %v5569_v29 = vld [vmem:[#allocation9 + $0x8] sm:$0xf] }
0x1290   :  { %v5570_v63 = vor.u32 %v6061_v9, %v5569_v29  ;;  %v6127_v29 = vld [vmem:[%s7024_s6] ss:$0 sm:$0xff]  ;;  %s6433_s6 = smov [#allocation10]  }
0x1291   :  { %s4275_s25 = sshll.u32 %s6433_s6, 4  ;;  %s4276_s25 = int_to_ptr.vmem [resolvable:$true] %s4275_s25 }
0x1301   :  { %v3734_v54 = vpop.permute.xlu0 %3733 }
0x1302   :  { %v3736_v59 = vmul.f32 %v3734_v54, %v3717_v34  ;;  %v5586_v34 = vor.u32 %v6065_v19, %v5585_v39 }
0x1304   :  { %3738 = vrot.lane.b32.xlu1 %v3736_v59, %s6431_s21  ;;  %4044 = vmatpush.bf16.msrb.mxu1 %v5586_v34 }
0x1308   :  { %4045 = vmatpush.bf16.msrb.mxu1 %v5570_v63 }
0x1376   :  { %v3739_v24 = vpop.permute.xlu1 %3738 }
0x1377   :  { %v3742_v62 = vpack.c.bf16 %v3739_v24, %v3739_v24 }
0x1379   :  { %5719 = vmatmul.msk.bf16.vlgmr.msra.gmra.mxu1 %vm238_vm7, %v3742_v62  ;;  %5720 = vmatmul.msk.bf16.vlgmr.msrb.gmra.mxu0 %vm238_vm7, %v3742_v62 }
0x137a   :  { %5722 = vmatmul.msk.bf16.vlgmr.msra.gmra.mxu3 %vm238_vm7, %v3742_v62  ;;  %4234 = vmatpush.bf16.msrb.mxu0 %v6105_v46 }
0x137e   :  { %4235 = vmatpush.bf16.msrb.mxu0 %v6104_v50 }
0x1382   :  { %4236 = vmatpush.bf16.msrb.mxu0 %v6103_v23 }
0x1386   :  { %4237 = vmatpush.bf16.msrb.mxu0 %v6102_v57 }
0x1389   :  { %4046 = vmatmul.bf16.vlgmr.msrb.gmra.mxu1 %v6953_v40  ;;  %5721 = vmatmul.msk.bf16.vlgmr.msra.gmra.mxu0 %vm238_vm7, %v3742_v62  ;;  %v4162_v40 = vpack.c.bf16 %v6671_v42, %v6586_v56 }
0x138a   :  { %4238 = vmatpush.bf16.msrb.mxu0 %v6101_v61 }
0x138e   :  { %4239 = vmatpush.bf16.msrb.mxu0 %v6100_v3 }
0x1392   :  { %4240 = vmatpush.bf16.msrb.mxu0 %v6099_v43 }
0x1396   :  { %4241 = vmatpush.bf16.msrb.mxu0 %v6098_v53 }
0x1399   :  { %4242 = vmatmul.bf16.vlgmr.msrb.gmra.mxu0 %v4162_v40 }
0x13a9   :  { %4247 = vmatmul.bf16.gmra.mxu0 %v4163_v36 }
0x13b9   :  { %4252 = vmatmul.bf16.gmra.mxu0 %v4164_v52 }
0x13f6   :  { %v4008_v11 = vpop.f32.mrf.mxu1  ;;  %v4034_v58 = vpop.f32.mrf.mxu0 }
0x13f7   :  { %v4009_v7 = vadd.f32 %v4008_v11, %v3996_v6  ;;  %v4035_v44 = vadd.f32 %v4034_v58, %v4022_v5 }
0x13f9   :  { %v5723_v56 = vmul.f32 -1.442695, %v4009_v7  ;;  %v5724_v42 = vmul.f32 -1.442695, %v4035_v44 }
0x13fb   :  { %6304 = vpow2.f32 %v5723_v56 }
0x13fc   :  { %6306 = vpow2.f32 %v5724_v42 }
0x13fd   :  { %v4086_v25 = vpop.f32.mrf.mxu3 }
0x13fe   :  { %v4087_v1 = vadd.f32 %v4086_v25, %v4074_v15  ;;  %v4010_v45 = vpop.f32.mrf.mxu1  ;;  %v4036_v33 = vpop.f32.mrf.mxu0 }
0x1400   :  { %v5725_v18 = vmul.f32 -1.442695, %v4087_v1 }
0x1401   :  { %v6305_v2 = vpop.eup %6304 }
0x1402   :  { %v6307_v41 = vpop.eup %6306  ;;  %v4093_v35 = vadd.f32 1.0, %v6305_v2  ;;  %6308 = vpow2.f32 %v5725_v18 }
0x1403   :  { %v4112_v47 = vadd.f32 1.0, %v6307_v41 }
0x1404   :  { %6310 = vrcp.f32 %v4093_v35  ;;  %v4105_v21 = vand.u32 2147483648, %v4093_v35  ;;  %v4103_v27 = vand.u32 2147483647, %v4093_v35  ;;  %vm4099_vm8 = vweird.f32 %v4093_v35 }
0x1405   :  { %6312 = vrcp.f32 %v4112_v47  ;;  %v4088_v60 = vpop.f32.mrf.mxu3  ;;  %v4124_v28 = vand.u32 2147483648, %v4112_v47  ;;  %vm4118_vm9 = vweird.f32 %v4112_v47 }
0x1406   :  { %v4047_v20 = vpop.f32.mrf.mxu1  ;;  %v4060_v48 = vpop.f32.mrf.mxu0  ;;  %v4106_v37 = vor.u32 1.1754944e-38, %v4105_v21  ;;  %vm4104_vm12 = vcmp.eq.f32.partialorder %v4103_v27, 8.507059e+37 }
0x1407   :  { %v4048_v51 = vadd.f32 %v4047_v20, %v6557_v22  ;;  %v4122_v22 = vand.u32 2147483647, %v4112_v47  ;;  %v4125_v19 = vor.u32 1.1754944e-38, %v4124_v28 }
0x1408   :  { %v6309_v0 = vpop.eup %6308 }
0x1409   :  { %v4132_v17 = vadd.f32 1.0, %v6309_v0  ;;  %v4061_v10 = vadd.f32 %v4060_v48, %v4048_v51  ;;  %vm4123_vm13 = vcmp.eq.f32.partialorder %v4122_v22, 8.507059e+37 }
0x140a   :  { %v6311_v31 = vpop.eup %6310 }
0x140b   :  { %v6313_v4 = vpop.eup %6312  ;;  %v4095_v13 = vmul.f32 %v6311_v31, %v4093_v35  ;;  %6314 = vrcp.f32 %v4132_v17  ;;  %vm4100_vm7 = vweird.f32 %v6311_v31  ;;  %v4144_v40 = vand.u32 2147483648, %v4132_v17 }
0x140c   :  { %v4114_v54 = vmul.f32 %v6313_v4, %v4112_v47  ;;  %6316 = vtanh.f32 %v4061_v10  ;;  %vm4119_vm6 = vweird.f32 %v6313_v4  ;;  %vm4101_vm10 = vmor %vm4099_vm8, %vm4100_vm7  ;;  %vm4138_vm15 = vweird.f32 %v4132_v17 }
0x140d   :  { %v4096_v59 = vsub.f32 1.0, %v4095_v13  ;;  %vm4120_vm11 = vmor %vm4118_vm9, %vm4119_vm6  ;;  %v4142_v36 = vand.u32 2147483647, %v4132_v17  ;;  %v4145_v5 = vor.u32 1.1754944e-38, %v4144_v40 }
0x140e   :  { %v4115_v16 = vsub.f32 1.0, %v4114_v54  ;;  %v4049_v12 = vpop.f32.mrf.mxu1  ;;  %v4062_v26 = vpop.f32.mrf.mxu0 }
0x140f   :  { %v4097_v49 = vmul.f32 %v6311_v31, %v4096_v59  ;;  %vm4143_vm0 = vcmp.eq.f32.partialorder %v4142_v36, 8.507059e+37 }
0x1410   :  { %v4116_v55 = vmul.f32 %v6313_v4, %v4115_v16 }
0x1411   :  { %v6315_v14 = vpop.eup %6314  ;;  %v4098_v30 = vadd.f32 %v6311_v31, %v4097_v49 }
0x1412   :  { %v4134_v8 = vmul.f32 %v6315_v14, %v4132_v17  ;;  %v4117_v39 = vadd.f32 %v6313_v4, %v4116_v55  ;;  %v6317_v9 = vpop.eup %6316  ;;  %vm4139_vm14 = vweird.f32 %v6315_v14 }
0x1413   :  { %v4102_v34 = vsel %vm4101_vm10, %v6311_v31, %v4098_v30  ;;  %vm4140_vm2 = vmor %vm4138_vm15, %vm4139_vm14 }
0x1414   :  { %v4135_v63 = vsub.f32 1.0, %v4134_v8  ;;  %v4107_v24 = vsel %vm4104_vm12, %v4106_v37, %v4102_v34  ;;  %v4121_v46 = vsel %vm4120_vm11, %v6313_v4, %v4117_v39 }
0x1415   :  { %v4126_v62 = vsel %vm4123_vm13, %v4125_v19, %v4121_v46  ;;  %v4149_v50 = vmul.f32 %v6317_v9, %v4107_v24 }
0x1416   :  { %v4148_v23 = vmul.f32 %v4126_v62, %v6939_v38  ;;  %v4243_v57 = vpop.f32.mrf.mxu0  ;;  %v4136_v61 = vmul.f32 %v6315_v14, %v4135_v63 }
0x1417   :  { %v4244_v3 = vadd.f32 %v6127_v29, %v4243_v57 }
0x1418   :  { %v4150_v43 = vadd.f32 %v4149_v50, %v4148_v23  ;;  %v4137_v53 = vadd.f32 %v6315_v14, %v4136_v61 }
0x1419   :  { %4263 = vst [vmem:[#allocation10] sm:$0xff] %v4244_v3 }
0x141a   :  { %6318 = vtanh.f32 %v4150_v43  ;;  %v4141_v52 = vsel %vm4140_vm2, %v6315_v14, %v4137_v53 }
0x141b   :  { %v4146_v7 = vsel %vm4143_vm0, %v4145_v5, %v4141_v52 }
0x141e   :  { %v4245_v6 = vpop.f32.mrf.mxu0 }
0x141f   :  { %v4246_v11 = vadd.f32 %v6127_v29, %v4245_v6 }
0x1420   :  { %v6319_v58 = vpop.eup %6318 }
0x1421   :  { %4264 = vst [vmem:[#allocation10 + $0x8] sm:$0xff] %v4246_v11  ;;  %v4152_v38 = vmul.f32 %v6319_v58, %v4146_v7 }
0x1423   :  { %v4165_v44 = vpack.c.bf16 %v4152_v38, %v6949_v32 }
0x1425   :  { %4257 = vmatmul.bf16.gmra.mxu0 %v4165_v44 }
0x1426   :  { %v4248_v56 = vpop.f32.mrf.mxu0 }
0x1427   :  { %v4249_v42 = vadd.f32 %v6127_v29, %v4248_v56 }
0x1429   :  { %4265 = vst [vmem:[#allocation10 + $0x10] sm:$0xff] %v4249_v42 }
0x142e   :  { %v4250_v15 = vpop.f32.mrf.mxu0 }
0x142f   :  { %v4251_v25 = vadd.f32 %v6127_v29, %v4250_v15 }
0x1431   :  { %4266 = vst [vmem:[#allocation10 + $0x18] sm:$0xff] %v4251_v25 }
0x1436   :  { %v4253_v1 = vpop.f32.mrf.mxu0 }
0x1437   :  { %v4254_v45 = vadd.f32 %v6127_v29, %v4253_v1 }
0x1439   :  { %4267 = vst [vmem:[#allocation10 + $0x20] sm:$0xff] %v4254_v45 }
0x143e   :  { %v4255_v33 = vpop.f32.mrf.mxu0 }
0x143f   :  { %v4256_v18 = vadd.f32 %v6127_v29, %v4255_v33 }
0x1441   :  { %4268 = vst [vmem:[#allocation10 + $0x28] sm:$0xff] %v4256_v18 }
0x14a2   :  { %v4258_v2 = vpop.f32.mrf.mxu0 }
0x14a3   :  { %v4259_v41 = vadd.f32 %v6127_v29, %v4258_v2 }
0x14a5   :  { %4269 = vst [vmem:[#allocation10 + $0x30] sm:$0xff] %v4259_v41 }
0x14aa   :  { %v4260_v32 = vpop.f32.mrf.mxu0 }
0x14ab   :  { %v4261_v35 = vadd.f32 %v6127_v29, %v4260_v32 }
0x14ad   :  { %4270 = vst [vmem:[#allocation10 + $0x38] sm:$0xff] %v4261_v35 }
0x14ae   :  { %4283 = dma.vmem_to_hbm [thread:$0]  %s4276_s25, 1024, %s4278_s28, [#allocation6], %s6434_s29, %s6434_s29, %s6435_s30  }
0x14af   :  { %6420 = dma.done.wait [#allocation6], 1024  }
0x14b0   :  { %6421 = vsyncadd [#allocation6], 4294966272 }
0x14b1   :  { %4288 = vsyncpa [#allocation5], 1 }
0x14b2   :  { %4289 = vsyncpa [#allocation8], 1 }
0x14b3   :  { %4290 = vsyncpa [#allocation6], 1 }

</bundles_post_ra>
